<compile_context>
chip_gen: v5e
topology: v5e:2x2
jax: 0.10.0
libtpu: 0.0.40
codegen_flags: <defaults>
</compile_context>

<pallas_src>
import numpy as np
import jax
import jax.numpy as jnp
from jax.experimental import pallas as pl
from jax.experimental.pallas import tpu as pltpu

MXU_DTYPE = jnp.bfloat16   # set to jnp.float32 for a near-exact debug path
BN_EPS = 1e-5


# ----------------------------- Pallas kernel -----------------------------

def make_decoder_kernel(meta, batch):
    """Whole-decoder kernel. `meta` is a tuple of per-layer static geometry."""
    def kernel(*refs):
        o_ref = refs[-1]
        it = iter(refs[:-1])
        x = next(it)[...]                       # (N*H0, W0*C0) activations, MXU dtype
        for m in meta:
            wc_ref = next(it)                   # (k, W*Cin, Wo*Cout) combined weight
            sr_ref = next(it)                   # (k, N*Ho, N*H) 0/1 row-scatter
            acc = None
            for kh in range(m["k"]):            # static unroll: 2 matmuls per tap-row
                # Channel contraction + width scatter folded into one fat matmul
                # (K = W*Cin ~ 96..128, N = Wo*Cout ~ 96..156, lane-dense output).
                t = jnp.dot(x, wc_ref[kh], preferred_element_type=jnp.float32)
                # Height scatter / stride interleave as an exact f32 0/1 matmul.
                c = jnp.dot(sr_ref[kh], t, preferred_element_type=jnp.float32)
                acc = c if acc is None else acc + c
            if m["bn"]:
                p_ref = next(it)                # (L, L) channel-pool matrix, L = Wo*Cout
                gw_ref = next(it)               # (1, L) gamma tiled to wide layout
                bw_ref = next(it)               # (1, L) beta  tiled to wide layout
                inv_cnt = 1.0 / float(batch * m["ho"] * m["wo"])
                pooled = jnp.dot(acc, p_ref[...], preferred_element_type=jnp.float32)
                mean_w = jnp.sum(pooled, axis=0, keepdims=True) * inv_cnt
                d = acc - mean_w                # two-pass variance (no cancellation)
                pooled2 = jnp.dot(d * d, p_ref[...], preferred_element_type=jnp.float32)
                var_w = jnp.sum(pooled2, axis=0, keepdims=True) * inv_cnt
                a_w = gw_ref[...] * jax.lax.rsqrt(var_w + BN_EPS)
                b_w = bw_ref[...] - mean_w * a_w
                x = jnp.maximum(acc * a_w + b_w, 0.0).astype(x.dtype)  # BN+ReLU fused
            else:
                o_ref[...] = jnp.tanh(acc).astype(o_ref.dtype)         # fused Tanh
    return kernel


def _tpu_compiler_params():
    # Derive the VMEM limit from the actual generation (v7x: 64 MiB physical vs
    # 128 MiB on v5e/v6e) instead of hard-coding; working set here is < 2 MiB,
    # so this is purely defensive headroom.
    try:
        cap = int(pltpu.get_tpu_info().vmem_capacity_bytes)
        return pltpu.CompilerParams(vmem_limit_bytes=min(cap * 3 // 4, 96 * 1024 * 1024))
    except Exception:
        return pltpu.CompilerParams()


# ----------------------------- Parameter construction -----------------------------

def build_decoder_params(key, output_nc, ngf, n_downsampling):
    """Mirror of Decoder.__init__ layer construction (PyTorch weight layout)."""
    cfg = []
    mult = 2 ** (n_downsampling - 1)
    cfg.append(dict(cin=ngf * mult, cout=int(ngf * mult / 2), k=5, s=1, p=1,
                    norm=True, act="relu"))
    mult /= 2
    cfg.append(dict(cin=int(ngf * mult), cout=int(ngf * mult / 2), k=5, s=2, p=1,
                    norm=True, act="relu"))
    for i in range(2, n_downsampling):
        mult = 2 ** (n_downsampling - i - 1)
        cfg.append(dict(cin=int(ngf * mult), cout=int(ngf * mult / 2), k=4, s=2, p=1,
                        norm=True, act="relu"))
    mult = mult / 2
    cfg.append(dict(cin=int(ngf * mult), cout=output_nc, k=4, s=2, p=1,
                    norm=False, act="tanh"))

    params = []
    for c in cfg:
        key, wk = jax.random.split(key)
        # PyTorch ConvTranspose2d weight layout: (in_channels, out_channels, kH, kW)
        w_t = 0.1 * jax.random.normal(wk, (c["cin"], c["cout"], c["k"], c["k"]),
                                      jnp.float32)
        pmt = dict(c, w_t=w_t)
        if c["norm"]:
            pmt["gamma"] = jnp.ones((c["cout"],), jnp.float32)   # BN default init
            pmt["beta"] = jnp.zeros((c["cout"],), jnp.float32)
        params.append(pmt)
    return params


def prepare_decoder_operands(params, batch, h0, w0, mxu_dtype=MXU_DTYPE):
    """Precompute (on host, once) the combined-scatter weights and BN helpers.

    ConvTranspose2d scatter form: out[n,co,oy,ox] += x[n,ci,i,j] * W[ci,co,kh,kw]
    with oy = i*s - p + kh, ox = j*s - p + kw.  The (j,kw,ci)->(jo,co) part is
    folded into Wc[kh]; the (i,kh)->oy part is a 0/1 row-scatter SR[kh].
    """
    layers = []
    h, w = h0, w0
    prev_cout = None
    for pmt in params:
        k, s, p = pmt["k"], pmt["s"], pmt["p"]
        cin, cout = pmt["cin"], pmt["cout"]
        if prev_cout is not None:
            assert cin == prev_cout, "channel chain mismatch"
        ho = (h - 1) * s - 2 * p + k
        wo = (w - 1) * s - 2 * p + k
        wt = np.asarray(pmt["w_t"], np.float32)          # (cin, cout, kH, kW)

        # Combined weight: Wc[kh, j*cin+ci, jo*cout+co] = wt[ci,co,kh,kw], kw = jo-(j*s-p)
        wc = np.zeros((k, w * cin, wo * cout), np.float32)
        for kh in range(k):
            for j in range(w):
                for kw in range(k):
                    jo = j * s - p + kw
                    if 0 <= jo < wo:
                        wc[kh, j * cin:(j + 1) * cin,
                           jo * cout:(jo + 1) * cout] = wt[:, :, kh, kw]

        # Row scatter, block-diagonal over the batch (no cross-sample mixing).
        sr = np.zeros((k, batch * ho, batch * h), np.float32)
        for kh in range(k):
            for b in range(batch):
                for i in range(h):
                    oy = i * s - p + kh
                    if 0 <= oy < ho:
                        sr[kh, b * ho + oy, b * h + i] = 1.0

        entry = dict(k=k, ho=ho, wo=wo, cout=cout, bn=bool(pmt["norm"]),
                     wc=jnp.asarray(wc, mxu_dtype), sr=jnp.asarray(sr, jnp.float32))
        if pmt["norm"]:
            L = wo * cout
            lane = np.arange(L)
            pool = (lane[:, None] % cout == lane[None, :] % cout).astype(np.float32)
            entry["pool"] = jnp.asarray(pool)
            entry["gamma_w"] = jnp.asarray(
                np.tile(np.asarray(pmt["gamma"], np.float32), wo)[None, :])
            entry["beta_w"] = jnp.asarray(
                np.tile(np.asarray(pmt["beta"], np.float32), wo)[None, :])
        layers.append(entry)
        h, w = ho, wo
        prev_cout = cout
    return dict(layers=layers, batch=batch, mxu_dtype=mxu_dtype)


# ----------------------------- Forward passes -----------------------------

def decoder_forward_pallas(z_nchw, ops):
    batch = ops["batch"]
    n, c0, h0, w0 = z_nchw.shape
    assert n == batch
    layers = ops["layers"]
    assert not layers[-1]["bn"], "final layer must be the Tanh layer"

    # NCHW -> lane-dense row layout (N*H, W*C): rows = (n, y), lanes = (x, channel).
    x2d = jnp.transpose(z_nchw, (0, 2, 3, 1)).reshape(n * h0, w0 * c0)
    x2d = x2d.astype(ops["mxu_dtype"])

    operands = [x2d]
    meta = []
    for lyr in layers:
        operands.append(lyr["wc"])
        operands.append(lyr["sr"])
        if lyr["bn"]:
            operands += [lyr["pool"], lyr["gamma_w"], lyr["beta_w"]]
        meta.append(dict(k=lyr["k"], bn=lyr["bn"], ho=lyr["ho"], wo=lyr["wo"]))

    last = layers[-1]
    out2d = pl.pallas_call(
        make_decoder_kernel(tuple(meta), batch),
        out_shape=jax.ShapeDtypeStruct(
            (n * last["ho"], last["wo"] * last["cout"]), jnp.float32),
        compiler_params=_tpu_compiler_params(),
    )(*operands)

    out = out2d.reshape(n, last["ho"], last["wo"], last["cout"])
    return jnp.transpose(out, (0, 3, 1, 2))              # NHWC -> NCHW


def dilate_and_pad(x, stride, k, p):
    """ConvTranspose -> equivalent stride-1 conv input transform (reference only)."""
    n, h, w, c = x.shape
    if stride > 1:
        hd = (h - 1) * stride + 1
        wd = (w - 1) * stride + 1
        xd = jnp.zeros((n, hd, wd, c), x.dtype).at[:, ::stride, ::stride, :].set(x)
    else:
        xd = x
    pad = k - 1 - p
    return jnp.pad(xd, ((0, 0), (pad, pad), (pad, pad), (0, 0)))


def decoder_reference(z_nchw, params):
    """Pure-JAX f32 reference with identical math (independent formulation)."""
    x = jnp.transpose(z_nchw, (0, 2, 3, 1))
    for pmt in params:
        k = pmt["k"]
        # gather form uses the flipped kernel
        w_conv = jnp.transpose(pmt["w_t"][:, :, ::-1, ::-1], (2, 3, 0, 1))
        xp = dilate_and_pad(x, pmt["s"], k, pmt["p"])
        n, hp, wp, _ = xp.shape
        ho, wo = hp - k + 1, wp - k + 1
        out = jnp.zeros((n, ho, wo, pmt["cout"]), jnp.float32)
        for kh in range(k):
            for kw in range(k):
                out = out + jnp.einsum(
                    "nhwc,cd->nhwd", xp[:, kh:kh + ho, kw:kw + wo, :], w_conv[kh, kw])
        if pmt["norm"]:
            mean = out.mean(axis=(0, 1, 2), keepdims=True)
            var = ((out - mean) ** 2).mean(axis=(0, 1, 2), keepdims=True)
            out = (out - mean) * jax.lax.rsqrt(var + BN_EPS)
            out = out * pmt["gamma"] + pmt["beta"]
            out = jnp.maximum(out, 0.0)
        else:
            out = jnp.tanh(out)
        x = out
    return jnp.transpose(x, (0, 3, 1, 2))


# ----------------------------- Main -----------------------------

if __name__ == "__main__":
    # Decoder(input_nc=32, output_nc=3, ngf=8, n_downsampling=3); z: (2, 32, 4, 4)
    output_nc, ngf, n_downsampling = 3, 8, 3
    batch, h0, w0 = 2, 4, 4

    key = jax.random.PRNGKey(0)
    kz, kp = jax.random.split(key)
    params = build_decoder_params(kp, output_nc, ngf, n_downsampling)
    ops = prepare_decoder_operands(params, batch, h0, w0, MXU_DTYPE)

    # z channels must equal ngf * 2**(n_downsampling-1) = 32 (NCHW, like PyTorch)
    z = jax.random.normal(kz, (batch, ngf * 2 ** (n_downsampling - 1), h0, w0),
                          jnp.float32)

    fwd = jax.jit(lambda zz: decoder_forward_pallas(zz, ops))
    ref_fn = jax.jit(lambda zz: decoder_reference(zz, params))

    out = jax.block_until_ready(fwd(z))
    ref = jax.block_until_ready(ref_fn(z))

    # Expected spatial growth: 4 -> 6 -> 13 -> 26 -> 52
    assert out.shape == (batch, output_nc, 52, 52), out.shape
    # bf16 MXU inputs vs. f32 reference => loose tolerance; flipping MXU_DTYPE to
    # jnp.float32 gives a near-exact debug path checked at 1e-4.
    tol = 1e-4 if MXU_DTYPE == jnp.float32 else 1e-1
    np.testing.assert_allclose(np.asarray(out), np.asarray(ref), atol=tol, rtol=tol)
    print("KERNEL_OK")
</pallas_src>

<mosaic_0001>
module attributes {stable_mosaic.version = 11 : i64} {
  func.func @kernel(%arg0: memref<8x128xbf16, #tpu.memory_space<vmem>>, %arg1: memref<5x128x96xbf16, #tpu.memory_space<vmem>>, %arg2: memref<5x12x8xf32, #tpu.memory_space<vmem>>, %arg3: memref<96x96xf32, #tpu.memory_space<vmem>>, %arg4: memref<1x96xf32, #tpu.memory_space<vmem>>, %arg5: memref<1x96xf32, #tpu.memory_space<vmem>>, %arg6: memref<5x96x104xbf16, #tpu.memory_space<vmem>>, %arg7: memref<5x26x12xf32, #tpu.memory_space<vmem>>, %arg8: memref<104x104xf32, #tpu.memory_space<vmem>>, %arg9: memref<1x104xf32, #tpu.memory_space<vmem>>, %arg10: memref<1x104xf32, #tpu.memory_space<vmem>>, %arg11: memref<4x104x104xbf16, #tpu.memory_space<vmem>>, %arg12: memref<4x52x26xf32, #tpu.memory_space<vmem>>, %arg13: memref<104x104xf32, #tpu.memory_space<vmem>>, %arg14: memref<1x104xf32, #tpu.memory_space<vmem>>, %arg15: memref<1x104xf32, #tpu.memory_space<vmem>>, %arg16: memref<4x104x156xbf16, #tpu.memory_space<vmem>>, %arg17: memref<4x104x52xf32, #tpu.memory_space<vmem>>, %arg18: memref<104x156xf32, #tpu.memory_space<vmem>>) attributes {dimension_semantics = [], scalar_prefetch = 0 : i64, scratch_operands = 0 : i64, tpu.core_type = #tpu.core_type<tc>} {
    %c0 = arith.constant 0 : index
    %c0_0 = arith.constant 0 : index
    %0 = vector.load %arg0[%c0, %c0_0] : memref<8x128xbf16, #tpu.memory_space<vmem>>, vector<8x128xbf16>
    %c0_1 = arith.constant 0 : index
    %c0_2 = arith.constant 0 : index
    %c0_3 = arith.constant 0 : index
    %1 = vector.load %arg1[%c0_1, %c0_2, %c0_3] : memref<5x128x96xbf16, #tpu.memory_space<vmem>>, vector<1x128x96xbf16>
    %2 = vector.shape_cast %1 : vector<1x128x96xbf16> to vector<128x96xbf16>
    %cst = arith.constant dense<0.000000e+00> : vector<8x96xf32>
    %3 = tpu.matmul %0, %2, %cst {dimension_numbers = #tpu.dot_dimension_numbers<[1], [0], [0], [1], [0, 0, 1, 1], [], []>} : vector<8x128xbf16>, vector<128x96xbf16>, vector<8x96xf32> -> vector<8x96xf32>
    %c0_4 = arith.constant 0 : index
    %c0_5 = arith.constant 0 : index
    %c0_6 = arith.constant 0 : index
    %4 = vector.load %arg2[%c0_4, %c0_5, %c0_6] : memref<5x12x8xf32, #tpu.memory_space<vmem>>, vector<1x12x8xf32>
    %5 = vector.shape_cast %4 : vector<1x12x8xf32> to vector<12x8xf32>
    %cst_7 = arith.constant dense<0.000000e+00> : vector<12x96xf32>
    %6 = tpu.matmul %5, %3, %cst_7 {dimension_numbers = #tpu.dot_dimension_numbers<[1], [0], [0], [1], [0, 0, 1, 1], [], []>} : vector<12x8xf32>, vector<8x96xf32>, vector<12x96xf32> -> vector<12x96xf32>
    %c1 = arith.constant 1 : index
    %c0_8 = arith.constant 0 : index
    %c0_9 = arith.constant 0 : index
    %7 = vector.load %arg1[%c1, %c0_8, %c0_9] : memref<5x128x96xbf16, #tpu.memory_space<vmem>>, vector<1x128x96xbf16>
    %8 = vector.shape_cast %7 : vector<1x128x96xbf16> to vector<128x96xbf16>
    %cst_10 = arith.constant dense<0.000000e+00> : vector<8x96xf32>
    %9 = tpu.matmul %0, %8, %cst_10 {dimension_numbers = #tpu.dot_dimension_numbers<[1], [0], [0], [1], [0, 0, 1, 1], [], []>} : vector<8x128xbf16>, vector<128x96xbf16>, vector<8x96xf32> -> vector<8x96xf32>
    %c1_11 = arith.constant 1 : index
    %c0_12 = arith.constant 0 : index
    %c0_13 = arith.constant 0 : index
    %10 = vector.load %arg2[%c1_11, %c0_12, %c0_13] : memref<5x12x8xf32, #tpu.memory_space<vmem>>, vector<1x12x8xf32>
    %11 = vector.shape_cast %10 : vector<1x12x8xf32> to vector<12x8xf32>
    %cst_14 = arith.constant dense<0.000000e+00> : vector<12x96xf32>
    %12 = tpu.matmul %11, %9, %cst_14 {dimension_numbers = #tpu.dot_dimension_numbers<[1], [0], [0], [1], [0, 0, 1, 1], [], []>} : vector<12x8xf32>, vector<8x96xf32>, vector<12x96xf32> -> vector<12x96xf32>
    %13 = arith.addf %6, %12 : vector<12x96xf32>
    %c2 = arith.constant 2 : index
    %c0_15 = arith.constant 0 : index
    %c0_16 = arith.constant 0 : index
    %14 = vector.load %arg1[%c2, %c0_15, %c0_16] : memref<5x128x96xbf16, #tpu.memory_space<vmem>>, vector<1x128x96xbf16>
    %15 = vector.shape_cast %14 : vector<1x128x96xbf16> to vector<128x96xbf16>
    %cst_17 = arith.constant dense<0.000000e+00> : vector<8x96xf32>
    %16 = tpu.matmul %0, %15, %cst_17 {dimension_numbers = #tpu.dot_dimension_numbers<[1], [0], [0], [1], [0, 0, 1, 1], [], []>} : vector<8x128xbf16>, vector<128x96xbf16>, vector<8x96xf32> -> vector<8x96xf32>
    %c2_18 = arith.constant 2 : index
    %c0_19 = arith.constant 0 : index
    %c0_20 = arith.constant 0 : index
    %17 = vector.load %arg2[%c2_18, %c0_19, %c0_20] : memref<5x12x8xf32, #tpu.memory_space<vmem>>, vector<1x12x8xf32>
    %18 = vector.shape_cast %17 : vector<1x12x8xf32> to vector<12x8xf32>
    %cst_21 = arith.constant dense<0.000000e+00> : vector<12x96xf32>
    %19 = tpu.matmul %18, %16, %cst_21 {dimension_numbers = #tpu.dot_dimension_numbers<[1], [0], [0], [1], [0, 0, 1, 1], [], []>} : vector<12x8xf32>, vector<8x96xf32>, vector<12x96xf32> -> vector<12x96xf32>
    %20 = arith.addf %13, %19 : vector<12x96xf32>
    %c3 = arith.constant 3 : index
    %c0_22 = arith.constant 0 : index
    %c0_23 = arith.constant 0 : index
    %21 = vector.load %arg1[%c3, %c0_22, %c0_23] : memref<5x128x96xbf16, #tpu.memory_space<vmem>>, vector<1x128x96xbf16>
    %22 = vector.shape_cast %21 : vector<1x128x96xbf16> to vector<128x96xbf16>
    %cst_24 = arith.constant dense<0.000000e+00> : vector<8x96xf32>
    %23 = tpu.matmul %0, %22, %cst_24 {dimension_numbers = #tpu.dot_dimension_numbers<[1], [0], [0], [1], [0, 0, 1, 1], [], []>} : vector<8x128xbf16>, vector<128x96xbf16>, vector<8x96xf32> -> vector<8x96xf32>
    %c3_25 = arith.constant 3 : index
    %c0_26 = arith.constant 0 : index
    %c0_27 = arith.constant 0 : index
    %24 = vector.load %arg2[%c3_25, %c0_26, %c0_27] : memref<5x12x8xf32, #tpu.memory_space<vmem>>, vector<1x12x8xf32>
    %25 = vector.shape_cast %24 : vector<1x12x8xf32> to vector<12x8xf32>
    %cst_28 = arith.constant dense<0.000000e+00> : vector<12x96xf32>
    %26 = tpu.matmul %25, %23, %cst_28 {dimension_numbers = #tpu.dot_dimension_numbers<[1], [0], [0], [1], [0, 0, 1, 1], [], []>} : vector<12x8xf32>, vector<8x96xf32>, vector<12x96xf32> -> vector<12x96xf32>
    %27 = arith.addf %20, %26 : vector<12x96xf32>
    %c4 = arith.constant 4 : index
    %c0_29 = arith.constant 0 : index
    %c0_30 = arith.constant 0 : index
    %28 = vector.load %arg1[%c4, %c0_29, %c0_30] : memref<5x128x96xbf16, #tpu.memory_space<vmem>>, vector<1x128x96xbf16>
    %29 = vector.shape_cast %28 : vector<1x128x96xbf16> to vector<128x96xbf16>
    %cst_31 = arith.constant dense<0.000000e+00> : vector<8x96xf32>
    %30 = tpu.matmul %0, %29, %cst_31 {dimension_numbers = #tpu.dot_dimension_numbers<[1], [0], [0], [1], [0, 0, 1, 1], [], []>} : vector<8x128xbf16>, vector<128x96xbf16>, vector<8x96xf32> -> vector<8x96xf32>
    %c4_32 = arith.constant 4 : index
    %c0_33 = arith.constant 0 : index
    %c0_34 = arith.constant 0 : index
    %31 = vector.load %arg2[%c4_32, %c0_33, %c0_34] : memref<5x12x8xf32, #tpu.memory_space<vmem>>, vector<1x12x8xf32>
    %32 = vector.shape_cast %31 : vector<1x12x8xf32> to vector<12x8xf32>
    %cst_35 = arith.constant dense<0.000000e+00> : vector<12x96xf32>
    %33 = tpu.matmul %32, %30, %cst_35 {dimension_numbers = #tpu.dot_dimension_numbers<[1], [0], [0], [1], [0, 0, 1, 1], [], []>} : vector<12x8xf32>, vector<8x96xf32>, vector<12x96xf32> -> vector<12x96xf32>
    %34 = arith.addf %27, %33 : vector<12x96xf32>
    %c0_36 = arith.constant 0 : index
    %c0_37 = arith.constant 0 : index
    %35 = vector.load %arg3[%c0_36, %c0_37] : memref<96x96xf32, #tpu.memory_space<vmem>>, vector<96x96xf32>
    %cst_38 = arith.constant dense<0.000000e+00> : vector<12x96xf32>
    %36 = tpu.matmul %34, %35, %cst_38 {dimension_numbers = #tpu.dot_dimension_numbers<[1], [0], [0], [1], [0, 0, 1, 1], [], []>} : vector<12x96xf32>, vector<96x96xf32>, vector<12x96xf32> -> vector<12x96xf32>
    %cst_39 = arith.constant dense<0.000000e+00> : vector<96xf32>
    %37 = vector.multi_reduction <add>, %36, %cst_39 [0] : vector<12x96xf32> to vector<96xf32>
    %38 = vector.shape_cast %37 : vector<96xf32> to vector<1x96xf32>
    %cst_40 = arith.constant 0.013888889 : f32
    %39 = vector.broadcast %cst_40 : f32 to vector<1x96xf32>
    %40 = arith.mulf %38, %39 : vector<1x96xf32>
    %41 = vector.broadcast %40 : vector<1x96xf32> to vector<12x96xf32>
    %42 = arith.subf %34, %41 : vector<12x96xf32>
    %43 = arith.mulf %42, %42 : vector<12x96xf32>
    %c0_41 = arith.constant 0 : index
    %c0_42 = arith.constant 0 : index
    %44 = vector.load %arg3[%c0_41, %c0_42] : memref<96x96xf32, #tpu.memory_space<vmem>>, vector<96x96xf32>
    %cst_43 = arith.constant dense<0.000000e+00> : vector<12x96xf32>
    %45 = tpu.matmul %43, %44, %cst_43 {dimension_numbers = #tpu.dot_dimension_numbers<[1], [0], [0], [1], [0, 0, 1, 1], [], []>} : vector<12x96xf32>, vector<96x96xf32>, vector<12x96xf32> -> vector<12x96xf32>
    %cst_44 = arith.constant dense<0.000000e+00> : vector<96xf32>
    %46 = vector.multi_reduction <add>, %45, %cst_44 [0] : vector<12x96xf32> to vector<96xf32>
    %47 = vector.shape_cast %46 : vector<96xf32> to vector<1x96xf32>
    %cst_45 = arith.constant 0.013888889 : f32
    %48 = vector.broadcast %cst_45 : f32 to vector<1x96xf32>
    %49 = arith.mulf %47, %48 : vector<1x96xf32>
    %c0_46 = arith.constant 0 : index
    %c0_47 = arith.constant 0 : index
    %50 = vector.load %arg4[%c0_46, %c0_47] : memref<1x96xf32, #tpu.memory_space<vmem>>, vector<1x96xf32>
    %cst_48 = arith.constant 9.99999974E-6 : f32
    %51 = vector.broadcast %cst_48 : f32 to vector<1x96xf32>
    %52 = arith.addf %49, %51 : vector<1x96xf32>
    %53 = math.rsqrt %52 : vector<1x96xf32>
    %54 = arith.mulf %50, %53 : vector<1x96xf32>
    %c0_49 = arith.constant 0 : index
    %c0_50 = arith.constant 0 : index
    %55 = vector.load %arg5[%c0_49, %c0_50] : memref<1x96xf32, #tpu.memory_space<vmem>>, vector<1x96xf32>
    %56 = arith.mulf %40, %54 : vector<1x96xf32>
    %57 = arith.subf %55, %56 : vector<1x96xf32>
    %58 = vector.broadcast %54 : vector<1x96xf32> to vector<12x96xf32>
    %59 = arith.mulf %34, %58 : vector<12x96xf32>
    %60 = vector.broadcast %57 : vector<1x96xf32> to vector<12x96xf32>
    %61 = arith.addf %59, %60 : vector<12x96xf32>
    %cst_51 = arith.constant 0.000000e+00 : f32
    %62 = vector.broadcast %cst_51 : f32 to vector<12x96xf32>
    %63 = arith.maximumf %61, %62 : vector<12x96xf32>
    %64 = arith.truncf %63 : vector<12x96xf32> to vector<12x96xbf16>
    %c0_52 = arith.constant 0 : index
    %c0_53 = arith.constant 0 : index
    %c0_54 = arith.constant 0 : index
    %65 = vector.load %arg6[%c0_52, %c0_53, %c0_54] : memref<5x96x104xbf16, #tpu.memory_space<vmem>>, vector<1x96x104xbf16>
    %66 = vector.shape_cast %65 : vector<1x96x104xbf16> to vector<96x104xbf16>
    %cst_55 = arith.constant dense<0.000000e+00> : vector<12x104xf32>
    %67 = tpu.matmul %64, %66, %cst_55 {dimension_numbers = #tpu.dot_dimension_numbers<[1], [0], [0], [1], [0, 0, 1, 1], [], []>} : vector<12x96xbf16>, vector<96x104xbf16>, vector<12x104xf32> -> vector<12x104xf32>
    %c0_56 = arith.constant 0 : index
    %c0_57 = arith.constant 0 : index
    %c0_58 = arith.constant 0 : index
    %68 = vector.load %arg7[%c0_56, %c0_57, %c0_58] : memref<5x26x12xf32, #tpu.memory_space<vmem>>, vector<1x26x12xf32>
    %69 = vector.shape_cast %68 : vector<1x26x12xf32> to vector<26x12xf32>
    %cst_59 = arith.constant dense<0.000000e+00> : vector<26x104xf32>
    %70 = tpu.matmul %69, %67, %cst_59 {dimension_numbers = #tpu.dot_dimension_numbers<[1], [0], [0], [1], [0, 0, 1, 1], [], []>} : vector<26x12xf32>, vector<12x104xf32>, vector<26x104xf32> -> vector<26x104xf32>
    %c1_60 = arith.constant 1 : index
    %c0_61 = arith.constant 0 : index
    %c0_62 = arith.constant 0 : index
    %71 = vector.load %arg6[%c1_60, %c0_61, %c0_62] : memref<5x96x104xbf16, #tpu.memory_space<vmem>>, vector<1x96x104xbf16>
    %72 = vector.shape_cast %71 : vector<1x96x104xbf16> to vector<96x104xbf16>
    %cst_63 = arith.constant dense<0.000000e+00> : vector<12x104xf32>
    %73 = tpu.matmul %64, %72, %cst_63 {dimension_numbers = #tpu.dot_dimension_numbers<[1], [0], [0], [1], [0, 0, 1, 1], [], []>} : vector<12x96xbf16>, vector<96x104xbf16>, vector<12x104xf32> -> vector<12x104xf32>
    %c1_64 = arith.constant 1 : index
    %c0_65 = arith.constant 0 : index
    %c0_66 = arith.constant 0 : index
    %74 = vector.load %arg7[%c1_64, %c0_65, %c0_66] : memref<5x26x12xf32, #tpu.memory_space<vmem>>, vector<1x26x12xf32>
    %75 = vector.shape_cast %74 : vector<1x26x12xf32> to vector<26x12xf32>
    %cst_67 = arith.constant dense<0.000000e+00> : vector<26x104xf32>
    %76 = tpu.matmul %75, %73, %cst_67 {dimension_numbers = #tpu.dot_dimension_numbers<[1], [0], [0], [1], [0, 0, 1, 1], [], []>} : vector<26x12xf32>, vector<12x104xf32>, vector<26x104xf32> -> vector<26x104xf32>
    %77 = arith.addf %70, %76 : vector<26x104xf32>
    %c2_68 = arith.constant 2 : index
    %c0_69 = arith.constant 0 : index
    %c0_70 = arith.constant 0 : index
    %78 = vector.load %arg6[%c2_68, %c0_69, %c0_70] : memref<5x96x104xbf16, #tpu.memory_space<vmem>>, vector<1x96x104xbf16>
    %79 = vector.shape_cast %78 : vector<1x96x104xbf16> to vector<96x104xbf16>
    %cst_71 = arith.constant dense<0.000000e+00> : vector<12x104xf32>
    %80 = tpu.matmul %64, %79, %cst_71 {dimension_numbers = #tpu.dot_dimension_numbers<[1], [0], [0], [1], [0, 0, 1, 1], [], []>} : vector<12x96xbf16>, vector<96x104xbf16>, vector<12x104xf32> -> vector<12x104xf32>
    %c2_72 = arith.constant 2 : index
    %c0_73 = arith.constant 0 : index
    %c0_74 = arith.constant 0 : index
    %81 = vector.load %arg7[%c2_72, %c0_73, %c0_74] : memref<5x26x12xf32, #tpu.memory_space<vmem>>, vector<1x26x12xf32>
    %82 = vector.shape_cast %81 : vector<1x26x12xf32> to vector<26x12xf32>
    %cst_75 = arith.constant dense<0.000000e+00> : vector<26x104xf32>
    %83 = tpu.matmul %82, %80, %cst_75 {dimension_numbers = #tpu.dot_dimension_numbers<[1], [0], [0], [1], [0, 0, 1, 1], [], []>} : vector<26x12xf32>, vector<12x104xf32>, vector<26x104xf32> -> vector<26x104xf32>
    %84 = arith.addf %77, %83 : vector<26x104xf32>
    %c3_76 = arith.constant 3 : index
    %c0_77 = arith.constant 0 : index
    %c0_78 = arith.constant 0 : index
    %85 = vector.load %arg6[%c3_76, %c0_77, %c0_78] : memref<5x96x104xbf16, #tpu.memory_space<vmem>>, vector<1x96x104xbf16>
    %86 = vector.shape_cast %85 : vector<1x96x104xbf16> to vector<96x104xbf16>
    %cst_79 = arith.constant dense<0.000000e+00> : vector<12x104xf32>
    %87 = tpu.matmul %64, %86, %cst_79 {dimension_numbers = #tpu.dot_dimension_numbers<[1], [0], [0], [1], [0, 0, 1, 1], [], []>} : vector<12x96xbf16>, vector<96x104xbf16>, vector<12x104xf32> -> vector<12x104xf32>
    %c3_80 = arith.constant 3 : index
    %c0_81 = arith.constant 0 : index
    %c0_82 = arith.constant 0 : index
    %88 = vector.load %arg7[%c3_80, %c0_81, %c0_82] : memref<5x26x12xf32, #tpu.memory_space<vmem>>, vector<1x26x12xf32>
    %89 = vector.shape_cast %88 : vector<1x26x12xf32> to vector<26x12xf32>
    %cst_83 = arith.constant dense<0.000000e+00> : vector<26x104xf32>
    %90 = tpu.matmul %89, %87, %cst_83 {dimension_numbers = #tpu.dot_dimension_numbers<[1], [0], [0], [1], [0, 0, 1, 1], [], []>} : vector<26x12xf32>, vector<12x104xf32>, vector<26x104xf32> -> vector<26x104xf32>
    %91 = arith.addf %84, %90 : vector<26x104xf32>
    %c4_84 = arith.constant 4 : index
    %c0_85 = arith.constant 0 : index
    %c0_86 = arith.constant 0 : index
    %92 = vector.load %arg6[%c4_84, %c0_85, %c0_86] : memref<5x96x104xbf16, #tpu.memory_space<vmem>>, vector<1x96x104xbf16>
    %93 = vector.shape_cast %92 : vector<1x96x104xbf16> to vector<96x104xbf16>
    %cst_87 = arith.constant dense<0.000000e+00> : vector<12x104xf32>
    %94 = tpu.matmul %64, %93, %cst_87 {dimension_numbers = #tpu.dot_dimension_numbers<[1], [0], [0], [1], [0, 0, 1, 1], [], []>} : vector<12x96xbf16>, vector<96x104xbf16>, vector<12x104xf32> -> vector<12x104xf32>
    %c4_88 = arith.constant 4 : index
    %c0_89 = arith.constant 0 : index
    %c0_90 = arith.constant 0 : index
    %95 = vector.load %arg7[%c4_88, %c0_89, %c0_90] : memref<5x26x12xf32, #tpu.memory_space<vmem>>, vector<1x26x12xf32>
    %96 = vector.shape_cast %95 : vector<1x26x12xf32> to vector<26x12xf32>
    %cst_91 = arith.constant dense<0.000000e+00> : vector<26x104xf32>
    %97 = tpu.matmul %96, %94, %cst_91 {dimension_numbers = #tpu.dot_dimension_numbers<[1], [0], [0], [1], [0, 0, 1, 1], [], []>} : vector<26x12xf32>, vector<12x104xf32>, vector<26x104xf32> -> vector<26x104xf32>
    %98 = arith.addf %91, %97 : vector<26x104xf32>
    %c0_92 = arith.constant 0 : index
    %c0_93 = arith.constant 0 : index
    %99 = vector.load %arg8[%c0_92, %c0_93] : memref<104x104xf32, #tpu.memory_space<vmem>>, vector<104x104xf32>
    %cst_94 = arith.constant dense<0.000000e+00> : vector<26x104xf32>
    %100 = tpu.matmul %98, %99, %cst_94 {dimension_numbers = #tpu.dot_dimension_numbers<[1], [0], [0], [1], [0, 0, 1, 1], [], []>} : vector<26x104xf32>, vector<104x104xf32>, vector<26x104xf32> -> vector<26x104xf32>
    %cst_95 = arith.constant dense<0.000000e+00> : vector<104xf32>
    %101 = vector.multi_reduction <add>, %100, %cst_95 [0] : vector<26x104xf32> to vector<104xf32>
    %102 = vector.shape_cast %101 : vector<104xf32> to vector<1x104xf32>
    %cst_96 = arith.constant 2.958580e-03 : f32
    %103 = vector.broadcast %cst_96 : f32 to vector<1x104xf32>
    %104 = arith.mulf %102, %103 : vector<1x104xf32>
    %105 = vector.broadcast %104 : vector<1x104xf32> to vector<26x104xf32>
    %106 = arith.subf %98, %105 : vector<26x104xf32>
    %107 = arith.mulf %106, %106 : vector<26x104xf32>
    %c0_97 = arith.constant 0 : index
    %c0_98 = arith.constant 0 : index
    %108 = vector.load %arg8[%c0_97, %c0_98] : memref<104x104xf32, #tpu.memory_space<vmem>>, vector<104x104xf32>
    %cst_99 = arith.constant dense<0.000000e+00> : vector<26x104xf32>
    %109 = tpu.matmul %107, %108, %cst_99 {dimension_numbers = #tpu.dot_dimension_numbers<[1], [0], [0], [1], [0, 0, 1, 1], [], []>} : vector<26x104xf32>, vector<104x104xf32>, vector<26x104xf32> -> vector<26x104xf32>
    %cst_100 = arith.constant dense<0.000000e+00> : vector<104xf32>
    %110 = vector.multi_reduction <add>, %109, %cst_100 [0] : vector<26x104xf32> to vector<104xf32>
    %111 = vector.shape_cast %110 : vector<104xf32> to vector<1x104xf32>
    %cst_101 = arith.constant 2.958580e-03 : f32
    %112 = vector.broadcast %cst_101 : f32 to vector<1x104xf32>
    %113 = arith.mulf %111, %112 : vector<1x104xf32>
    %c0_102 = arith.constant 0 : index
    %c0_103 = arith.constant 0 : index
    %114 = vector.load %arg9[%c0_102, %c0_103] : memref<1x104xf32, #tpu.memory_space<vmem>>, vector<1x104xf32>
    %cst_104 = arith.constant 9.99999974E-6 : f32
    %115 = vector.broadcast %cst_104 : f32 to vector<1x104xf32>
    %116 = arith.addf %113, %115 : vector<1x104xf32>
    %117 = math.rsqrt %116 : vector<1x104xf32>
    %118 = arith.mulf %114, %117 : vector<1x104xf32>
    %c0_105 = arith.constant 0 : index
    %c0_106 = arith.constant 0 : index
    %119 = vector.load %arg10[%c0_105, %c0_106] : memref<1x104xf32, #tpu.memory_space<vmem>>, vector<1x104xf32>
    %120 = arith.mulf %104, %118 : vector<1x104xf32>
    %121 = arith.subf %119, %120 : vector<1x104xf32>
    %122 = vector.broadcast %118 : vector<1x104xf32> to vector<26x104xf32>
    %123 = arith.mulf %98, %122 : vector<26x104xf32>
    %124 = vector.broadcast %121 : vector<1x104xf32> to vector<26x104xf32>
    %125 = arith.addf %123, %124 : vector<26x104xf32>
    %cst_107 = arith.constant 0.000000e+00 : f32
    %126 = vector.broadcast %cst_107 : f32 to vector<26x104xf32>
    %127 = arith.maximumf %125, %126 : vector<26x104xf32>
    %128 = arith.truncf %127 : vector<26x104xf32> to vector<26x104xbf16>
    %c0_108 = arith.constant 0 : index
    %c0_109 = arith.constant 0 : index
    %c0_110 = arith.constant 0 : index
    %129 = vector.load %arg11[%c0_108, %c0_109, %c0_110] : memref<4x104x104xbf16, #tpu.memory_space<vmem>>, vector<1x104x104xbf16>
    %130 = vector.shape_cast %129 : vector<1x104x104xbf16> to vector<104x104xbf16>
    %cst_111 = arith.constant dense<0.000000e+00> : vector<26x104xf32>
    %131 = tpu.matmul %128, %130, %cst_111 {dimension_numbers = #tpu.dot_dimension_numbers<[1], [0], [0], [1], [0, 0, 1, 1], [], []>} : vector<26x104xbf16>, vector<104x104xbf16>, vector<26x104xf32> -> vector<26x104xf32>
    %c0_112 = arith.constant 0 : index
    %c0_113 = arith.constant 0 : index
    %c0_114 = arith.constant 0 : index
    %132 = vector.load %arg12[%c0_112, %c0_113, %c0_114] : memref<4x52x26xf32, #tpu.memory_space<vmem>>, vector<1x52x26xf32>
    %133 = vector.shape_cast %132 : vector<1x52x26xf32> to vector<52x26xf32>
    %cst_115 = arith.constant dense<0.000000e+00> : vector<52x104xf32>
    %134 = tpu.matmul %133, %131, %cst_115 {dimension_numbers = #tpu.dot_dimension_numbers<[1], [0], [0], [1], [0, 0, 1, 1], [], []>} : vector<52x26xf32>, vector<26x104xf32>, vector<52x104xf32> -> vector<52x104xf32>
    %c1_116 = arith.constant 1 : index
    %c0_117 = arith.constant 0 : index
    %c0_118 = arith.constant 0 : index
    %135 = vector.load %arg11[%c1_116, %c0_117, %c0_118] : memref<4x104x104xbf16, #tpu.memory_space<vmem>>, vector<1x104x104xbf16>
    %136 = vector.shape_cast %135 : vector<1x104x104xbf16> to vector<104x104xbf16>
    %cst_119 = arith.constant dense<0.000000e+00> : vector<26x104xf32>
    %137 = tpu.matmul %128, %136, %cst_119 {dimension_numbers = #tpu.dot_dimension_numbers<[1], [0], [0], [1], [0, 0, 1, 1], [], []>} : vector<26x104xbf16>, vector<104x104xbf16>, vector<26x104xf32> -> vector<26x104xf32>
    %c1_120 = arith.constant 1 : index
    %c0_121 = arith.constant 0 : index
    %c0_122 = arith.constant 0 : index
    %138 = vector.load %arg12[%c1_120, %c0_121, %c0_122] : memref<4x52x26xf32, #tpu.memory_space<vmem>>, vector<1x52x26xf32>
    %139 = vector.shape_cast %138 : vector<1x52x26xf32> to vector<52x26xf32>
    %cst_123 = arith.constant dense<0.000000e+00> : vector<52x104xf32>
    %140 = tpu.matmul %139, %137, %cst_123 {dimension_numbers = #tpu.dot_dimension_numbers<[1], [0], [0], [1], [0, 0, 1, 1], [], []>} : vector<52x26xf32>, vector<26x104xf32>, vector<52x104xf32> -> vector<52x104xf32>
    %141 = arith.addf %134, %140 : vector<52x104xf32>
    %c2_124 = arith.constant 2 : index
    %c0_125 = arith.constant 0 : index
    %c0_126 = arith.constant 0 : index
    %142 = vector.load %arg11[%c2_124, %c0_125, %c0_126] : memref<4x104x104xbf16, #tpu.memory_space<vmem>>, vector<1x104x104xbf16>
    %143 = vector.shape_cast %142 : vector<1x104x104xbf16> to vector<104x104xbf16>
    %cst_127 = arith.constant dense<0.000000e+00> : vector<26x104xf32>
    %144 = tpu.matmul %128, %143, %cst_127 {dimension_numbers = #tpu.dot_dimension_numbers<[1], [0], [0], [1], [0, 0, 1, 1], [], []>} : vector<26x104xbf16>, vector<104x104xbf16>, vector<26x104xf32> -> vector<26x104xf32>
    %c2_128 = arith.constant 2 : index
    %c0_129 = arith.constant 0 : index
    %c0_130 = arith.constant 0 : index
    %145 = vector.load %arg12[%c2_128, %c0_129, %c0_130] : memref<4x52x26xf32, #tpu.memory_space<vmem>>, vector<1x52x26xf32>
    %146 = vector.shape_cast %145 : vector<1x52x26xf32> to vector<52x26xf32>
    %cst_131 = arith.constant dense<0.000000e+00> : vector<52x104xf32>
    %147 = tpu.matmul %146, %144, %cst_131 {dimension_numbers = #tpu.dot_dimension_numbers<[1], [0], [0], [1], [0, 0, 1, 1], [], []>} : vector<52x26xf32>, vector<26x104xf32>, vector<52x104xf32> -> vector<52x104xf32>
    %148 = arith.addf %141, %147 : vector<52x104xf32>
    %c3_132 = arith.constant 3 : index
    %c0_133 = arith.constant 0 : index
    %c0_134 = arith.constant 0 : index
    %149 = vector.load %arg11[%c3_132, %c0_133, %c0_134] : memref<4x104x104xbf16, #tpu.memory_space<vmem>>, vector<1x104x104xbf16>
    %150 = vector.shape_cast %149 : vector<1x104x104xbf16> to vector<104x104xbf16>
    %cst_135 = arith.constant dense<0.000000e+00> : vector<26x104xf32>
    %151 = tpu.matmul %128, %150, %cst_135 {dimension_numbers = #tpu.dot_dimension_numbers<[1], [0], [0], [1], [0, 0, 1, 1], [], []>} : vector<26x104xbf16>, vector<104x104xbf16>, vector<26x104xf32> -> vector<26x104xf32>
    %c3_136 = arith.constant 3 : index
    %c0_137 = arith.constant 0 : index
    %c0_138 = arith.constant 0 : index
    %152 = vector.load %arg12[%c3_136, %c0_137, %c0_138] : memref<4x52x26xf32, #tpu.memory_space<vmem>>, vector<1x52x26xf32>
    %153 = vector.shape_cast %152 : vector<1x52x26xf32> to vector<52x26xf32>
    %cst_139 = arith.constant dense<0.000000e+00> : vector<52x104xf32>
    %154 = tpu.matmul %153, %151, %cst_139 {dimension_numbers = #tpu.dot_dimension_numbers<[1], [0], [0], [1], [0, 0, 1, 1], [], []>} : vector<52x26xf32>, vector<26x104xf32>, vector<52x104xf32> -> vector<52x104xf32>
    %155 = arith.addf %148, %154 : vector<52x104xf32>
    %c0_140 = arith.constant 0 : index
    %c0_141 = arith.constant 0 : index
    %156 = vector.load %arg13[%c0_140, %c0_141] : memref<104x104xf32, #tpu.memory_space<vmem>>, vector<104x104xf32>
    %cst_142 = arith.constant dense<0.000000e+00> : vector<52x104xf32>
    %157 = tpu.matmul %155, %156, %cst_142 {dimension_numbers = #tpu.dot_dimension_numbers<[1], [0], [0], [1], [0, 0, 1, 1], [], []>} : vector<52x104xf32>, vector<104x104xf32>, vector<52x104xf32> -> vector<52x104xf32>
    %cst_143 = arith.constant dense<0.000000e+00> : vector<104xf32>
    %158 = vector.multi_reduction <add>, %157, %cst_143 [0] : vector<52x104xf32> to vector<104xf32>
    %159 = vector.shape_cast %158 : vector<104xf32> to vector<1x104xf32>
    %cst_144 = arith.constant 7.396450e-04 : f32
    %160 = vector.broadcast %cst_144 : f32 to vector<1x104xf32>
    %161 = arith.mulf %159, %160 : vector<1x104xf32>
    %162 = vector.broadcast %161 : vector<1x104xf32> to vector<52x104xf32>
    %163 = arith.subf %155, %162 : vector<52x104xf32>
    %164 = arith.mulf %163, %163 : vector<52x104xf32>
    %c0_145 = arith.constant 0 : index
    %c0_146 = arith.constant 0 : index
    %165 = vector.load %arg13[%c0_145, %c0_146] : memref<104x104xf32, #tpu.memory_space<vmem>>, vector<104x104xf32>
    %cst_147 = arith.constant dense<0.000000e+00> : vector<52x104xf32>
    %166 = tpu.matmul %164, %165, %cst_147 {dimension_numbers = #tpu.dot_dimension_numbers<[1], [0], [0], [1], [0, 0, 1, 1], [], []>} : vector<52x104xf32>, vector<104x104xf32>, vector<52x104xf32> -> vector<52x104xf32>
    %cst_148 = arith.constant dense<0.000000e+00> : vector<104xf32>
    %167 = vector.multi_reduction <add>, %166, %cst_148 [0] : vector<52x104xf32> to vector<104xf32>
    %168 = vector.shape_cast %167 : vector<104xf32> to vector<1x104xf32>
    %cst_149 = arith.constant 7.396450e-04 : f32
    %169 = vector.broadcast %cst_149 : f32 to vector<1x104xf32>
    %170 = arith.mulf %168, %169 : vector<1x104xf32>
    %c0_150 = arith.constant 0 : index
    %c0_151 = arith.constant 0 : index
    %171 = vector.load %arg14[%c0_150, %c0_151] : memref<1x104xf32, #tpu.memory_space<vmem>>, vector<1x104xf32>
    %cst_152 = arith.constant 9.99999974E-6 : f32
    %172 = vector.broadcast %cst_152 : f32 to vector<1x104xf32>
    %173 = arith.addf %170, %172 : vector<1x104xf32>
    %174 = math.rsqrt %173 : vector<1x104xf32>
    %175 = arith.mulf %171, %174 : vector<1x104xf32>
    %c0_153 = arith.constant 0 : index
    %c0_154 = arith.constant 0 : index
    %176 = vector.load %arg15[%c0_153, %c0_154] : memref<1x104xf32, #tpu.memory_space<vmem>>, vector<1x104xf32>
    %177 = arith.mulf %161, %175 : vector<1x104xf32>
    %178 = arith.subf %176, %177 : vector<1x104xf32>
    %179 = vector.broadcast %175 : vector<1x104xf32> to vector<52x104xf32>
    %180 = arith.mulf %155, %179 : vector<52x104xf32>
    %181 = vector.broadcast %178 : vector<1x104xf32> to vector<52x104xf32>
    %182 = arith.addf %180, %181 : vector<52x104xf32>
    %cst_155 = arith.constant 0.000000e+00 : f32
    %183 = vector.broadcast %cst_155 : f32 to vector<52x104xf32>
    %184 = arith.maximumf %182, %183 : vector<52x104xf32>
    %185 = arith.truncf %184 : vector<52x104xf32> to vector<52x104xbf16>
    %c0_156 = arith.constant 0 : index
    %c0_157 = arith.constant 0 : index
    %c0_158 = arith.constant 0 : index
    %186 = vector.load %arg16[%c0_156, %c0_157, %c0_158] : memref<4x104x156xbf16, #tpu.memory_space<vmem>>, vector<1x104x156xbf16>
    %187 = vector.shape_cast %186 : vector<1x104x156xbf16> to vector<104x156xbf16>
    %cst_159 = arith.constant dense<0.000000e+00> : vector<52x156xf32>
    %188 = tpu.matmul %185, %187, %cst_159 {dimension_numbers = #tpu.dot_dimension_numbers<[1], [0], [0], [1], [0, 0, 1, 1], [], []>} : vector<52x104xbf16>, vector<104x156xbf16>, vector<52x156xf32> -> vector<52x156xf32>
    %c0_160 = arith.constant 0 : index
    %c0_161 = arith.constant 0 : index
    %c0_162 = arith.constant 0 : index
    %189 = vector.load %arg17[%c0_160, %c0_161, %c0_162] : memref<4x104x52xf32, #tpu.memory_space<vmem>>, vector<1x104x52xf32>
    %190 = vector.shape_cast %189 : vector<1x104x52xf32> to vector<104x52xf32>
    %cst_163 = arith.constant dense<0.000000e+00> : vector<104x156xf32>
    %191 = tpu.matmul %190, %188, %cst_163 {dimension_numbers = #tpu.dot_dimension_numbers<[1], [0], [0], [1], [0, 0, 1, 1], [], []>} : vector<104x52xf32>, vector<52x156xf32>, vector<104x156xf32> -> vector<104x156xf32>
    %c1_164 = arith.constant 1 : index
    %c0_165 = arith.constant 0 : index
    %c0_166 = arith.constant 0 : index
    %192 = vector.load %arg16[%c1_164, %c0_165, %c0_166] : memref<4x104x156xbf16, #tpu.memory_space<vmem>>, vector<1x104x156xbf16>
    %193 = vector.shape_cast %192 : vector<1x104x156xbf16> to vector<104x156xbf16>
    %cst_167 = arith.constant dense<0.000000e+00> : vector<52x156xf32>
    %194 = tpu.matmul %185, %193, %cst_167 {dimension_numbers = #tpu.dot_dimension_numbers<[1], [0], [0], [1], [0, 0, 1, 1], [], []>} : vector<52x104xbf16>, vector<104x156xbf16>, vector<52x156xf32> -> vector<52x156xf32>
    %c1_168 = arith.constant 1 : index
    %c0_169 = arith.constant 0 : index
    %c0_170 = arith.constant 0 : index
    %195 = vector.load %arg17[%c1_168, %c0_169, %c0_170] : memref<4x104x52xf32, #tpu.memory_space<vmem>>, vector<1x104x52xf32>
    %196 = vector.shape_cast %195 : vector<1x104x52xf32> to vector<104x52xf32>
    %cst_171 = arith.constant dense<0.000000e+00> : vector<104x156xf32>
    %197 = tpu.matmul %196, %194, %cst_171 {dimension_numbers = #tpu.dot_dimension_numbers<[1], [0], [0], [1], [0, 0, 1, 1], [], []>} : vector<104x52xf32>, vector<52x156xf32>, vector<104x156xf32> -> vector<104x156xf32>
    %198 = arith.addf %191, %197 : vector<104x156xf32>
    %c2_172 = arith.constant 2 : index
    %c0_173 = arith.constant 0 : index
    %c0_174 = arith.constant 0 : index
    %199 = vector.load %arg16[%c2_172, %c0_173, %c0_174] : memref<4x104x156xbf16, #tpu.memory_space<vmem>>, vector<1x104x156xbf16>
    %200 = vector.shape_cast %199 : vector<1x104x156xbf16> to vector<104x156xbf16>
    %cst_175 = arith.constant dense<0.000000e+00> : vector<52x156xf32>
    %201 = tpu.matmul %185, %200, %cst_175 {dimension_numbers = #tpu.dot_dimension_numbers<[1], [0], [0], [1], [0, 0, 1, 1], [], []>} : vector<52x104xbf16>, vector<104x156xbf16>, vector<52x156xf32> -> vector<52x156xf32>
    %c2_176 = arith.constant 2 : index
    %c0_177 = arith.constant 0 : index
    %c0_178 = arith.constant 0 : index
    %202 = vector.load %arg17[%c2_176, %c0_177, %c0_178] : memref<4x104x52xf32, #tpu.memory_space<vmem>>, vector<1x104x52xf32>
    %203 = vector.shape_cast %202 : vector<1x104x52xf32> to vector<104x52xf32>
    %cst_179 = arith.constant dense<0.000000e+00> : vector<104x156xf32>
    %204 = tpu.matmul %203, %201, %cst_179 {dimension_numbers = #tpu.dot_dimension_numbers<[1], [0], [0], [1], [0, 0, 1, 1], [], []>} : vector<104x52xf32>, vector<52x156xf32>, vector<104x156xf32> -> vector<104x156xf32>
    %205 = arith.addf %198, %204 : vector<104x156xf32>
    %c3_180 = arith.constant 3 : index
    %c0_181 = arith.constant 0 : index
    %c0_182 = arith.constant 0 : index
    %206 = vector.load %arg16[%c3_180, %c0_181, %c0_182] : memref<4x104x156xbf16, #tpu.memory_space<vmem>>, vector<1x104x156xbf16>
    %207 = vector.shape_cast %206 : vector<1x104x156xbf16> to vector<104x156xbf16>
    %cst_183 = arith.constant dense<0.000000e+00> : vector<52x156xf32>
    %208 = tpu.matmul %185, %207, %cst_183 {dimension_numbers = #tpu.dot_dimension_numbers<[1], [0], [0], [1], [0, 0, 1, 1], [], []>} : vector<52x104xbf16>, vector<104x156xbf16>, vector<52x156xf32> -> vector<52x156xf32>
    %c3_184 = arith.constant 3 : index
    %c0_185 = arith.constant 0 : index
    %c0_186 = arith.constant 0 : index
    %209 = vector.load %arg17[%c3_184, %c0_185, %c0_186] : memref<4x104x52xf32, #tpu.memory_space<vmem>>, vector<1x104x52xf32>
    %210 = vector.shape_cast %209 : vector<1x104x52xf32> to vector<104x52xf32>
    %cst_187 = arith.constant dense<0.000000e+00> : vector<104x156xf32>
    %211 = tpu.matmul %210, %208, %cst_187 {dimension_numbers = #tpu.dot_dimension_numbers<[1], [0], [0], [1], [0, 0, 1, 1], [], []>} : vector<104x52xf32>, vector<52x156xf32>, vector<104x156xf32> -> vector<104x156xf32>
    %212 = arith.addf %205, %211 : vector<104x156xf32>
    %213 = math.tanh %212 : vector<104x156xf32>
    %c0_188 = arith.constant 0 : index
    %c0_189 = arith.constant 0 : index
    %214 = vector.load %arg18[%c0_188, %c0_189] : memref<104x156xf32, #tpu.memory_space<vmem>>, vector<104x156xf32>
    tpu.vector_store %arg18[%c0_188, %c0_189], %213 {strides = array<i32>} : memref<104x156xf32, #tpu.memory_space<vmem>>, vector<104x156xf32>,
    return
  }
}

</mosaic_0001>

<bundles_post_ra>
// kernel: _lambda_.1
= control target key start
LH: loop header
LB: loop body
LE: loop exit
PB: predicated region body
PF: predicated region fallthrough
CT: control target
= control target key end

     0   :  { %s6113_s0 = inlined_call_operand.vmem [shape: bf16[8,128], index: 0, kind: input, shape index: {}]   ;;  %s6114_s1 = inlined_call_operand.hbm [shape: bf16[5,128,96], index: 1, kind: input, shape index: {}]   ;;  %s6115_s2 = inlined_call_operand.hbm [shape: f32[5,12,8], index: 2, kind: input, shape index: {}]   ;;  %s6116_s3 = inlined_call_operand.hbm [shape: f32[96,96], index: 3, kind: input, shape index: {}]   ;;  %s6117_s4 = inlined_call_operand.vmem [shape: f32[1,96], index: 4, kind: input, shape index: {}]   ;;  %s6118_s5 = inlined_call_operand.vmem [shape: f32[1,96], index: 5, kind: input, shape index: {}]   ;;  %s6119_s6 = inlined_call_operand.hbm [shape: bf16[5,96,104], index: 6, kind: input, shape index: {}]   ;;  %s6120_s7 = inlined_call_operand.hbm [shape: f32[5,26,12], index: 7, kind: input, shape index: {}]   ;;  %s6121_s8 = inlined_call_operand.hbm [shape: f32[104,104], index: 8, kind: input, shape index: {}]   ;;  %s6122_s9 = inlined_call_operand.vmem [shape: f32[1,104], index: 9, kind: input, shape index: {}, may-alias: {9,14}]   ;;  %s6123_s10 = inlined_call_operand.vmem [shape: f32[1,104], index: 10, kind: input, shape index: {}, may-alias: {10,15}]   ;;  %s6124_s11 = inlined_call_operand.hbm [shape: bf16[4,104,104], index: 11, kind: input, shape index: {}]   ;;  %s6125_s12 = inlined_call_operand.hbm [shape: f32[4,52,26], index: 12, kind: input, shape index: {}]   ;;  %s6126_s13 = inlined_call_operand.hbm [shape: f32[104,104], index: 13, kind: input, shape index: {}]   ;;  %s6127_s14 = inlined_call_operand.vmem [shape: f32[1,104], index: 14, kind: input, shape index: {}, may-alias: {9,14}]   ;;  %s6128_s15 = inlined_call_operand.vmem [shape: f32[1,104], index: 15, kind: input, shape index: {}, may-alias: {10,15}]   ;;  %s6129_s16 = inlined_call_operand.hbm [shape: bf16[4,104,156], index: 16, kind: input, shape index: {}]   ;;  %s6130_s17 = inlined_call_operand.hbm [shape: f32[4,104,52], index: 17, kind: input, shape index: {}]   ;;  %s6131_s18 = inlined_call_operand.vmem [shape: f32[104,156], index: 18, kind: output, shape index: {}]  }
   0x1   :  { %6132 = sst [smem:[#allocation25_spill]] %s6113_s0 }
   0x2   :  { %6133 = sst [smem:[#allocation26_spill]] %s6114_s1 }
   0x3   :  { %6134 = sst [smem:[#allocation27_spill]] %s6115_s2 }
   0x4   :  { %23 = vsyncpa [#allocation3], 0 }
   0x5   :  { %24 = vsyncpa [#allocation5], 0 }
   0x6   :  { %25 = vsyncpa [#allocation8], 0 }
   0x7   :  { %26 = vsyncpa [#allocation11], 0 }
   0x8   :  { %27 = vsyncpa [#allocation14], 0  ;;  %s6135_s29 = sld [smem:[#allocation27_spill]] }
   0xe   :  { %s48_s30 = sshll.u32 %s6135_s29, 4  ;;  %s49_s30 = int_to_ptr.hbm [resolvable:$true] %s48_s30 }
   0xf   :  { %28 = vsyncpa [#allocation17], 0  ;;  %s5181_s0 = smov [#allocation4]   ;;  %s5182_s1 = smov 128  }
  0x10   :  { %s50_s19 = sshll.u32 %s5181_s0, 4  ;;  %s5183_s20 = smov 8   ;;  %s51_s19 = int_to_ptr.vmem [resolvable:$true] %s50_s19 }
  0x11   :  { %56 = dma.hbm_to_vmem [thread:$0]  %s49_s30, 1280, %s51_s19, [#allocation5], %s5182_s1, %s5182_s1, %s5183_s20  }
  0x12   :  { %s78_s2 = sshll.u32 %s6119_s6, 4  ;;  %s5184_s23 = smov [#allocation7]   ;;  %s79_s2 = int_to_ptr.hbm [resolvable:$true] %s78_s2 }
  0x13   :  { %s80_s24 = sshll.u32 %s5184_s23, 4  ;;  %s104_s27 = sshll.u32 %s6121_s8, 4  ;;  %s81_s24 = int_to_ptr.vmem [resolvable:$true] %s80_s24  ;;  %s105_s27 = int_to_ptr.hbm [resolvable:$true] %s104_s27 }
  0x14   :  { %s5185_s28 = smov 64   ;;  %s5186_s29 = smov 4  }
  0x15   :  { %86 = dma.hbm_to_vmem [thread:$0]  %s79_s2, 3840, %s81_s24, [#allocation8], %s5185_s28, %s5185_s28, %s5186_s29  }
  0x16   :  { %s134_s19 = sshll.u32 %s6125_s12, 4  ;;  %s5187_s6 = smov [#allocation10]   ;;  %s135_s19 = int_to_ptr.hbm [resolvable:$true] %s134_s19 }
  0x17   :  { %s106_s21 = sshll.u32 %s5187_s6, 4  ;;  %s5188_s8 = smov [#allocation13]   ;;  %s107_s21 = int_to_ptr.vmem [resolvable:$true] %s106_s21 }
  0x18   :  { %112 = dma.hbm_to_vmem [thread:$0]  %s105_s27, 1664, %s107_s21, [#allocation11], %s5182_s1, %s5182_s1, %s5183_s20  }
  0x19   :  { %s136_s22 = sshll.u32 %s5188_s8, 4  ;;  %s164_s26 = sshll.u32 %s6129_s16, 4  ;;  %s137_s22 = int_to_ptr.vmem [resolvable:$true] %s136_s22  ;;  %s165_s26 = int_to_ptr.hbm [resolvable:$true] %s164_s26 }
  0x1a   :  { %142 = dma.hbm_to_vmem [thread:$0]  %s135_s19, 3584, %s137_s22, [#allocation14], %s5182_s1, %s5182_s1, %s5183_s20  }
  0x1b   :  { %s6136_s24 = sld [smem:[#allocation26_spill]]  ;;  %s5189_s0 = smov [#allocation16]  }
  0x1c   :  { %s166_s6 = sshll.u32 %s5189_s0, 4  ;;  %s5190_s27 = smov [#allocation2]   ;;  %s167_s6 = int_to_ptr.vmem [resolvable:$true] %s166_s6 }
  0x1d   :  { %172 = dma.hbm_to_vmem [thread:$0]  %s165_s26, 6656, %s167_s6, [#allocation17], %s5182_s1, %s5182_s1, %s5183_s20  }
  0x1e   :  { %s37_s16 = sshll.u32 %s5190_s27, 4  ;;  %s61_s23 = sshll.u32 %s6116_s3, 4  ;;  %s38_s16 = int_to_ptr.vmem [resolvable:$true] %s37_s16  ;;  %s62_s23 = int_to_ptr.hbm [resolvable:$true] %s61_s23 }
  0x1f   :  { %s91_s25 = sshll.u32 %s6120_s7, 4  ;;  %s5191_s12 = smov [#allocation6]   ;;  %s92_s25 = int_to_ptr.hbm [resolvable:$true] %s91_s25 }
  0x20   :  { %s63_s2 = sshll.u32 %s5191_s12, 4  ;;  %s5192_s26 = smov [#allocation9]   ;;  %s64_s2 = int_to_ptr.vmem [resolvable:$true] %s63_s2 }
  0x21   :  { %s35_s30 = sshll.u32 %s6136_s24, 4  ;;  %s93_s3 = sshll.u32 %s5192_s26, 4  ;;  %s36_s30 = int_to_ptr.hbm [resolvable:$true] %s35_s30  ;;  %s94_s3 = int_to_ptr.vmem [resolvable:$true] %s93_s3 }
  0x22   :  { %43 = dma.hbm_to_vmem [thread:$0]  %s36_s30, 5120, %s38_s16, [#allocation3], %s5185_s28, %s5185_s28, %s5186_s29  }
  0x23   :  { %69 = dma.hbm_to_vmem [thread:$0]  %s62_s23, 1536, %s64_s2, [#allocation5], %s5182_s1, %s5182_s1, %s5183_s20  }
  0x24   :  { %s121_s6 = sshll.u32 %s6124_s11, 4  ;;  %s147_s27 = sshll.u32 %s6126_s13, 4  ;;  %s122_s6 = int_to_ptr.hbm [resolvable:$true] %s121_s6  ;;  %s148_s27 = int_to_ptr.hbm [resolvable:$true] %s147_s27 }
  0x25   :  { %99 = dma.hbm_to_vmem [thread:$0]  %s92_s25, 2560, %s94_s3, [#allocation8], %s5182_s1, %s5182_s1, %s5183_s20  }
  0x26   :  { %s5193_s16 = smov [#allocation12]   ;;  %s5194_s8 = smov [#allocation15]  }
  0x27   :  { %s123_s21 = sshll.u32 %s5193_s16, 4  ;;  %s149_s11 = sshll.u32 %s5194_s8, 4  ;;  %s124_s21 = int_to_ptr.vmem [resolvable:$true] %s123_s21  ;;  %s150_s11 = int_to_ptr.vmem [resolvable:$true] %s149_s11 }
  0x28   :  { %129 = dma.hbm_to_vmem [thread:$0]  %s122_s6, 3328, %s124_s21, [#allocation11], %s5185_s28, %s5185_s28, %s5186_s29  }
  0x29   :  { %s177_s22 = sshll.u32 %s6130_s17, 4  ;;  %s5195_s13 = smov [#allocation18]   ;;  %s178_s22 = int_to_ptr.hbm [resolvable:$true] %s177_s22 }
  0x2a   :  { %155 = dma.hbm_to_vmem [thread:$0]  %s148_s27, 1664, %s150_s11, [#allocation14], %s5182_s1, %s5182_s1, %s5183_s20  }
  0x2b   :  { %s179_s25 = sshll.u32 %s5195_s13, 4  ;;  %s180_s25 = int_to_ptr.vmem [resolvable:$true] %s179_s25 }
  0x2c   :  { %185 = dma.hbm_to_vmem [thread:$0]  %s178_s22, 6656, %s180_s25, [#allocation17], %s5182_s1, %s5182_s1, %s5183_s20  }
  0x2d   :  { %5169 = dma.done.wait [#allocation3], 5120  }
  0x2e   :  { %5170 = vsyncadd [#allocation3], 4294962176 }
  0x2f   :  { %5171 = dma.done.wait [#allocation5], 2816  }
  0x30   :  { %5172 = vsyncadd [#allocation5], 4294964480 }
  0x31   :  { %5173 = dma.done.wait [#allocation8], 6400  }
  0x32   :  { %5174 = vsyncadd [#allocation8], 4294960896 }
  0x33   :  { %5175 = dma.done.wait [#allocation11], 4992  }
  0x34   :  { %5176 = vsyncadd [#allocation11], 4294962304 }
  0x35   :  { %5177 = dma.done.wait [#allocation14], 5248  }
  0x36   :  { %5178 = vsyncadd [#allocation14], 4294962048 }
  0x37   :  { %5179 = dma.done.wait [#allocation17], 13312  }
  0x38   :  { %5180 = vsyncadd [#allocation17], 4294953984  ;;  %v4688_v0 = vld [vmem:[#allocation2 + $0x38] sm:$0xff]  ;;  %v4687_v1 = vld [vmem:[#allocation2 + $0x30] sm:$0xff]  ;;  %s6137_s20 = sld [smem:[#allocation25_spill]]  ;;  %vm392_vm0 = vcmask 64512  }
  0x39   :  { %296 = vmatpush.bf16.msra.mxu1 %v4688_v0  ;;  %v4686_v2 = vld [vmem:[#allocation2 + $0x28] sm:$0xff]  ;;  %v4685_v3 = vld [vmem:[#allocation2 + $0x20] sm:$0xff]  ;;  %v4684_v4 = vld [vmem:[#allocation2 + $0x18] sm:$0xff]  ;;  %vm799_vm1 = vcmask 785408   ;;  %vm830_vm2 = vcmask 781312   ;;  %vm1062_vm6 = vcmask 1043456  }
  0x3a   :  { %v4683_v5 = vld [vmem:[#allocation2 + $0x10] sm:$0xff]  ;;  %v4682_v6 = vld [vmem:[#allocation2 + $0x8] sm:$0xff]  ;;  %v4681_v7 = vld [vmem:[#allocation2] sm:$0xff]  ;;  %vm1049_vm7 = vcmask 97280   ;;  %vm1500_vm8 = vcmask 850944   ;;  %vm1547_vm9 = vcmask 844800  }
  0x3b   :  { %v4696_v8 = vld [vmem:[#allocation2 + $0x78] sm:$0xff]  ;;  %v4695_v10 = vld [vmem:[#allocation2 + $0x70] sm:$0xff]  ;;  %v4694_v11 = vld [vmem:[#allocation2 + $0x68] sm:$0xff]  ;;  %vm1848_vm13 = vcmask 1041408   ;;  %vm1826_vm14 = vcmask 211968   ;;  %vm2339_vm15 = vcmask 846848  }
  0x3c   :  { %v4693_v12 = vld [vmem:[#allocation2 + $0x60] sm:$0xff]  ;;  %v4692_v13 = vld [vmem:[#allocation2 + $0x58] sm:$0xff]  ;;  %v4691_v14 = vld [vmem:[#allocation2 + $0x50] sm:$0xff] }
  0x3d   :  { %297 = vmatpush.bf16.msra.mxu1 %v4687_v1  ;;  %v4690_v15 = vld [vmem:[#allocation2 + $0x48] sm:$0xff]  ;;  %v4689_v16 = vld [vmem:[#allocation2 + $0x40] sm:$0xff]  ;;  %v4704_v21 = vld [vmem:[#allocation2 + $0xb8] sm:$0xff] }
  0x3e   :  { %v5360_v9 = vld [vmem:[%s6137_s20] sm:$0xf]  ;;  %v310_v20 = vld [vmem:[#allocation4 + $0x8] sm:$0xf]  ;;  %v390_v23 = vld [vmem:[#allocation4 + $0x10] sm:$0xff] }
  0x3f   :  { %v309_v19 = vld [vmem:[#allocation4] sm:$0xff]  ;;  %v4703_v24 = vld [vmem:[#allocation2 + $0xb0] sm:$0xff]  ;;  %v4702_v25 = vld [vmem:[#allocation2 + $0xa8] sm:$0xff] }
  0x40   :  { %v391_v27 = vld [vmem:[#allocation4 + $0x18] sm:$0xf]  ;;  %v4701_v28 = vld [vmem:[#allocation2 + $0xa0] sm:$0xff]  ;;  %v4699_v30 = vld [vmem:[#allocation2 + $0x90] sm:$0xff] }
  0x41   :  { %298 = vmatpush.bf16.msra.mxu1 %v4686_v2  ;;  %v4700_v29 = vld [vmem:[#allocation2 + $0x98] sm:$0xff]  ;;  %v4698_v31 = vld [vmem:[#allocation2 + $0x88] sm:$0xff]  ;;  %v4697_v32 = vld [vmem:[#allocation2 + $0x80] sm:$0xff] }
  0x42   :  { %v4720_v33 = vld [vmem:[#allocation2 + $0x138] sm:$0xff]  ;;  %v4719_v34 = vld [vmem:[#allocation2 + $0x130] sm:$0xff]  ;;  %v4718_v35 = vld [vmem:[#allocation2 + $0x128] sm:$0xff] }
  0x43   :  { %v4717_v36 = vld [vmem:[#allocation2 + $0x120] sm:$0xff]  ;;  %v4716_v37 = vld [vmem:[#allocation2 + $0x118] sm:$0xff]  ;;  %v4715_v39 = vld [vmem:[#allocation2 + $0x110] sm:$0xff] }
  0x44   :  { %v4714_v40 = vld [vmem:[#allocation2 + $0x108] sm:$0xff]  ;;  %v4713_v42 = vld [vmem:[#allocation2 + $0x100] sm:$0xff]  ;;  %v4712_v44 = vld [vmem:[#allocation2 + $0xf8] sm:$0xff] }
  0x45   :  { %299 = vmatpush.bf16.msra.mxu1 %v4685_v3  ;;  %v530_v43 = vld [vmem:[#allocation4 + $0x20] sm:$0xff]  ;;  %v4711_v46 = vld [vmem:[#allocation2 + $0xf0] sm:$0xff]  ;;  %v531_v47 = vld [vmem:[#allocation4 + $0x28] sm:$0xf] }
  0x46   :  { %v4710_v48 = vld [vmem:[#allocation2 + $0xe8] sm:$0xff]  ;;  %v4709_v50 = vld [vmem:[#allocation2 + $0xe0] sm:$0xff]  ;;  %v4708_v51 = vld [vmem:[#allocation2 + $0xd8] sm:$0xff] }
  0x47   :  { %v4707_v52 = vld [vmem:[#allocation2 + $0xd0] sm:$0xff]  ;;  %v4706_v53 = vld [vmem:[#allocation2 + $0xc8] sm:$0xff]  ;;  %v4705_v54 = vld [vmem:[#allocation2 + $0xc0] sm:$0xff] }
  0x48   :  { %v754_v55 = vld [vmem:[#allocation4 + $0x40] sm:$0xff]  ;;  %v755_v59 = vld [vmem:[#allocation4 + $0x48] sm:$0xf]  ;;  %v796_v0 = vld [vmem:[#allocation6 + $0x48] sm:$0xff] }
  0x49   :  { %300 = vmatpush.bf16.msra.mxu1 %v4684_v4  ;;  %v798_v61 = vld [vmem:[#allocation6 + $0x58] sm:$0xff]  ;;  %v797_v62 = vld [vmem:[#allocation6 + $0x50] sm:$0xff]  ;;  %v795_v1 = vld [vmem:[#allocation6 + $0x40] sm:$0xff] }
  0x4a   :  { %v794_v2 = vld [vmem:[#allocation6 + $0x38] sm:$0xff]  ;;  %v793_v3 = vld [vmem:[#allocation6 + $0x30] sm:$0xff]  ;;  %v792_v4 = vld [vmem:[#allocation6 + $0x28] sm:$0xff] }
  0x4d   :  { %301 = vmatpush.bf16.msra.mxu1 %v4683_v5 }
  0x51   :  { %302 = vmatpush.bf16.msra.mxu1 %v4682_v6  ;;  %v791_v6 = vld [vmem:[#allocation6 + $0x20] sm:$0xff] }
  0x55   :  { %303 = vmatpush.bf16.msra.mxu1 %v4681_v7  ;;  %v790_v7 = vld [vmem:[#allocation6 + $0x18] sm:$0xff] }
  0x58   :  { %304 = vmatmul.bf16.vlgmr.msra.gmra.mxu1 %v5360_v9 }
  0x59   :  { %376 = vmatpush.bf16.msrb.mxu1 %v4696_v8  ;;  %v642_v8 = vld [vmem:[#allocation4 + $0x30] sm:$0xff] }
  0x5d   :  { %377 = vmatpush.bf16.msrb.mxu1 %v4695_v10  ;;  %v643_v10 = vld [vmem:[#allocation4 + $0x38] sm:$0xf] }
  0x61   :  { %378 = vmatpush.bf16.msrb.mxu1 %v4694_v11 }
  0x65   :  { %379 = vmatpush.bf16.msrb.mxu1 %v4693_v12  ;;  %v789_v12 = vld [vmem:[#allocation6 + $0x10] sm:$0xff] }
  0x69   :  { %380 = vmatpush.bf16.msrb.mxu1 %v4692_v13  ;;  %v788_v13 = vld [vmem:[#allocation6 + $0x8] sm:$0xff] }
  0x6d   :  { %381 = vmatpush.bf16.msrb.mxu1 %v4691_v14  ;;  %v787_v14 = vld [vmem:[#allocation6] sm:$0xff] }
  0x71   :  { %382 = vmatpush.bf16.msrb.mxu1 %v4690_v15 }
  0x75   :  { %383 = vmatpush.bf16.msrb.mxu1 %v4689_v16 }
  0x78   :  { %384 = vmatmul.bf16.vlgmr.msrb.gmra.mxu1 %v5360_v9 }
  0x79   :  { %740 = vmatpush.bf16.msra.mxu1 %v4720_v33 }
  0x7d   :  { %741 = vmatpush.bf16.msra.mxu1 %v4719_v34 }
  0x81   :  { %742 = vmatpush.bf16.msra.mxu1 %v4718_v35 }
  0x85   :  { %743 = vmatpush.bf16.msra.mxu1 %v4717_v36 }
  0x89   :  { %744 = vmatpush.bf16.msra.mxu1 %v4716_v37 }
  0x8d   :  { %745 = vmatpush.bf16.msra.mxu1 %v4715_v39 }
  0x91   :  { %746 = vmatpush.bf16.msra.mxu1 %v4714_v40 }
  0x95   :  { %747 = vmatpush.bf16.msra.mxu1 %v4713_v42 }
  0x98   :  { %748 = vmatmul.bf16.vlgmr.msra.gmra.mxu1 %v5360_v9 }
  0xd5   :  { %v305_v17 = vpop.f32.mrf.mxu1 }
  0xd6   :  { %443 = vmatpush.msra.mxu3 %v305_v17 }
  0xd7   :  { %3929 = vmatmul.msk.f32.vlgmr.msra.gmra.mxu3 %vm392_vm0, %v309_v19 }
  0xdd   :  { %v307_v18 = vpop.f32.mrf.mxu1 }
  0xdf   :  { %3930 = vmatmul.msk.f32.gmra.mxu3 %vm392_vm0, %v310_v20 }
  0xf5   :  { %v385_v22 = vpop.f32.mrf.mxu1 }
  0xf6   :  { %414 = vmatpush.msra.mxu2 %v385_v22 }
  0xf7   :  { %3927 = vmatmul.msk.f32.vlgmr.msra.gmra.mxu2 %vm392_vm0, %v390_v23 }
  0xf8   :  { %516 = vmatpush.bf16.msrb.mxu2 %v4704_v21 }
  0xfc   :  { %517 = vmatpush.bf16.msrb.mxu2 %v4703_v24 }
  0xfd   :  { %v387_v26 = vpop.f32.mrf.mxu1 }
  0xff   :  { %3928 = vmatmul.msk.f32.gmra.mxu2 %vm392_vm0, %v391_v27 }
 0x100   :  { %518 = vmatpush.bf16.msrb.mxu2 %v4702_v25 }
 0x104   :  { %519 = vmatpush.bf16.msrb.mxu2 %v4701_v28 }
 0x108   :  { %520 = vmatpush.bf16.msrb.mxu2 %v4700_v29 }
 0x10c   :  { %521 = vmatpush.bf16.msrb.mxu2 %v4699_v30 }
 0x110   :  { %522 = vmatpush.bf16.msrb.mxu2 %v4698_v31 }
 0x114   :  { %523 = vmatpush.bf16.msrb.mxu2 %v4697_v32 }
 0x115   :  { %v749_v56 = vpop.f32.mrf.mxu1 }
 0x117   :  { %524 = vmatmul.bf16.vlgmr.msrb.gmra.mxu2 %v5360_v9 }
 0x118   :  { %777 = vmatpush.msra.mxu2 %v749_v56 }
 0x11a   :  { %854 = vmatpush.msrb.mxu2 %v798_v61 }
 0x11c   :  { %855 = vmatpush.msrb.mxu2 %v797_v62 }
 0x11d   :  { %v751_v58 = vpop.f32.mrf.mxu1 }
 0x11e   :  { %856 = vmatpush.msrb.mxu2 %v796_v0  ;;  %v4729_v58 = vld [vmem:[#allocation7 + $0x40] sm:$0xff] }
 0x120   :  { %857 = vmatpush.msrb.mxu2 %v795_v1 }
 0x122   :  { %858 = vmatpush.msrb.mxu2 %v794_v2 }
 0x124   :  { %859 = vmatpush.msrb.mxu2 %v793_v3 }
 0x126   :  { %860 = vmatpush.msrb.mxu2 %v792_v4 }
 0x127   :  { %4031 = vmatmul.msk.f32.vlgmr.msra.gmra.mxu2 %vm392_vm0, %v754_v55 }
 0x128   :  { %861 = vmatpush.msrb.mxu2 %v791_v6 }
 0x12a   :  { %862 = vmatpush.msrb.mxu2 %v790_v7 }
 0x12c   :  { %863 = vmatpush.msrb.mxu2 %v789_v12 }
 0x12e   :  { %864 = vmatpush.msrb.mxu2 %v788_v13 }
 0x12f   :  { %4032 = vmatmul.msk.f32.gmra.mxu2 %vm392_vm0, %v755_v59 }
 0x130   :  { %865 = vmatpush.msrb.mxu2 %v787_v14 }
 0x15a   :  { %v445_v57 = vpop.f32.mrf.mxu3 }
 0x162   :  { %v448_v60 = vpop.f32.mrf.mxu3 }
 0x17a   :  { %v5369_v38 = vpop.f32.mrf.mxu2 }
 0x17b   :  { %v446_v15 = vadd.f32 %v445_v57, %v5369_v38  ;;  %v4722_v57 = vld [vmem:[#allocation7 + $0x8] sm:$0xff] }
 0x182   :  { %v5371_v41 = vpop.f32.mrf.mxu2 }
 0x183   :  { %v449_v21 = vadd.f32 %v448_v60, %v5371_v41  ;;  %v4721_v60 = vld [vmem:[#allocation7] sm:$0xff] }
 0x19a   :  { %v525_v45 = vpop.f32.mrf.mxu2 }
 0x19b   :  { %553 = vmatpush.msrb.mxu3 %v525_v45  ;;  %v4725_v45 = vld [vmem:[#allocation7 + $0x20] sm:$0xff] }
 0x19c   :  { %3963 = vmatmul.msk.f32.vlgmr.msrb.gmra.mxu3 %vm392_vm0, %v530_v43  ;;  %v4726_v43 = vld [vmem:[#allocation7 + $0x28] sm:$0xff] }
 0x19d   :  { %628 = vmatpush.bf16.msra.mxu3 %v4712_v44 }
 0x1a1   :  { %629 = vmatpush.bf16.msra.mxu3 %v4711_v46  ;;  %v4732_v46 = vld [vmem:[#allocation7 + $0x58] sm:$0xff] }
 0x1a2   :  { %v527_v49 = vpop.f32.mrf.mxu2  ;;  %1032 = vmatpush.bf16.msrb.mxu1 %v4732_v46  ;;  %v4748_v46 = vld [vmem:[#allocation7 + $0xd8] sm:$0xff] }
 0x1a4   :  { %3964 = vmatmul.msk.f32.gmra.mxu3 %vm392_vm0, %v531_v47  ;;  %v4724_v47 = vld [vmem:[#allocation7 + $0x18] sm:$0xff] }
 0x1a5   :  { %630 = vmatpush.bf16.msra.mxu3 %v4710_v48  ;;  %v4731_v48 = vld [vmem:[#allocation7 + $0x50] sm:$0xff] }
 0x1a6   :  { %1033 = vmatpush.bf16.msrb.mxu1 %v4731_v48  ;;  %v1047_v48 = vld [vmem:[#allocation9 + $0x30] sm:$0xff] }
 0x1a9   :  { %631 = vmatpush.bf16.msra.mxu3 %v4709_v50 }
 0x1aa   :  { %v779_v16 = vpop.f32.mrf.mxu2 }
 0x1ad   :  { %632 = vmatpush.bf16.msra.mxu3 %v4708_v51 }
 0x1b1   :  { %633 = vmatpush.bf16.msra.mxu3 %v4707_v52 }
 0x1b2   :  { %v782_v24 = vpop.f32.mrf.mxu2 }
 0x1b5   :  { %634 = vmatpush.bf16.msra.mxu3 %v4706_v53  ;;  %v4723_v53 = vld [vmem:[#allocation7 + $0x10] sm:$0xff] }
 0x1b9   :  { %635 = vmatpush.bf16.msra.mxu3 %v4705_v54  ;;  %v4730_v54 = vld [vmem:[#allocation7 + $0x48] sm:$0xff] }
 0x1ba   :  { %1034 = vmatpush.bf16.msrb.mxu1 %v4730_v54  ;;  %v4746_v54 = vld [vmem:[#allocation7 + $0xc8] sm:$0xff] }
 0x1bc   :  { %636 = vmatmul.bf16.vlgmr.msra.gmra.mxu3 %v5360_v9 }
 0x1bd   :  { %965 = vmatpush.bf16.msrb.mxu3 %v4726_v43  ;;  %v4742_v43 = vld [vmem:[#allocation7 + $0xa8] sm:$0xff] }
 0x1be   :  { %1035 = vmatpush.bf16.msrb.mxu1 %v4729_v58  ;;  %v1204_v58 = vld [vmem:[#allocation9 + $0x48] sm:$0xff] }
 0x1c1   :  { %966 = vmatpush.bf16.msrb.mxu3 %v4725_v45  ;;  %v979_v45 = vld [vmem:[#allocation9 + $0x10] sm:$0xff] }
 0x1c5   :  { %967 = vmatpush.bf16.msrb.mxu3 %v4724_v47  ;;  %v4741_v47 = vld [vmem:[#allocation7 + $0xa0] sm:$0xff] }
 0x1c9   :  { %968 = vmatpush.bf16.msrb.mxu3 %v4723_v53  ;;  %v1203_v53 = vld [vmem:[#allocation9 + $0x40] sm:$0xff] }
 0x1cd   :  { %969 = vmatpush.bf16.msrb.mxu3 %v4722_v57  ;;  %v4745_v57 = vld [vmem:[#allocation7 + $0xc0] sm:$0xff] }
 0x1d1   :  { %970 = vmatpush.bf16.msrb.mxu3 %v4721_v60  ;;  %v1206_v60 = vld [vmem:[#allocation9 + $0x58] sm:$0x3] }
 0x21f   :  { %v555_v63 = vpop.f32.mrf.mxu3 }
 0x220   :  { %v561_v17 = vadd.f32 %v555_v63, %v446_v15  ;;  %v883_v15 = vld [vmem:[%s6117_s4] sm:$0x1] }
 0x227   :  { %v558_v5 = vpop.f32.mrf.mxu3 }
 0x228   :  { %v562_v22 = vadd.f32 %v558_v5, %v449_v21 }
 0x23f   :  { %v637_v9 = vpop.f32.mrf.mxu3 }
 0x240   :  { %665 = vmatpush.msra.mxu0 %v637_v9 }
 0x241   :  { %3997 = vmatmul.msk.f32.vlgmr.msra.gmra.mxu0 %vm392_vm0, %v642_v8  ;;  %v4734_v8 = vld [vmem:[#allocation7 + $0x68] sm:$0xff] }
 0x242   :  { %810 = vmatpush.msrb.mxu0 %v798_v61  ;;  %v4728_v61 = vld [vmem:[#allocation7 + $0x38] sm:$0xff] }
 0x243   :  { %1036 = vmatpush.bf16.msrb.mxu1 %v4728_v61 }
 0x244   :  { %811 = vmatpush.msrb.mxu0 %v797_v62  ;;  %v4738_v62 = vld [vmem:[#allocation7 + $0x88] sm:$0xff] }
 0x245   :  { %1190 = vmatpush.bf16.msra.mxu3 %v4738_v62 }
 0x246   :  { %812 = vmatpush.msrb.mxu0 %v796_v0 }
 0x247   :  { %v639_v11 = vpop.f32.mrf.mxu3 }
 0x248   :  { %813 = vmatpush.msrb.mxu0 %v795_v1  ;;  %v4727_v1 = vld [vmem:[#allocation7 + $0x30] sm:$0xff] }
 0x249   :  { %3998 = vmatmul.msk.f32.gmra.mxu0 %vm392_vm0, %v643_v10  ;;  %1037 = vmatpush.bf16.msrb.mxu1 %v4727_v1 }
 0x24a   :  { %814 = vmatpush.msrb.mxu0 %v794_v2  ;;  %v4737_v2 = vld [vmem:[#allocation7 + $0x80] sm:$0xff] }
 0x24b   :  { %1191 = vmatpush.bf16.msra.mxu3 %v4737_v2 }
 0x24c   :  { %815 = vmatpush.msrb.mxu0 %v793_v3 }
 0x24e   :  { %816 = vmatpush.msrb.mxu0 %v792_v4 }
 0x250   :  { %817 = vmatpush.msrb.mxu0 %v791_v6  ;;  %v4736_v6 = vld [vmem:[#allocation7 + $0x78] sm:$0xff] }
 0x251   :  { %1192 = vmatpush.bf16.msra.mxu3 %v4736_v6 }
 0x252   :  { %818 = vmatpush.msrb.mxu0 %v790_v7  ;;  %v4735_v7 = vld [vmem:[#allocation7 + $0x70] sm:$0xff] }
 0x254   :  { %819 = vmatpush.msrb.mxu0 %v789_v12  ;;  %v4733_v12 = vld [vmem:[#allocation7 + $0x60] sm:$0xff] }
 0x255   :  { %1193 = vmatpush.bf16.msra.mxu3 %v4735_v7 }
 0x256   :  { %820 = vmatpush.msrb.mxu0 %v788_v13 }
 0x258   :  { %821 = vmatpush.msrb.mxu0 %v787_v14 }
 0x259   :  { %1194 = vmatpush.bf16.msra.mxu3 %v4734_v8 }
 0x25d   :  { %1195 = vmatpush.bf16.msra.mxu3 %v4733_v12  ;;  %v1497_v12 = vld [vmem:[#allocation10 + $0x50] sm:$0xff] }
 0x2be   :  { %v667_v18 = vpop.f32.mrf.mxu0 }
 0x2bf   :  { %v673_v19 = vadd.f32 %v667_v18, %v561_v17 }
 0x2c1   :  { %v5382_v20 = vadd.f32 %v779_v16, %v673_v19  ;;  %v896_v19 = vld [vmem:[%s6118_s5] sm:$0x1] }
 0x2c3   :  { %4033 = vmatmul.msk.f32.vlgmr.msrb.gmra.mxu0 %vm799_vm1, %v5382_v20 }
 0x2c6   :  { %v670_v23 = vpop.f32.mrf.mxu0 }
 0x2c7   :  { %v674_v25 = vadd.f32 %v670_v23, %v562_v22 }
 0x2c9   :  { %v5387_v26 = vadd.f32 %v782_v24, %v674_v25 }
 0x2cb   :  { %4034 = vmatmul.msk.f32.gmra.mxu0 %vm799_vm1, %v5387_v26 }
 0x340   :  { %v823_v27 = vpop.f32.mrf.mxu0 }
 0x341   :  { %v829_v29 = vsel %vm799_vm1, %v823_v27, 0.0 }
 0x348   :  { %v826_v28 = vpop.f32.mrf.mxu0 }
 0x349   :  { %v831_v30 = vsel %vm830_vm2, %v826_v28, 0.0 }
 0x34a   :  { %v832_v31 = vadd.f32 %v831_v30, %v829_v29 }
 0x34c   :  { %v833_v32 = vrot.slane %v832_v31, 4 }
 0x34e   :  { %v834_v33 = vadd.f32 %v833_v32, %v832_v31 }
 0x350   :  { %v835_v34 = vrot.slane %v834_v33, 2 }
 0x352   :  { %v836_v35 = vadd.f32 %v835_v34, %v834_v33  ;;  %v1045_v34 = vld [vmem:[#allocation9 + $0x20] sm:$0xff] }
 0x354   :  { %v837_v36 = vrot.slane %v836_v35, 1 }
 0x356   :  { %v838_v37 = vadd.f32 %v837_v36, %v836_v35  ;;  %v4744_v35 = vld [vmem:[#allocation7 + $0xb8] sm:$0xff] }
 0x358   :  { %v5393_v38 = vmul.f32 0.013888889, %v838_v37  ;;  %v977_v37 = vld [vmem:[#allocation9] sm:$0xff] }
 0x35a   :  { %v840_v39 = vsub.f32 %v5382_v20, %v5393_v38  ;;  %v841_v41 = vsub.f32 %v5387_v26, %v5393_v38 }
 0x35c   :  { %v842_v40 = vmul.f32 %v840_v39, %v840_v39  ;;  %v843_v42 = vmul.f32 %v841_v41, %v841_v41  ;;  %v4750_v39 = vld [vmem:[#allocation7 + $0xe8] sm:$0xff]  ;;  %v1046_v41 = vld [vmem:[#allocation9 + $0x28] sm:$0xff] }
 0x35e   :  { %4035 = vmatmul.msk.f32.vlgmr.msrb.gmra.mxu2 %vm799_vm1, %v842_v40  ;;  %v4743_v40 = vld [vmem:[#allocation7 + $0xb0] sm:$0xff] }
 0x366   :  { %4036 = vmatmul.msk.f32.gmra.mxu2 %vm799_vm1, %v843_v42  ;;  %v4749_v42 = vld [vmem:[#allocation7 + $0xe0] sm:$0xff] }
 0x3e1   :  { %v867_v44 = vpop.f32.mrf.mxu2 }
 0x3e2   :  { %v873_v50 = vsel %vm799_vm1, %v867_v44, 0.0 }
 0x3e9   :  { %v870_v49 = vpop.f32.mrf.mxu2 }
 0x3ea   :  { %v874_v51 = vsel %vm830_vm2, %v870_v49, 0.0  ;;  %v4747_v49 = vld [vmem:[#allocation7 + $0xd0] sm:$0xff] }
 0x3eb   :  { %v875_v52 = vadd.f32 %v874_v51, %v873_v50  ;;  %v4740_v50 = vld [vmem:[#allocation7 + $0x98] sm:$0xff] }
 0x3ed   :  { %v876_v55 = vrot.slane %v875_v52, 4 }
 0x3ef   :  { %v877_v56 = vadd.f32 %v876_v55, %v875_v52  ;;  %v980_v52 = vld [vmem:[#allocation9 + $0x18] sm:$0x3] }
 0x3f0   :  { %v1048_v55 = vld [vmem:[#allocation9 + $0x38] sm:$0x3] }
 0x3f1   :  { %v878_v59 = vrot.slane %v877_v56, 2 }
 0x3f3   :  { %v879_v63 = vadd.f32 %v878_v59, %v877_v56  ;;  %v4739_v56 = vld [vmem:[#allocation7 + $0x90] sm:$0xff]  ;;  %v1205_v59 = vld [vmem:[#allocation9 + $0x50] sm:$0xff] }
 0x3f5   :  { %v880_v0 = vrot.slane %v879_v63, 1 }
 0x3f7   :  { %v881_v3 = vadd.f32 %v880_v0, %v879_v63 }
 0x3f9   :  { %v882_v4 = vmul.f32 0.013888889, %v881_v3 }
 0x3fb   :  { %v884_v5 = vadd.f32 1e-05, %v882_v4 }
 0x3fd   :  { %4847 = vrsqrt.f32 %v884_v5  ;;  %vm891_vm4 = vweird.f32 %v884_v5 }
 0x403   :  { %v4848_v9 = vpop.eup %4847 }
 0x404   :  { %v886_v10 = vmul.f32 %v4848_v9, %v884_v5  ;;  %vm892_vm3 = vweird.f32 %v4848_v9 }
 0x405   :  { %vm893_vm5 = vmor %vm891_vm4, %vm892_vm3  ;;  %vm2809_vm3 = vcmask 424960   ;;  %vm3827_vm4 = vcmask 228352  }
 0x406   :  { %v887_v11 = vmul.f32 %v4848_v9, %v886_v10  ;;  %v1498_v10 = vld [vmem:[#allocation10 + $0x58] sm:$0xff] }
 0x408   :  { %v888_v13 = vmul.f32 0.5, %v887_v11  ;;  %v1319_v11 = vld [vmem:[#allocation9 + $0x60] sm:$0xff] }
 0x40a   :  { %v889_v14 = vsub.f32 1.5, %v888_v13 }
 0x40c   :  { %v890_v16 = vmul.f32 %v4848_v9, %v889_v14  ;;  %v1496_v14 = vld [vmem:[#allocation10 + $0x48] sm:$0xff] }
 0x40e   :  { %v894_v17 = vsel %vm893_vm5, %v4848_v9, %v890_v16  ;;  %v1499_v9 = vld [vmem:[#allocation10 + $0x60] sm:$0xff] }
 0x40f   :  { %v895_v18 = vmul.f32 %v894_v17, %v883_v15  ;;  %v1435_v15 = vld [vmem:[#allocation9 + $0x80] sm:$0xff]  ;;  %v1494_v17 = vld [vmem:[#allocation10 + $0x38] sm:$0xff] }
 0x410   :  { %v1495_v16 = vld [vmem:[#allocation10 + $0x40] sm:$0xff] }
 0x411   :  { %v897_v21 = vmul.f32 %v895_v18, %v5393_v38  ;;  %v900_v22 = vperm.slane %v895_v18, 0  ;;  %v978_v38 = vld [vmem:[#allocation9 + $0x8] sm:$0xff] }
 0x412   :  { %v1320_v18 = vld [vmem:[#allocation9 + $0x68] sm:$0xff] }
 0x413   :  { %v898_v23 = vsub.f32 %v896_v19, %v897_v21  ;;  %v902_v24 = vmul.f32 %v900_v22, %v5382_v20  ;;  %v903_v25 = vmul.f32 %v900_v22, %v5387_v26  ;;  %v1493_v19 = vld [vmem:[#allocation10 + $0x30] sm:$0xff]  ;;  %v1492_v21 = vld [vmem:[#allocation10 + $0x28] sm:$0xff] }
 0x414   :  { %v1436_v22 = vld [vmem:[#allocation9 + $0x88] sm:$0xff] }
 0x415   :  { %v905_v27 = vperm.slane %v898_v23, 0  ;;  %v1491_v23 = vld [vmem:[#allocation10 + $0x20] sm:$0xff] }
 0x417   :  { %v907_v28 = vadd.f32 %v905_v27, %v902_v24  ;;  %v908_v29 = vadd.f32 %v905_v27, %v903_v25  ;;  %v1490_v24 = vld [vmem:[#allocation10 + $0x18] sm:$0xff]  ;;  %v1321_v25 = vld [vmem:[#allocation9 + $0x70] sm:$0xff] }
 0x418   :  { %v1437_v27 = vld [vmem:[#allocation9 + $0x90] sm:$0xff] }
 0x419   :  { %v909_v30 = vmax.f32 %v907_v28, 0.0  ;;  %v910_v31 = vmax.f32 %v908_v29, 0.0  ;;  %v1322_v28 = vld [vmem:[#allocation9 + $0x78] sm:$0x3] }
 0x41a   :  { %v1438_v29 = vld [vmem:[#allocation9 + $0x98] sm:$0x3] }
 0x41b   :  { %v5412_v32 = vpack.c.bf16 %v910_v31, %v909_v30  ;;  %v1489_v30 = vld [vmem:[#allocation10 + $0x10] sm:$0xff]  ;;  %v1488_v31 = vld [vmem:[#allocation10 + $0x8] sm:$0xff] }
 0x41d   :  { %4061 = vmatmul.msk.bf16.vlgmr.msrb.gmra.mxu3 %vm799_vm1, %v5412_v32  ;;  %4086 = vmatmul.msk.bf16.vlgmr.msrb.gmra.mxu1 %vm799_vm1, %v5412_v32 }
 0x42d   :  { %4121 = vmatmul.msk.bf16.vlgmr.msra.gmra.mxu3 %vm799_vm1, %v5412_v32 }
 0x49a   :  { %v1039_v33 = vpop.f32.mrf.mxu1 }
 0x4a0   :  { %v972_v20 = vpop.f32.mrf.mxu3 }
 0x4a2   :  { %v1041_v26 = vpop.f32.mrf.mxu1 }
 0x4a3   :  { %4087 = vmatpush.msk.msra.mxu0 %vm1062_vm6, %v1041_v26 }
 0x4a5   :  { %1081 = vmatpush.msra.mxu0 %v1039_v33 }
 0x4a6   :  { %4088 = vmatmul.msk.f32.vlgmr.msra.gmra.mxu0 %vm1049_vm7, %v1045_v34 }
 0x4a7   :  { %1306 = vmatpush.bf16.msrb.mxu0 %v4744_v35 }
 0x4a8   :  { %v974_v36 = vpop.f32.mrf.mxu3 }
 0x4a9   :  { %4092 = vmatpush.msk.msra.mxu1 %vm1062_vm6, %v974_v36  ;;  %4823 = vmatpush.msk.msra.mxu2 %vm1062_vm6, %v974_v36 }
 0x4ab   :  { %1125 = vmatpush.msra.mxu1 %v972_v20  ;;  %4824 = vmatpush.msra.mxu2 %v972_v20 }
 0x4ac   :  { %4093 = vmatmul.msk.f32.vlgmr.msra.gmra.mxu1 %vm1049_vm7, %v977_v37  ;;  %4094 = vmatmul.msk.f32.vlgmr.msra.gmra.mxu2 %vm1049_vm7, %v978_v38 }
 0x4ad   :  { %1422 = vmatpush.bf16.msrb.mxu2 %v4750_v39  ;;  %1307 = vmatpush.bf16.msrb.mxu0 %v4743_v40 }
 0x4ae   :  { %4089 = vmatmul.msk.f32.gmra.mxu0 %vm1049_vm7, %v1046_v41 }
 0x4b0   :  { %v1197_v44 = vpop.f32.mrf.mxu3 }
 0x4b1   :  { %1423 = vmatpush.bf16.msrb.mxu2 %v4749_v42  ;;  %1308 = vmatpush.bf16.msrb.mxu0 %v4742_v43 }
 0x4b4   :  { %4095 = vmatmul.msk.f32.gmra.mxu2 %vm1049_vm7, %v979_v45 }
 0x4b5   :  { %1424 = vmatpush.bf16.msrb.mxu2 %v4748_v46  ;;  %1309 = vmatpush.bf16.msrb.mxu0 %v4741_v47 }
 0x4b6   :  { %4090 = vmatmul.msk.f32.gmra.mxu0 %vm1049_vm7, %v1047_v48 }
 0x4b8   :  { %v1199_v51 = vpop.f32.mrf.mxu3 }
 0x4b9   :  { %4122 = vmatpush.msk.msrb.mxu1 %vm1062_vm6, %v1199_v51  ;;  %1425 = vmatpush.bf16.msrb.mxu2 %v4747_v49 }
 0x4ba   :  { %1310 = vmatpush.bf16.msrb.mxu0 %v4740_v50 }
 0x4bb   :  { %1237 = vmatpush.msrb.mxu1 %v1197_v44 }
 0x4bc   :  { %4096 = vmatmul.msk.f32.gmra.mxu2 %vm1049_vm7, %v980_v52  ;;  %4123 = vmatmul.msk.f32.vlgmr.msrb.gmra.mxu1 %vm1049_vm7, %v1203_v53 }
 0x4bd   :  { %1426 = vmatpush.bf16.msrb.mxu2 %v4746_v54  ;;  %1516 = vmatpush.msra.mxu1 %v1499_v9 }
 0x4be   :  { %4091 = vmatmul.msk.f32.gmra.mxu0 %vm1049_vm7, %v1048_v55 }
 0x4bf   :  { %1311 = vmatpush.bf16.msrb.mxu0 %v4739_v56  ;;  %1517 = vmatpush.msra.mxu1 %v1498_v10 }
 0x4c1   :  { %1427 = vmatpush.bf16.msrb.mxu2 %v4745_v57  ;;  %1518 = vmatpush.msra.mxu1 %v1497_v12 }
 0x4c3   :  { %1519 = vmatpush.msra.mxu1 %v1496_v14 }
 0x4c4   :  { %4124 = vmatmul.msk.f32.gmra.mxu1 %vm1049_vm7, %v1204_v58  ;;  %4181 = vmatmul.msk.bf16.vlgmr.msrb.gmra.mxu2 %vm799_vm1, %v5412_v32 }
 0x4c5   :  { %1520 = vmatpush.msra.mxu1 %v1495_v16 }
 0x4c6   :  { %4151 = vmatmul.msk.bf16.vlgmr.msrb.gmra.mxu0 %vm799_vm1, %v5412_v32  ;;  %v1487_v32 = vld [vmem:[#allocation10] sm:$0xff] }
 0x4c7   :  { %1521 = vmatpush.msra.mxu1 %v1494_v17 }
 0x4c9   :  { %1522 = vmatpush.msra.mxu1 %v1493_v19 }
 0x4cb   :  { %1523 = vmatpush.msra.mxu1 %v1492_v21 }
 0x4cc   :  { %4125 = vmatmul.msk.f32.gmra.mxu1 %vm1049_vm7, %v1205_v59 }
 0x4cd   :  { %1524 = vmatpush.msra.mxu1 %v1491_v23 }
 0x4cf   :  { %1525 = vmatpush.msra.mxu1 %v1490_v24 }
 0x4d1   :  { %1526 = vmatpush.msra.mxu1 %v1489_v30 }
 0x4d3   :  { %1527 = vmatpush.msra.mxu1 %v1488_v31 }
 0x4d4   :  { %4126 = vmatmul.msk.f32.gmra.mxu1 %vm1049_vm7, %v1206_v60 }
 0x4d5   :  { %1528 = vmatpush.msra.mxu1 %v1487_v32 }
 0x523   :  { %v5440_v61 = vpop.f32.mrf.mxu0 }
 0x529   :  { %v1127_v33 = vpop.f32.mrf.mxu1 }
 0x52a   :  { %v1128_v26 = vadd.f32 %v1127_v33, %v5440_v61 }
 0x52b   :  { %v1086_v62 = vpop.f32.mrf.mxu0 }
 0x52f   :  { %v1130_v63 = vpop.f32.mrf.mxu2 }
 0x530   :  { %v5442_v0 = vadd.f32 %v1130_v63, %v1086_v62 }
 0x533   :  { %v5444_v1 = vpop.f32.mrf.mxu0 }
 0x537   :  { %v5446_v2 = vpop.f32.mrf.mxu2 }
 0x538   :  { %v1134_v46 = vadd.f32 %v5446_v2, %v5444_v1 }
 0x539   :  { %v1239_v20 = vpop.f32.mrf.mxu1 }
 0x53a   :  { %v1251_v35 = vadd.f32 %v1239_v20, %v1128_v26  ;;  %v4756_v20 = vld [vmem:[#allocation12 + $0x28] sm:$0xff]  ;;  %v4762_v26 = vld [vmem:[#allocation12 + $0x5c] sm:$0xff] }
 0x53b   :  { %v1092_v3 = vpop.f32.mrf.mxu0 }
 0x53f   :  { %v1136_v4 = vpop.f32.mrf.mxu2 }
 0x540   :  { %v5448_v5 = vadd.f32 %v1136_v4, %v1092_v3 }
 0x541   :  { %v1242_v36 = vpop.f32.mrf.mxu1 }
 0x542   :  { %v1252_v41 = vadd.f32 %v1242_v36, %v5442_v0 }
 0x543   :  { %v1313_v6 = vpop.f32.mrf.mxu0 }
 0x547   :  { %v1429_v7 = vpop.f32.mrf.mxu2 }
 0x549   :  { %v1245_v44 = vpop.f32.mrf.mxu1 }
 0x54a   :  { %v1253_v48 = vadd.f32 %v1245_v44, %v1134_v46  ;;  %v4754_v44 = vld [vmem:[#allocation12 + $0x18] sm:$0xff]  ;;  %v4760_v46 = vld [vmem:[#allocation12 + $0x4c] sm:$0xff] }
 0x54b   :  { %v1315_v8 = vpop.f32.mrf.mxu0 }
 0x54c   :  { %4152 = vmatpush.msk.msrb.mxu3 %vm1062_vm6, %v1315_v8 }
 0x54e   :  { %1353 = vmatpush.msrb.mxu3 %v1313_v6 }
 0x54f   :  { %4153 = vmatmul.msk.f32.vlgmr.msrb.gmra.mxu3 %vm1049_vm7, %v1319_v11  ;;  %v1431_v13 = vpop.f32.mrf.mxu2 }
 0x550   :  { %4182 = vmatpush.msk.msra.mxu0 %vm1062_vm6, %v1431_v13  ;;  %1580 = vmatpush.msra.mxu3 %v1499_v9 }
 0x551   :  { %v1248_v52 = vpop.f32.mrf.mxu1 }
 0x552   :  { %1469 = vmatpush.msra.mxu0 %v1429_v7  ;;  %1581 = vmatpush.msra.mxu3 %v1498_v10  ;;  %v1254_v53 = vadd.f32 %v1248_v52, %v5448_v5 }
 0x553   :  { %4183 = vmatmul.msk.f32.vlgmr.msra.gmra.mxu0 %vm1049_vm7, %v1435_v15 }
 0x554   :  { %1582 = vmatpush.msra.mxu3 %v1497_v12 }
 0x556   :  { %1583 = vmatpush.msra.mxu3 %v1496_v14 }
 0x557   :  { %4154 = vmatmul.msk.f32.gmra.mxu3 %vm1049_vm7, %v1320_v18 }
 0x558   :  { %1584 = vmatpush.msra.mxu3 %v1495_v16 }
 0x55a   :  { %1585 = vmatpush.msra.mxu3 %v1494_v17 }
 0x55b   :  { %4184 = vmatmul.msk.f32.gmra.mxu0 %vm1049_vm7, %v1436_v22 }
 0x55c   :  { %1586 = vmatpush.msra.mxu3 %v1493_v19 }
 0x55e   :  { %1587 = vmatpush.msra.mxu3 %v1492_v21 }
 0x55f   :  { %4155 = vmatmul.msk.f32.gmra.mxu3 %vm1049_vm7, %v1321_v25 }
 0x560   :  { %1588 = vmatpush.msra.mxu3 %v1491_v23  ;;  %v1668_v23 = vld [vmem:[#allocation12 + $0x30] sm:$0xf] }
 0x561   :  { %v1694_v25 = vunpack.c.l.b16 %v1668_v23 }
 0x562   :  { %1589 = vmatpush.msra.mxu3 %v1490_v24  ;;  %v1756_v24 = vld [vmem:[#allocation12 + $0x64] sm:$0xf] }
 0x563   :  { %4185 = vmatmul.msk.f32.gmra.mxu0 %vm1049_vm7, %v1437_v27  ;;  %v1782_v27 = vunpack.c.l.b16 %v1756_v24 }
 0x564   :  { %1590 = vmatpush.msra.mxu3 %v1489_v30 }
 0x566   :  { %1591 = vmatpush.msra.mxu3 %v1488_v31 }
 0x567   :  { %4156 = vmatmul.msk.f32.gmra.mxu3 %vm1049_vm7, %v1322_v28  ;;  %v1701_v28 = vpack.c.b16 %v1694_v25, %v1694_v25 }
 0x568   :  { %1592 = vmatpush.msra.mxu3 %v1487_v32 }
 0x569   :  { %v1715_v31 = vsel %vm1062_vm6, %v1701_v28, 0 }
 0x56a   :  { %1718 = vmatpush.bf16.msra.mxu2 %v1715_v31 }
 0x56b   :  { %4186 = vmatmul.msk.f32.gmra.mxu0 %vm1049_vm7, %v1438_v29  ;;  %v1789_v29 = vpack.c.b16 %v1782_v27, %v1782_v27 }
 0x56d   :  { %v1797_v32 = vsel %vm1062_vm6, %v1789_v29, 0  ;;  %v4763_v29 = vld [vmem:[#allocation12 + $0x68] sm:$0xff] }
 0x56e   :  { %1800 = vmatpush.bf16.msrb.mxu0 %v1797_v32  ;;  %1719 = vmatpush.bf16.msra.mxu2 %v4756_v20 }
 0x572   :  { %1801 = vmatpush.bf16.msrb.mxu0 %v4762_v26 }
 0x5d0   :  { %v1471_v34 = vpop.f32.mrf.mxu0 }
 0x5d2   :  { %v1355_v37 = vpop.f32.mrf.mxu3 }
 0x5d3   :  { %v1367_v38 = vadd.f32 %v1355_v37, %v1251_v35  ;;  %v4755_v37 = vld [vmem:[#allocation12 + $0x20] sm:$0xff] }
 0x5d4   :  { %1720 = vmatpush.bf16.msra.mxu2 %v4755_v37 }
 0x5d5   :  { %v5461_v39 = vadd.f32 %v1471_v34, %v1367_v38  ;;  %v4761_v38 = vld [vmem:[#allocation12 + $0x54] sm:$0xff] }
 0x5d6   :  { %1802 = vmatpush.bf16.msrb.mxu0 %v4761_v38 }
 0x5d7   :  { %4187 = vmatmul.msk.f32.vlgmr.msra.gmra.mxu1 %vm1500_vm8, %v5461_v39 }
 0x5d8   :  { %v1474_v40 = vpop.f32.mrf.mxu0  ;;  %1721 = vmatpush.bf16.msra.mxu2 %v4754_v44 }
 0x5da   :  { %v1358_v42 = vpop.f32.mrf.mxu3  ;;  %1803 = vmatpush.bf16.msrb.mxu0 %v4760_v46 }
 0x5db   :  { %v1368_v43 = vadd.f32 %v1358_v42, %v1252_v41 }
 0x5dd   :  { %v5466_v45 = vadd.f32 %v1474_v40, %v1368_v43 }
 0x5df   :  { %4188 = vmatmul.msk.f32.gmra.mxu1 %vm1500_vm8, %v5466_v45 }
 0x5e0   :  { %v1477_v47 = vpop.f32.mrf.mxu0 }
 0x5e2   :  { %v1361_v49 = vpop.f32.mrf.mxu3 }
 0x5e3   :  { %v1369_v50 = vadd.f32 %v1361_v49, %v1253_v48  ;;  %v4753_v49 = vld [vmem:[#allocation12 + $0x10] sm:$0xff] }
 0x5e4   :  { %1722 = vmatpush.bf16.msra.mxu2 %v4753_v49 }
 0x5e5   :  { %v5472_v51 = vadd.f32 %v1477_v47, %v1369_v50  ;;  %v4759_v50 = vld [vmem:[#allocation12 + $0x44] sm:$0xff] }
 0x5e6   :  { %1804 = vmatpush.bf16.msrb.mxu0 %v4759_v50 }
 0x5e7   :  { %4189 = vmatmul.msk.f32.gmra.mxu1 %vm1500_vm8, %v5472_v51 }
 0x5e8   :  { %v1480_v55 = vpop.f32.mrf.mxu0 }
 0x5ea   :  { %v1364_v54 = vpop.f32.mrf.mxu3 }
 0x5eb   :  { %v1370_v56 = vadd.f32 %v1364_v54, %v1254_v53  ;;  %v4752_v54 = vld [vmem:[#allocation12 + $0x8] sm:$0xff] }
 0x5ec   :  { %1723 = vmatpush.bf16.msra.mxu2 %v4752_v54 }
 0x5ed   :  { %v5477_v57 = vadd.f32 %v1480_v55, %v1370_v56  ;;  %v4758_v55 = vld [vmem:[#allocation12 + $0x3c] sm:$0xff] }
 0x5ee   :  { %1805 = vmatpush.bf16.msrb.mxu0 %v4758_v55  ;;  %v1736_v55 = vld [vmem:[#allocation13] sm:$0xff] }
 0x5ef   :  { %4190 = vmatmul.msk.f32.gmra.mxu1 %vm1500_vm8, %v5477_v57 }
 0x654   :  { %v1530_v58 = vpop.f32.mrf.mxu1 }
 0x655   :  { %v1542_v62 = vsel %vm1500_vm8, %v1530_v58, 0.0  ;;  %v4751_v58 = vld [vmem:[#allocation12] sm:$0xff] }
 0x656   :  { %1724 = vmatpush.bf16.msra.mxu2 %v4751_v58 }
 0x65c   :  { %v1533_v59 = vpop.f32.mrf.mxu1 }
 0x65d   :  { %v1543_v61 = vsel %vm1500_vm8, %v1533_v59, 0.0  ;;  %v4757_v59 = vld [vmem:[#allocation12 + $0x34] sm:$0xff] }
 0x65e   :  { %v1544_v0 = vadd.f32 %v1543_v61, %v1542_v62  ;;  %1806 = vmatpush.bf16.msrb.mxu0 %v4757_v59  ;;  %v1737_v59 = vld [vmem:[#allocation13 + $0x8] sm:$0xff] }
 0x664   :  { %v1536_v60 = vpop.f32.mrf.mxu1 }
 0x665   :  { %v1545_v63 = vsel %vm1500_vm8, %v1536_v60, 0.0 }
 0x666   :  { %v1546_v1 = vadd.f32 %v1545_v63, %v1544_v0  ;;  %v1965_v63 = vld [vmem:[#allocation12 + $0x98] sm:$0xf] }
 0x667   :  { %v1991_v0 = vunpack.c.l.b16 %v1965_v63  ;;  %v1822_v63 = vld [vmem:[#allocation13 + $0x50] sm:$0xff] }
 0x66c   :  { %v1539_v2 = vpop.f32.mrf.mxu1 }
 0x66d   :  { %v1548_v3 = vsel %vm1547_vm9, %v1539_v2, 0.0 }
 0x66e   :  { %v1549_v4 = vadd.f32 %v1548_v3, %v1546_v1  ;;  %v1998_v1 = vpack.c.b16 %v1991_v0, %v1991_v0  ;;  %v4768_v3 = vld [vmem:[#allocation12 + $0x90] sm:$0xff] }
 0x670   :  { %v1550_v5 = vrot.slane %v1549_v4, 4  ;;  %v2006_v2 = vsel %vm1062_vm6, %v1998_v1, 0  ;;  %v1739_v1 = vld [vmem:[#allocation13 + $0x18] sm:$0xff] }
 0x671   :  { %2009 = vmatpush.bf16.msrb.mxu2 %v2006_v2  ;;  %v1823_v2 = vld [vmem:[#allocation13 + $0x58] sm:$0xff] }
 0x672   :  { %v1551_v6 = vadd.f32 %v1550_v5, %v1549_v4 }
 0x674   :  { %v1552_v7 = vrot.slane %v1551_v6, 2 }
 0x675   :  { %2010 = vmatpush.bf16.msrb.mxu2 %v4768_v3 }
 0x676   :  { %v1553_v8 = vadd.f32 %v1552_v7, %v1551_v6  ;;  %v4767_v7 = vld [vmem:[#allocation12 + $0x88] sm:$0xff] }
 0x678   :  { %v1554_v9 = vrot.slane %v1553_v8, 1 }
 0x679   :  { %2011 = vmatpush.bf16.msrb.mxu2 %v4767_v7 }
 0x67a   :  { %v1555_v10 = vadd.f32 %v1554_v9, %v1553_v8 }
 0x67c   :  { %v5485_v11 = vmul.f32 0.00295858, %v1555_v10  ;;  %v1620_v10 = vld [vmem:[%s6122_s9] sm:$0x1] }
 0x67e   :  { %v1557_v12 = vsub.f32 %v5461_v39, %v5485_v11  ;;  %v1558_v14 = vsub.f32 %v5466_v45, %v5485_v11  ;;  %v1559_v16 = vsub.f32 %v5472_v51, %v5485_v11  ;;  %v1560_v18 = vsub.f32 %v5477_v57, %v5485_v11 }
 0x680   :  { %v1561_v13 = vmul.f32 %v1557_v12, %v1557_v12  ;;  %v1562_v15 = vmul.f32 %v1558_v14, %v1558_v14  ;;  %v1563_v17 = vmul.f32 %v1559_v16, %v1559_v16  ;;  %v1564_v19 = vmul.f32 %v1560_v18, %v1560_v18  ;;  %v4765_v16 = vld [vmem:[#allocation12 + $0x78] sm:$0xff] }
 0x682   :  { %4191 = vmatmul.msk.f32.vlgmr.msra.gmra.mxu3 %vm1500_vm8, %v1561_v13  ;;  %v4766_v13 = vld [vmem:[#allocation12 + $0x80] sm:$0xff] }
 0x683   :  { %2012 = vmatpush.bf16.msrb.mxu2 %v4766_v13  ;;  %v2030_v13 = vld [vmem:[#allocation13 + $0x80] sm:$0xff] }
 0x687   :  { %2013 = vmatpush.bf16.msrb.mxu2 %v4765_v16  ;;  %v2031_v16 = vld [vmem:[#allocation13 + $0x88] sm:$0xff] }
 0x68a   :  { %4192 = vmatmul.msk.f32.gmra.mxu3 %vm1500_vm8, %v1562_v15 }
 0x692   :  { %4193 = vmatmul.msk.f32.gmra.mxu3 %vm1500_vm8, %v1563_v17  ;;  %v1633_v17 = vld [vmem:[%s6123_s10] sm:$0x1] }
 0x69a   :  { %4194 = vmatmul.msk.f32.gmra.mxu3 %vm1500_vm8, %v1564_v19 }
 0x705   :  { %v1594_v21 = vpop.f32.mrf.mxu3 }
 0x706   :  { %v1606_v34 = vsel %vm1500_vm8, %v1594_v21, 0.0 }
 0x70d   :  { %v1597_v22 = vpop.f32.mrf.mxu3 }
 0x70e   :  { %v1607_v33 = vsel %vm1500_vm8, %v1597_v22, 0.0  ;;  %v4764_v22 = vld [vmem:[#allocation12 + $0x70] sm:$0xff] }
 0x70f   :  { %v1608_v36 = vadd.f32 %v1607_v33, %v1606_v34  ;;  %2014 = vmatpush.bf16.msrb.mxu2 %v4764_v22  ;;  %v2181_v22 = vld [vmem:[#allocation13 + $0xb0] sm:$0xff] }
 0x713   :  { %2015 = vmatpush.bf16.msrb.mxu2 %v4763_v29  ;;  %v2186_v29 = vld [vmem:[#allocation13 + $0xd8] sm:$0xf] }
 0x715   :  { %v1600_v30 = vpop.f32.mrf.mxu3 }
 0x716   :  { %v1609_v35 = vsel %vm1500_vm8, %v1600_v30, 0.0 }
 0x717   :  { %v1610_v40 = vadd.f32 %v1609_v35, %v1608_v36  ;;  %v4774_v36 = vld [vmem:[#allocation12 + $0xc4] sm:$0xff] }
 0x71d   :  { %v1603_v41 = vpop.f32.mrf.mxu3 }
 0x71e   :  { %v1611_v42 = vsel %vm1547_vm9, %v1603_v41, 0.0 }
 0x71f   :  { %v1612_v43 = vadd.f32 %v1611_v42, %v1610_v40  ;;  %v4773_v40 = vld [vmem:[#allocation12 + $0xbc] sm:$0xff]  ;;  %v4772_v42 = vld [vmem:[#allocation12 + $0xb4] sm:$0xff] }
 0x721   :  { %v1613_v47 = vrot.slane %v1612_v43, 4 }
 0x723   :  { %v1614_v48 = vadd.f32 %v1613_v47, %v1612_v43  ;;  %v4769_v43 = vld [vmem:[#allocation12 + $0x9c] sm:$0xff] }
 0x725   :  { %v1615_v52 = vrot.slane %v1614_v48, 2 }
 0x727   :  { %v1616_v53 = vadd.f32 %v1615_v52, %v1614_v48 }
 0x729   :  { %v1617_v56 = vrot.slane %v1616_v53, 1 }
 0x72b   :  { %v1618_v60 = vadd.f32 %v1617_v56, %v1616_v53  ;;  %v1819_v53 = vld [vmem:[#allocation13 + $0x38] sm:$0xff]  ;;  %v1820_v56 = vld [vmem:[#allocation13 + $0x40] sm:$0xff] }
 0x72d   :  { %v1619_v61 = vmul.f32 0.00295858, %v1618_v60  ;;  %v1821_v60 = vld [vmem:[#allocation13 + $0x48] sm:$0xff] }
 0x72f   :  { %v1621_v62 = vadd.f32 1e-05, %v1619_v61 }
 0x731   :  { %4849 = vrsqrt.f32 %v1621_v62  ;;  %vm1628_vm11 = vweird.f32 %v1621_v62 }
 0x737   :  { %v4850_v4 = vpop.eup %4849 }
 0x738   :  { %v1623_v5 = vmul.f32 %v4850_v4, %v1621_v62  ;;  %vm1629_vm10 = vweird.f32 %v4850_v4  ;;  %v1738_v62 = vld [vmem:[#allocation13 + $0x10] sm:$0xff] }
 0x739   :  { %vm1630_vm12 = vmor %vm1628_vm11, %vm1629_vm10 }
 0x73a   :  { %v1624_v6 = vmul.f32 %v4850_v4, %v1623_v5  ;;  %v1740_v5 = vld [vmem:[#allocation13 + $0x20] sm:$0xff] }
 0x73c   :  { %v1625_v8 = vmul.f32 0.5, %v1624_v6  ;;  %v1824_v6 = vld [vmem:[#allocation13 + $0x60] sm:$0xff] }
 0x73e   :  { %v1626_v9 = vsub.f32 1.5, %v1625_v8  ;;  %v2029_v8 = vld [vmem:[#allocation13 + $0x78] sm:$0xff] }
 0x740   :  { %v1627_v12 = vmul.f32 %v4850_v4, %v1626_v9  ;;  %v1741_v9 = vld [vmem:[#allocation13 + $0x28] sm:$0xff] }
 0x742   :  { %v1631_v14 = vsel %vm1630_vm12, %v4850_v4, %v1627_v12  ;;  %v2028_v4 = vld [vmem:[#allocation13 + $0x70] sm:$0xff] }
 0x743   :  { %v1632_v15 = vmul.f32 %v1631_v14, %v1620_v10  ;;  %v1825_v10 = vld [vmem:[#allocation13 + $0x68] sm:$0xf]  ;;  %v1742_v14 = vld [vmem:[#allocation13 + $0x30] sm:$0xf] }
 0x745   :  { %v1634_v18 = vmul.f32 %v1632_v15, %v5485_v11  ;;  %v1637_v19 = vperm.slane %v1632_v15, 0  ;;  %v2117_v11 = vld [vmem:[#allocation12 + $0xcc] sm:$0xf] }
 0x746   :  { %v2143_v33 = vunpack.c.l.b16 %v2117_v11  ;;  %v2267_v11 = vld [vmem:[#allocation15 + $0x58] sm:$0xff] }
 0x747   :  { %v1635_v21 = vsub.f32 %v1633_v17, %v1634_v18  ;;  %v1639_v23 = vmul.f32 %v1637_v19, %v5461_v39  ;;  %v1640_v24 = vmul.f32 %v1637_v19, %v5466_v45  ;;  %v1641_v39 = vmul.f32 %v1637_v19, %v5472_v51  ;;  %v4771_v51 = vld [vmem:[#allocation12 + $0xac] sm:$0xff]  ;;  %v2032_v18 = vld [vmem:[#allocation13 + $0x90] sm:$0xff] }
 0x748   :  { %v2150_v20 = vpack.c.b16 %v2143_v33, %v2143_v33  ;;  %v1642_v45 = vmul.f32 %v1637_v19, %v5477_v57  ;;  %v4770_v57 = vld [vmem:[#allocation12 + $0xa4] sm:$0xff]  ;;  %v2180_v19 = vld [vmem:[#allocation13 + $0xa8] sm:$0xff] }
 0x749   :  { %v1644_v25 = vperm.slane %v1635_v21, 0  ;;  %v2033_v21 = vld [vmem:[#allocation13 + $0x98] sm:$0xff]  ;;  %v2266_v33 = vld [vmem:[#allocation15 + $0x50] sm:$0xff] }
 0x74a   :  { %v2158_v26 = vsel %vm1062_vm6, %v2150_v20, 0 }
 0x74b   :  { %v1646_v27 = vadd.f32 %v1644_v25, %v1639_v23  ;;  %v1647_v28 = vadd.f32 %v1644_v25, %v1640_v24  ;;  %v1648_v34 = vadd.f32 %v1644_v25, %v1641_v39  ;;  %v1649_v35 = vadd.f32 %v1644_v25, %v1642_v45  ;;  %v2034_v23 = vld [vmem:[#allocation13 + $0xa0] sm:$0xf]  ;;  %v2182_v24 = vld [vmem:[#allocation13 + $0xb8] sm:$0xff]  ;;  %v2265_v39 = vld [vmem:[#allocation15 + $0x48] sm:$0xff] }
 0x74c   :  { %v2183_v25 = vld [vmem:[#allocation13 + $0xc0] sm:$0xff] }
 0x74d   :  { %v1650_v30 = vmax.f32 %v1646_v27, 0.0  ;;  %v1651_v31 = vmax.f32 %v1647_v28, 0.0  ;;  %v1652_v37 = vmax.f32 %v1648_v34, 0.0  ;;  %v1653_v38 = vmax.f32 %v1649_v35, 0.0  ;;  %v2184_v27 = vld [vmem:[#allocation13 + $0xc8] sm:$0xff]  ;;  %v2185_v28 = vld [vmem:[#allocation13 + $0xd0] sm:$0xff] }
 0x74e   :  { %v2264_v45 = vld [vmem:[#allocation15 + $0x40] sm:$0xff]  ;;  %v2262_v34 = vld [vmem:[#allocation15 + $0x30] sm:$0xff] }
 0x74f   :  { %v1654_v32 = vpack.c.bf16 %v1651_v31, %v1650_v30  ;;  %v1655_v41 = vpack.c.bf16 %v1653_v38, %v1652_v37  ;;  %v2260_v37 = vld [vmem:[#allocation15 + $0x20] sm:$0xff]  ;;  %v2259_v38 = vld [vmem:[#allocation15 + $0x18] sm:$0xff] }
 0x751   :  { %4219 = vmatmul.msk.bf16.vlgmr.msra.gmra.mxu2 %vm1500_vm8, %v1654_v32  ;;  %4245 = vmatmul.msk.bf16.vlgmr.msrb.gmra.mxu0 %vm1500_vm8, %v1654_v32 }
 0x752   :  { %2161 = vmatpush.bf16.msra.mxu2 %v2158_v26  ;;  %v2263_v26 = vld [vmem:[#allocation15 + $0x38] sm:$0xff] }
 0x756   :  { %2162 = vmatpush.bf16.msra.mxu2 %v4774_v36  ;;  %v2261_v36 = vld [vmem:[#allocation15 + $0x28] sm:$0xff] }
 0x75a   :  { %2163 = vmatpush.bf16.msra.mxu2 %v4773_v40  ;;  %v2258_v40 = vld [vmem:[#allocation15 + $0x10] sm:$0xff] }
 0x75e   :  { %2164 = vmatpush.bf16.msra.mxu2 %v4772_v42  ;;  %v2256_v42 = vld [vmem:[#allocation15] sm:$0xff] }
 0x761   :  { %4220 = vmatmul.msk.bf16.gmra.mxu2 %vm1500_vm8, %v1655_v41  ;;  %4246 = vmatmul.msk.bf16.gmra.mxu0 %vm1500_vm8, %v1655_v41 }
 0x762   :  { %2165 = vmatpush.bf16.msra.mxu2 %v4771_v51 }
 0x766   :  { %2166 = vmatpush.bf16.msra.mxu2 %v4770_v57 }
 0x76a   :  { %2167 = vmatpush.bf16.msra.mxu2 %v4769_v43 }
 0x771   :  { %4287 = vmatmul.msk.bf16.vlgmr.msrb.gmra.mxu2 %vm1500_vm8, %v1654_v32 }
 0x781   :  { %4288 = vmatmul.msk.bf16.gmra.mxu2 %vm1500_vm8, %v1655_v41 }
 0x791   :  { %4321 = vmatmul.msk.bf16.vlgmr.msra.gmra.mxu2 %vm1500_vm8, %v1654_v32  ;;  %v2268_v32 = vld [vmem:[#allocation15 + $0x60] sm:$0xff] }
 0x792   :  { %2387 = vmatpush.msrb.mxu2 %v2268_v32 }
 0x794   :  { %2388 = vmatpush.msrb.mxu2 %v2267_v11 }
 0x796   :  { %2389 = vmatpush.msrb.mxu2 %v2266_v33 }
 0x798   :  { %2390 = vmatpush.msrb.mxu2 %v2265_v39 }
 0x79a   :  { %2391 = vmatpush.msrb.mxu2 %v2264_v45 }
 0x79c   :  { %2392 = vmatpush.msrb.mxu2 %v2263_v26 }
 0x79e   :  { %2393 = vmatpush.msrb.mxu2 %v2262_v34 }
 0x7a0   :  { %2394 = vmatpush.msrb.mxu2 %v2261_v36 }
 0x7a1   :  { %4322 = vmatmul.msk.bf16.gmra.mxu2 %vm1500_vm8, %v1655_v41  ;;  %v2257_v41 = vld [vmem:[#allocation15 + $0x8] sm:$0xff] }
 0x7a2   :  { %2395 = vmatpush.msrb.mxu2 %v2260_v37 }
 0x7a4   :  { %2396 = vmatpush.msrb.mxu2 %v2259_v38 }
 0x7a6   :  { %2397 = vmatpush.msrb.mxu2 %v2258_v40 }
 0x7a8   :  { %2398 = vmatpush.msrb.mxu2 %v2257_v41 }
 0x7aa   :  { %2399 = vmatpush.msrb.mxu2 %v2256_v42 }
 0x7ce   :  { %v1808_v44 = vpop.f32.mrf.mxu0 }
 0x7d4   :  { %v1726_v46 = vpop.f32.mrf.mxu2 }
 0x7d6   :  { %v1810_v47 = vpop.f32.mrf.mxu0 }
 0x7dc   :  { %v1728_v48 = vpop.f32.mrf.mxu2 }
 0x7de   :  { %v1813_v49 = vpop.f32.mrf.mxu0 }
 0x7e4   :  { %v1731_v50 = vpop.f32.mrf.mxu2 }
 0x7e6   :  { %v1815_v52 = vpop.f32.mrf.mxu0 }
 0x7e7   :  { %4247 = vmatpush.msk.msrb.mxu1 %vm1848_vm13, %v1815_v52 }
 0x7e9   :  { %1865 = vmatpush.msrb.mxu1 %v1813_v49 }
 0x7eb   :  { %1866 = vmatpush.msrb.mxu1 %v1810_v47 }
 0x7ec   :  { %v1733_v54 = vpop.f32.mrf.mxu2 }
 0x7ed   :  { %1867 = vmatpush.msrb.mxu1 %v1808_v44  ;;  %4255 = vmatpush.msk.msrb.mxu3 %vm1848_vm13, %v1733_v54 }
 0x7ee   :  { %4248 = vmatmul.msk.f32.vlgmr.msrb.gmra.mxu1 %vm1826_vm14, %v1819_v53 }
 0x7ef   :  { %1927 = vmatpush.msrb.mxu3 %v1731_v50 }
 0x7f1   :  { %1928 = vmatpush.msrb.mxu3 %v1728_v48 }
 0x7f3   :  { %1929 = vmatpush.msrb.mxu3 %v1726_v46 }
 0x7f4   :  { %v2017_v58 = vpop.f32.mrf.mxu2  ;;  %4256 = vmatmul.msk.f32.vlgmr.msrb.gmra.mxu3 %vm1826_vm14, %v1736_v55 }
 0x7f5   :  { %2293 = vmatpush.msra.mxu3 %v2268_v32 }
 0x7f6   :  { %4249 = vmatmul.msk.f32.gmra.mxu1 %vm1826_vm14, %v1820_v56 }
 0x7f7   :  { %2294 = vmatpush.msra.mxu3 %v2267_v11 }
 0x7f9   :  { %2295 = vmatpush.msra.mxu3 %v2266_v33 }
 0x7fb   :  { %2296 = vmatpush.msra.mxu3 %v2265_v39 }
 0x7fc   :  { %v2019_v61 = vpop.f32.mrf.mxu2  ;;  %4257 = vmatmul.msk.f32.gmra.mxu3 %vm1826_vm14, %v1737_v59 }
 0x7fd   :  { %2297 = vmatpush.msra.mxu3 %v2264_v45 }
 0x7fe   :  { %4250 = vmatmul.msk.f32.gmra.mxu1 %vm1826_vm14, %v1821_v60 }
 0x7ff   :  { %2298 = vmatpush.msra.mxu3 %v2263_v26 }
 0x801   :  { %2299 = vmatpush.msra.mxu3 %v2262_v34 }
 0x803   :  { %2300 = vmatpush.msra.mxu3 %v2261_v36 }
 0x804   :  { %v2022_v0 = vpop.f32.mrf.mxu2  ;;  %4258 = vmatmul.msk.f32.gmra.mxu3 %vm1826_vm14, %v1738_v62 }
 0x805   :  { %2301 = vmatpush.msra.mxu3 %v2260_v37 }
 0x806   :  { %4251 = vmatmul.msk.f32.gmra.mxu1 %vm1826_vm14, %v1822_v63 }
 0x807   :  { %2302 = vmatpush.msra.mxu3 %v2259_v38 }
 0x809   :  { %2303 = vmatpush.msra.mxu3 %v2258_v40 }
 0x80b   :  { %2304 = vmatpush.msra.mxu3 %v2257_v41 }
 0x80c   :  { %v2024_v3 = vpop.f32.mrf.mxu2  ;;  %4259 = vmatmul.msk.f32.gmra.mxu3 %vm1826_vm14, %v1739_v1 }
 0x80d   :  { %4289 = vmatpush.msk.msra.mxu0 %vm1848_vm13, %v2024_v3  ;;  %2305 = vmatpush.msra.mxu3 %v2256_v42 }
 0x80e   :  { %4252 = vmatmul.msk.f32.gmra.mxu1 %vm1826_vm14, %v1823_v2 }
 0x80f   :  { %2072 = vmatpush.msra.mxu0 %v2022_v0 }
 0x811   :  { %2073 = vmatpush.msra.mxu0 %v2019_v61 }
 0x813   :  { %2074 = vmatpush.msra.mxu0 %v2017_v58 }
 0x814   :  { %4290 = vmatmul.msk.f32.vlgmr.msra.gmra.mxu0 %vm1826_vm14, %v2028_v4  ;;  %v2169_v7 = vpop.f32.mrf.mxu2  ;;  %4260 = vmatmul.msk.f32.gmra.mxu3 %vm1826_vm14, %v1740_v5 }
 0x816   :  { %4253 = vmatmul.msk.f32.gmra.mxu1 %vm1826_vm14, %v1824_v6 }
 0x81c   :  { %4291 = vmatmul.msk.f32.gmra.mxu0 %vm1826_vm14, %v2029_v8  ;;  %v2171_v12 = vpop.f32.mrf.mxu2  ;;  %4261 = vmatmul.msk.f32.gmra.mxu3 %vm1826_vm14, %v1741_v9 }
 0x81e   :  { %4254 = vmatmul.msk.f32.gmra.mxu1 %vm1826_vm14, %v1825_v10 }
 0x824   :  { %4292 = vmatmul.msk.f32.gmra.mxu0 %vm1826_vm14, %v2030_v13  ;;  %v2174_v15 = vpop.f32.mrf.mxu2  ;;  %4262 = vmatmul.msk.f32.gmra.mxu3 %vm1826_vm14, %v1742_v14 }
 0x82c   :  { %4293 = vmatmul.msk.f32.gmra.mxu0 %vm1826_vm14, %v2031_v16  ;;  %v2176_v17 = vpop.f32.mrf.mxu2 }
 0x82d   :  { %4323 = vmatpush.msk.msra.mxu1 %vm1848_vm13, %v2176_v17 }
 0x82f   :  { %2224 = vmatpush.msra.mxu1 %v2174_v15 }
 0x831   :  { %2225 = vmatpush.msra.mxu1 %v2171_v12 }
 0x833   :  { %2226 = vmatpush.msra.mxu1 %v2169_v7 }
 0x834   :  { %4294 = vmatmul.msk.f32.gmra.mxu0 %vm1826_vm14, %v2032_v18  ;;  %4324 = vmatmul.msk.f32.vlgmr.msra.gmra.mxu1 %vm1826_vm14, %v2180_v19 }
 0x83c   :  { %4295 = vmatmul.msk.f32.gmra.mxu0 %vm1826_vm14, %v2033_v21  ;;  %4325 = vmatmul.msk.f32.gmra.mxu1 %vm1826_vm14, %v2181_v22 }
 0x844   :  { %4296 = vmatmul.msk.f32.gmra.mxu0 %vm1826_vm14, %v2034_v23  ;;  %4326 = vmatmul.msk.f32.gmra.mxu1 %vm1826_vm14, %v2182_v24 }
 0x84c   :  { %4327 = vmatmul.msk.f32.gmra.mxu1 %vm1826_vm14, %v2183_v25 }
 0x854   :  { %4328 = vmatmul.msk.f32.gmra.mxu1 %vm1826_vm14, %v2184_v27 }
 0x85c   :  { %4329 = vmatmul.msk.f32.gmra.mxu1 %vm1826_vm14, %v2185_v28 }
 0x864   :  { %4330 = vmatmul.msk.f32.gmra.mxu1 %vm1826_vm14, %v2186_v29 }
 0x86b   :  { %v1869_v30 = vpop.f32.mrf.mxu1 }
 0x873   :  { %v1872_v31 = vpop.f32.mrf.mxu1 }
 0x877   :  { %v1931_v43 = vpop.f32.mrf.mxu3 }
 0x878   :  { %v1932_v49 = vadd.f32 %v1931_v43, %v1869_v30 }
 0x87b   :  { %v1875_v20 = vpop.f32.mrf.mxu1 }
 0x87f   :  { %v1934_v47 = vpop.f32.mrf.mxu3 }
 0x880   :  { %v1935_v56 = vadd.f32 %v1934_v47, %v1872_v31 }
 0x883   :  { %v1878_v35 = vpop.f32.mrf.mxu1 }
 0x887   :  { %v1937_v54 = vpop.f32.mrf.mxu3 }
 0x888   :  { %v1938_v62 = vadd.f32 %v1937_v54, %v1875_v20 }
 0x88b   :  { %v1881_v51 = vpop.f32.mrf.mxu1 }
 0x88f   :  { %v1940_v61 = vpop.f32.mrf.mxu3 }
 0x890   :  { %v1941_v3 = vadd.f32 %v1940_v61, %v1878_v35 }
 0x891   :  { %v2076_v44 = vpop.f32.mrf.mxu0 }
 0x892   :  { %v2097_v50 = vadd.f32 %v2076_v44, %v1932_v49 }
 0x893   :  { %v1884_v57 = vpop.f32.mrf.mxu1 }
 0x897   :  { %v1943_v4 = vpop.f32.mrf.mxu3 }
 0x898   :  { %v1944_v9 = vadd.f32 %v1943_v4, %v1881_v51 }
 0x899   :  { %v2079_v48 = vpop.f32.mrf.mxu0 }
 0x89a   :  { %v2098_v58 = vadd.f32 %v2079_v48, %v1935_v56 }
 0x89b   :  { %v1887_v46 = vpop.f32.mrf.mxu1 }
 0x89f   :  { %v1946_v12 = vpop.f32.mrf.mxu3 }
 0x8a0   :  { %v1947_v16 = vadd.f32 %v1946_v12, %v1884_v57  ;;  %v2501_v12 = vld [vmem:[#allocation16 + $0x60] sm:$0xff] }
 0x8a1   :  { %v2082_v55 = vpop.f32.mrf.mxu0 }
 0x8a2   :  { %v2099_v0 = vadd.f32 %v2082_v55, %v1938_v62 }
 0x8a7   :  { %v1949_v21 = vpop.f32.mrf.mxu3 }
 0x8a8   :  { %v1950_v23 = vadd.f32 %v1949_v21, %v1887_v46 }
 0x8a9   :  { %v2085_v63 = vpop.f32.mrf.mxu0 }
 0x8aa   :  { %v2100_v5 = vadd.f32 %v2085_v63, %v1941_v3 }
 0x8b1   :  { %v2228_v52 = vpop.f32.mrf.mxu1  ;;  %v2088_v6 = vpop.f32.mrf.mxu0 }
 0x8b2   :  { %v5558_v53 = vadd.f32 %v2228_v52, %v2097_v50  ;;  %v2101_v10 = vadd.f32 %v2088_v6, %v1944_v9 }
 0x8b4   :  { %4331 = vmatmul.msk.f32.vlgmr.msra.gmra.mxu3 %vm1500_vm8, %v5558_v53 }
 0x8b9   :  { %v2231_v59 = vpop.f32.mrf.mxu1  ;;  %v2091_v15 = vpop.f32.mrf.mxu0 }
 0x8ba   :  { %v5562_v60 = vadd.f32 %v2231_v59, %v2098_v58  ;;  %v2102_v17 = vadd.f32 %v2091_v15, %v1947_v16  ;;  %v2539_v16 = vunpack.c.l.b16 %v2501_v12 }
 0x8bc   :  { %4332 = vmatmul.msk.f32.gmra.mxu3 %vm1500_vm8, %v5562_v60 }
 0x8c1   :  { %v2234_v1 = vpop.f32.mrf.mxu1  ;;  %v2094_v22 = vpop.f32.mrf.mxu0 }
 0x8c2   :  { %v5566_v2 = vadd.f32 %v2234_v1, %v2099_v0  ;;  %v2103_v24 = vadd.f32 %v2094_v22, %v1950_v23  ;;  %v2553_v23 = vpack.c.b16 %v2539_v16, %v2539_v16 }
 0x8c4   :  { %4333 = vmatmul.msk.f32.gmra.mxu3 %vm1500_vm8, %v5566_v2 }
 0x8c9   :  { %v2237_v7 = vpop.f32.mrf.mxu1 }
 0x8ca   :  { %v5570_v8 = vadd.f32 %v2237_v7, %v2100_v5 }
 0x8cc   :  { %4334 = vmatmul.msk.f32.gmra.mxu3 %vm1500_vm8, %v5570_v8 }
 0x8d1   :  { %v2240_v13 = vpop.f32.mrf.mxu1 }
 0x8d2   :  { %v5574_v14 = vadd.f32 %v2240_v13, %v2101_v10  ;;  %v5616_v13 = vld [vmem:[#allocation16 + $0xc8] sm:$0xff] }
 0x8d4   :  { %4335 = vmatmul.msk.f32.gmra.mxu3 %vm1500_vm8, %v5574_v14 }
 0x8d9   :  { %v2243_v18 = vpop.f32.mrf.mxu1 }
 0x8da   :  { %v5578_v19 = vadd.f32 %v2243_v18, %v2102_v17  ;;  %v2540_v17 = vunpack.c.h.b16 %v2501_v12  ;;  %v2705_v18 = vunpack.c.l.b16 %v5616_v13  ;;  %v4780_v12 = vld [vmem:[#allocation16 + $0x24] sm:$0xf0] }
 0x8dc   :  { %4336 = vmatmul.msk.f32.gmra.mxu3 %vm1500_vm8, %v5578_v19 }
 0x8e1   :  { %v2246_v25 = vpop.f32.mrf.mxu1 }
 0x8e2   :  { %v5582_v27 = vadd.f32 %v2246_v25, %v2103_v24  ;;  %v2554_v24 = vpack.c.b16 %v2540_v17, %v2540_v17  ;;  %v2719_v25 = vpack.c.b16 %v2705_v18, %v2705_v18  ;;  %v4365_v18 = vld [vmem:[#allocation16 + $0x28] sm:$0xf0] }
 0x8e4   :  { %4337 = vmatmul.msk.f32.gmra.mxu3 %vm1500_vm8, %v5582_v27 }
 0x937   :  { %v2307_v28 = vpop.f32.mrf.mxu3 }
 0x938   :  { %v2328_v33 = vsel %vm1500_vm8, %v2307_v28, 0.0 }
 0x93f   :  { %v2310_v29 = vpop.f32.mrf.mxu3 }
 0x940   :  { %v2329_v11 = vsel %vm1500_vm8, %v2310_v29, 0.0 }
 0x941   :  { %v2330_v39 = vadd.f32 %v2329_v11, %v2328_v33  ;;  %v2734_v11 = vsel %vm1062_vm6, %v2719_v25, 0 }
 0x942   :  { %2740 = vmatpush.bf16.msra.mxu2 %v2734_v11  ;;  %4825 = vmatpush.bf16.msrb.mxu3 %v2734_v11  ;;  %v4357_v11 = vld [vmem:[#allocation16 + $0x18] sm:$0xf0] }
 0x947   :  { %v2313_v30 = vpop.f32.mrf.mxu3 }
 0x948   :  { %v2331_v20 = vsel %vm1500_vm8, %v2313_v30, 0.0 }
 0x949   :  { %v2332_v34 = vadd.f32 %v2331_v20, %v2330_v39  ;;  %v4387_v39 = vld [vmem:[#allocation16 + $0x50] sm:$0xf] }
 0x94f   :  { %v2316_v31 = vpop.f32.mrf.mxu3 }
 0x950   :  { %v2333_v26 = vsel %vm1500_vm8, %v2316_v31, 0.0  ;;  %v2580_v31 = vsel %vm1062_vm6, %v2553_v23, 0  ;;  %v4792_v23 = vld [vmem:[#allocation16 + $0x8c] sm:$0xf0] }
 0x951   :  { %v2334_v36 = vadd.f32 %v2333_v26, %v2332_v34  ;;  %2586 = vmatpush.bf16.msrb.mxu0 %v2580_v31  ;;  %v4785_v26 = vld [vmem:[#allocation16 + $0x54] sm:$0xf] }
 0x957   :  { %v2319_v32 = vpop.f32.mrf.mxu3 }
 0x958   :  { %v2335_v35 = vsel %vm1500_vm8, %v2319_v32, 0.0  ;;  %v2583_v32 = vsel %vm1062_vm6, %v2554_v24, 0 }
 0x959   :  { %v2336_v38 = vadd.f32 %v2335_v35, %v2334_v36  ;;  %2614 = vmatpush.bf16.msrb.mxu1 %v2583_v32  ;;  %v4389_v36 = vld [vmem:[#allocation16 + $0x58] sm:$0xf0] }
 0x95f   :  { %v2322_v45 = vpop.f32.mrf.mxu3 }
 0x960   :  { %v2337_v37 = vsel %vm1500_vm8, %v2322_v45, 0.0  ;;  %v4786_v45 = vld [vmem:[#allocation16 + $0x54] sm:$0xf0] }
 0x961   :  { %v2338_v40 = vadd.f32 %v2337_v37, %v2336_v38  ;;  %v4388_v35 = vor.u32 %v4786_v45, %v4387_v39  ;;  %v4443_v37 = vld [vmem:[#allocation16 + $0xb8] sm:$0xf]  ;;  %v4798_v38 = vld [vmem:[#allocation16 + $0xbc] sm:$0xf0] }
 0x962   :  { %v4790_v39 = vld [vmem:[#allocation16 + $0x7c] sm:$0xf0] }
 0x963   :  { %2587 = vmatpush.bf16.msrb.mxu0 %v4388_v35  ;;  %v4347_v45 = vld [vmem:[#allocation16] sm:$0xf] }
 0x967   :  { %v2325_v41 = vpop.f32.mrf.mxu3 }
 0x968   :  { %v2340_v42 = vsel %vm2339_vm15, %v2325_v41, 0.0  ;;  %v4392_v41 = vor.u32 %v4785_v26, %v4389_v36  ;;  %v4776_v26 = vld [vmem:[#allocation16 + $0x4] sm:$0xf0] }
 0x969   :  { %v2341_v51 = vadd.f32 %v2340_v42, %v2338_v40  ;;  %v4444_v42 = vor.u32 %v4798_v38, %v4443_v37  ;;  %v4348_v36 = vor.u32 %v4776_v26, %v4347_v45  ;;  %v4775_v37 = vld [vmem:[#allocation16 + $0x4] sm:$0xf]  ;;  %v4349_v38 = vld [vmem:[#allocation16 + $0x8] sm:$0xf0]  ;;  %v4405_v26 = vld [vmem:[#allocation16 + $0x70] sm:$0xf0] }
 0x96a   :  { %2615 = vmatpush.bf16.msrb.mxu1 %v4392_v41  ;;  %v4352_v41 = vor.u32 %v4775_v37, %v4349_v38  ;;  %v4787_v45 = vld [vmem:[#allocation16 + $0x6c] sm:$0xf] }
 0x96b   :  { %v2342_v57 = vrot.slane %v2341_v51, 4  ;;  %2741 = vmatpush.bf16.msra.mxu2 %v4444_v42  ;;  %4826 = vmatpush.bf16.msrb.mxu3 %v4444_v42  ;;  %v4788_v42 = vld [vmem:[#allocation16 + $0x6c] sm:$0xf0] }
 0x96d   :  { %v2343_v43 = vadd.f32 %v2342_v57, %v2341_v51  ;;  %v4379_v57 = vld [vmem:[#allocation16 + $0x40] sm:$0xf] }
 0x96f   :  { %v2344_v44 = vrot.slane %v2343_v43, 2 }
 0x971   :  { %v2345_v46 = vadd.f32 %v2344_v44, %v2343_v43  ;;  %v4784_v43 = vld [vmem:[#allocation16 + $0x44] sm:$0xf0]  ;;  %v4783_v44 = vld [vmem:[#allocation16 + $0x44] sm:$0xf] }
 0x973   :  { %v2346_v47 = vrot.slane %v2345_v46, 1 }
 0x975   :  { %v2347_v48 = vadd.f32 %v2346_v47, %v2345_v46 }
 0x977   :  { %v5593_v49 = vmul.f32 0.000739645, %v2347_v48  ;;  %v4380_v48 = vor.u32 %v4784_v43, %v4379_v57 }
 0x979   :  { %v2349_v50 = vsub.f32 %v5558_v53, %v5593_v49  ;;  %v2350_v54 = vsub.f32 %v5562_v60, %v5593_v49  ;;  %v2351_v56 = vsub.f32 %v5566_v2, %v5593_v49  ;;  %v2352_v59 = vsub.f32 %v5570_v8, %v5593_v49  ;;  %2588 = vmatpush.bf16.msrb.mxu0 %v4380_v48 }
 0x97a   :  { %v2353_v62 = vsub.f32 %v5574_v14, %v5593_v49  ;;  %v2354_v0 = vsub.f32 %v5578_v19, %v5593_v49  ;;  %v2355_v3 = vsub.f32 %v5582_v27, %v5593_v49 }
 0x97b   :  { %v2356_v52 = vmul.f32 %v2349_v50, %v2349_v50  ;;  %v2357_v55 = vmul.f32 %v2350_v54, %v2350_v54  ;;  %v2358_v58 = vmul.f32 %v2351_v56, %v2351_v56  ;;  %v2359_v61 = vmul.f32 %v2352_v59, %v2352_v59  ;;  %v4381_v50 = vld [vmem:[#allocation16 + $0x48] sm:$0xf0]  ;;  %v4796_v54 = vld [vmem:[#allocation16 + $0xac] sm:$0xf0] }
 0x97c   :  { %v2360_v63 = vmul.f32 %v2353_v62, %v2353_v62  ;;  %v2361_v1 = vmul.f32 %v2354_v0, %v2354_v0  ;;  %v2362_v4 = vmul.f32 %v2355_v3, %v2355_v3  ;;  %v4384_v56 = vor.u32 %v4783_v44, %v4381_v50  ;;  %v4782_v62 = vld [vmem:[#allocation16 + $0x34] sm:$0xf0]  ;;  %v4373_v3 = vld [vmem:[#allocation16 + $0x38] sm:$0xf0] }
 0x97d   :  { %4338 = vmatmul.msk.f32.vlgmr.msrb.gmra.mxu2 %vm1500_vm8, %v2356_v52  ;;  %v4435_v52 = vld [vmem:[#allocation16 + $0xa8] sm:$0xf] }
 0x97e   :  { %2616 = vmatpush.bf16.msrb.mxu1 %v4384_v56  ;;  %v2706_v56 = vunpack.c.h.b16 %v5616_v13 }
 0x985   :  { %4339 = vmatmul.msk.f32.gmra.mxu2 %vm1500_vm8, %v2357_v55 }
 0x98d   :  { %4340 = vmatmul.msk.f32.gmra.mxu2 %vm1500_vm8, %v2358_v58  ;;  %v4436_v58 = vor.u32 %v4796_v54, %v4435_v52  ;;  %v2442_v52 = vld [vmem:[%s6127_s14] sm:$0x1] }
 0x98f   :  { %2742 = vmatpush.bf16.msra.mxu2 %v4436_v58  ;;  %4827 = vmatpush.bf16.msrb.mxu3 %v4436_v58 }
 0x995   :  { %4341 = vmatmul.msk.f32.gmra.mxu2 %vm1500_vm8, %v2359_v61  ;;  %v4371_v61 = vld [vmem:[#allocation16 + $0x30] sm:$0xf] }
 0x99d   :  { %4342 = vmatmul.msk.f32.gmra.mxu2 %vm1500_vm8, %v2360_v63  ;;  %v4781_v63 = vld [vmem:[#allocation16 + $0x34] sm:$0xf] }
 0x9a5   :  { %4343 = vmatmul.msk.f32.gmra.mxu2 %vm1500_vm8, %v2361_v1  ;;  %v4372_v1 = vor.u32 %v4782_v62, %v4371_v61  ;;  %v2720_v61 = vpack.c.b16 %v2706_v56, %v2706_v56  ;;  %v4797_v62 = vld [vmem:[#allocation16 + $0xbc] sm:$0xf] }
 0x9a7   :  { %2589 = vmatpush.bf16.msrb.mxu0 %v4372_v1 }
 0x9ad   :  { %4344 = vmatmul.msk.f32.gmra.mxu2 %vm1500_vm8, %v2362_v4  ;;  %v4427_v4 = vld [vmem:[#allocation16 + $0x98] sm:$0xf] }
 0xa00   :  { %v2401_v5 = vpop.f32.mrf.mxu2 }
 0xa01   :  { %v2422_v21 = vsel %vm1500_vm8, %v2401_v5, 0.0  ;;  %v4376_v5 = vor.u32 %v4781_v63, %v4373_v3  ;;  %v4445_v63 = vld [vmem:[#allocation16 + $0xc0] sm:$0xf0]  ;;  %v2737_v3 = vsel %vm1062_vm6, %v2720_v61, 0 }
 0xa03   :  { %2617 = vmatpush.bf16.msrb.mxu1 %v4376_v5  ;;  %v4448_v5 = vor.u32 %v4797_v62, %v4445_v63 }
 0xa08   :  { %v2404_v6 = vpop.f32.mrf.mxu2 }
 0xa09   :  { %v2423_v15 = vsel %vm1500_vm8, %v2404_v6, 0.0  ;;  %v4794_v6 = vld [vmem:[#allocation16 + $0x9c] sm:$0xf0] }
 0xa0a   :  { %v2424_v28 = vadd.f32 %v2423_v15, %v2422_v21  ;;  %v4779_v15 = vld [vmem:[#allocation16 + $0x24] sm:$0xf]  ;;  %v4419_v21 = vld [vmem:[#allocation16 + $0x88] sm:$0xf] }
 0xa0b   :  { %v4420_v25 = vor.u32 %v4792_v23, %v4419_v21 }
 0xa10   :  { %v2407_v7 = vpop.f32.mrf.mxu2 }
 0xa11   :  { %v2425_v22 = vsel %vm1500_vm8, %v2407_v7, 0.0 }
 0xa12   :  { %v2426_v33 = vadd.f32 %v2425_v22, %v2424_v28  ;;  %v4368_v22 = vor.u32 %v4779_v15, %v4365_v18  ;;  %v4355_v28 = vld [vmem:[#allocation16 + $0x10] sm:$0xf] }
 0xa14   :  { %2618 = vmatpush.bf16.msrb.mxu1 %v4368_v22 }
 0xa18   :  { %v2410_v9 = vpop.f32.mrf.mxu2 }
 0xa19   :  { %v2427_v30 = vsel %vm1500_vm8, %v2410_v9, 0.0  ;;  %v4428_v9 = vor.u32 %v4794_v6, %v4427_v4  ;;  %v4795_v6 = vld [vmem:[#allocation16 + $0xac] sm:$0xf] }
 0xa1a   :  { %v2428_v34 = vadd.f32 %v2427_v30, %v2426_v33  ;;  %v4777_v30 = vld [vmem:[#allocation16 + $0x14] sm:$0xf]  ;;  %v4411_v33 = vld [vmem:[#allocation16 + $0x78] sm:$0xf] }
 0xa1b   :  { %2743 = vmatpush.bf16.msra.mxu2 %v4428_v9  ;;  %4828 = vmatpush.bf16.msrb.mxu3 %v4428_v9  ;;  %v4412_v35 = vor.u32 %v4790_v39, %v4411_v33 }
 0xa1f   :  { %2744 = vmatpush.bf16.msra.mxu2 %v4420_v25  ;;  %4829 = vmatpush.bf16.msrb.mxu3 %v4420_v25  ;;  %v4793_v25 = vld [vmem:[#allocation16 + $0x9c] sm:$0xf] }
 0xa20   :  { %v2413_v10 = vpop.f32.mrf.mxu2 }
 0xa21   :  { %v2429_v20 = vsel %vm1500_vm8, %v2413_v10, 0.0  ;;  %v4363_v10 = vld [vmem:[#allocation16 + $0x20] sm:$0xf] }
 0xa22   :  { %v2430_v51 = vadd.f32 %v2429_v20, %v2428_v34  ;;  %v4364_v17 = vor.u32 %v4780_v12, %v4363_v10  ;;  %v4360_v20 = vor.u32 %v4777_v30, %v4357_v11  ;;  %v4789_v30 = vld [vmem:[#allocation16 + $0x7c] sm:$0xf] }
 0xa23   :  { %2745 = vmatpush.bf16.msra.mxu2 %v4412_v35  ;;  %4830 = vmatpush.bf16.msrb.mxu3 %v4412_v35 }
 0xa24   :  { %2590 = vmatpush.bf16.msrb.mxu0 %v4364_v17  ;;  %2619 = vmatpush.bf16.msrb.mxu1 %v4360_v20 }
 0xa28   :  { %v2416_v29 = vpop.f32.mrf.mxu2  ;;  %2620 = vmatpush.bf16.msrb.mxu1 %v4352_v41 }
 0xa29   :  { %v2431_v40 = vsel %vm1500_vm8, %v2416_v29, 0.0  ;;  %v4778_v29 = vld [vmem:[#allocation16 + $0x14] sm:$0xf0] }
 0xa2a   :  { %v2432_v46 = vadd.f32 %v2431_v40, %v2430_v51  ;;  %v4356_v32 = vor.u32 %v4778_v29, %v4355_v28  ;;  %v4403_v40 = vld [vmem:[#allocation16 + $0x68] sm:$0xf]  ;;  %v4429_v28 = vld [vmem:[#allocation16 + $0xa0] sm:$0xf0] }
 0xa2b   :  { %v4404_v57 = vor.u32 %v4788_v42, %v4403_v40 }
 0xa2c   :  { %2591 = vmatpush.bf16.msrb.mxu0 %v4356_v32 }
 0xa2d   :  { %2746 = vmatpush.bf16.msra.mxu2 %v4404_v57  ;;  %4831 = vmatpush.bf16.msrb.mxu3 %v4404_v57 }
 0xa30   :  { %v2419_v47 = vpop.f32.mrf.mxu2  ;;  %2592 = vmatpush.bf16.msrb.mxu0 %v4348_v36  ;;  %v4408_v36 = vor.u32 %v4787_v45, %v4405_v26  ;;  %v4810_v45 = vld [vmem:[#allocation16 + $0x124] sm:$0xf0] }
 0xa31   :  { %v2433_v55 = vsel %vm2339_vm15, %v2419_v47, 0.0  ;;  %2768 = vmatpush.bf16.msrb.mxu2 %v2737_v3 }
 0xa32   :  { %v2434_v59 = vadd.f32 %v2433_v55, %v2432_v46 }
 0xa34   :  { %v2435_v0 = vrot.slane %v2434_v59, 4 }
 0xa35   :  { %2769 = vmatpush.bf16.msrb.mxu2 %v4448_v5 }
 0xa36   :  { %v2436_v7 = vadd.f32 %v2435_v0, %v2434_v59  ;;  %v2455_v59 = vld [vmem:[%s6128_s15] sm:$0x1] }
 0xa38   :  { %v2437_v16 = vrot.slane %v2436_v7, 2 }
 0xa3a   :  { %v2438_v24 = vadd.f32 %v2437_v16, %v2436_v7  ;;  %v4437_v7 = vld [vmem:[#allocation16 + $0xb0] sm:$0xf0] }
 0xa3c   :  { %v2439_v31 = vrot.slane %v2438_v24, 1 }
 0xa3e   :  { %v2440_v34 = vadd.f32 %v2439_v31, %v2438_v24  ;;  %v4413_v31 = vld [vmem:[#allocation16 + $0x80] sm:$0xf0] }
 0xa3f   :  { %v4416_v39 = vor.u32 %v4789_v30, %v4413_v31  ;;  %v2646_v30 = vld [vmem:[#allocation18 + $0x28] sm:$0xff] }
 0xa40   :  { %v2441_v51 = vmul.f32 0.000739645, %v2440_v34 }
 0xa42   :  { %v2443_v43 = vadd.f32 1e-05, %v2441_v51 }
 0xa44   :  { %4851 = vrsqrt.f32 %v2443_v43  ;;  %vm2450_vm1 = vweird.f32 %v2443_v43 }
 0xa4a   :  { %v4852_v44 = vpop.eup %4851 }
 0xa4b   :  { %v2445_v46 = vmul.f32 %v4852_v44, %v2443_v43  ;;  %vm2451_vm0 = vweird.f32 %v4852_v44 }
 0xa4c   :  { %vm2452_vm2 = vmor %vm2450_vm1, %vm2451_vm0 }
 0xa4d   :  { %v2446_v47 = vmul.f32 %v4852_v44, %v2445_v46 }
 0xa4f   :  { %v2447_v48 = vmul.f32 0.5, %v2446_v47 }
 0xa51   :  { %v2448_v50 = vsub.f32 1.5, %v2447_v48 }
 0xa53   :  { %v2449_v54 = vmul.f32 %v4852_v44, %v2448_v50 }
 0xa55   :  { %v2453_v55 = vsel %vm2452_vm2, %v4852_v44, %v2449_v54 }
 0xa56   :  { %v2454_v58 = vmul.f32 %v2453_v55, %v2442_v52 }
 0xa58   :  { %v2456_v0 = vmul.f32 %v2454_v58, %v5593_v49  ;;  %v2459_v1 = vperm.slane %v2454_v58, 0  ;;  %v4440_v49 = vor.u32 %v4795_v6, %v4437_v7 }
 0xa5a   :  { %v2457_v4 = vsub.f32 %v2455_v59, %v2456_v0  ;;  %v2461_v13 = vmul.f32 %v2459_v1, %v5558_v53  ;;  %v2462_v10 = vmul.f32 %v2459_v1, %v5562_v60  ;;  %v2467_v12 = vmul.f32 %v2459_v1, %v5582_v27  ;;  %2770 = vmatpush.bf16.msrb.mxu2 %v4440_v49  ;;  %v4791_v60 = vld [vmem:[#allocation16 + $0x8c] sm:$0xf]  ;;  %v4421_v27 = vld [vmem:[#allocation16 + $0x90] sm:$0xf0] }
 0xa5b   :  { %v4432_v53 = vor.u32 %v4793_v25, %v4429_v28  ;;  %v4424_v29 = vor.u32 %v4791_v60, %v4421_v27  ;;  %v2463_v32 = vmul.f32 %v2459_v1, %v5566_v2  ;;  %v2464_v11 = vmul.f32 %v2459_v1, %v5570_v8  ;;  %v2643_v49 = vld [vmem:[#allocation18 + $0x10] sm:$0xff]  ;;  %v5714_v28 = vld [vmem:[#allocation18 + $0x88] sm:$0xff] }
 0xa5c   :  { %v2469_v9 = vperm.slane %v2457_v4, 0  ;;  %v2465_v2 = vmul.f32 %v2459_v1, %v5574_v14  ;;  %v2466_v8 = vmul.f32 %v2459_v1, %v5578_v19  ;;  %v5720_v27 = vld [vmem:[#allocation18 + $0x90] sm:$0xff] }
 0xa5e   :  { %v2471_v15 = vadd.f32 %v2469_v9, %v2461_v13  ;;  %v2472_v16 = vadd.f32 %v2469_v9, %v2462_v10  ;;  %v2477_v17 = vadd.f32 %v2469_v9, %v2467_v12  ;;  %2771 = vmatpush.bf16.msrb.mxu2 %v4432_v53  ;;  %v2473_v33 = vadd.f32 %v2469_v9, %v2463_v32  ;;  %v2641_v13 = vld [vmem:[#allocation18] sm:$0xff]  ;;  %v5696_v12 = vld [vmem:[#allocation18 + $0x70] sm:$0xff] }
 0xa5f   :  { %v2474_v20 = vadd.f32 %v2469_v9, %v2464_v11  ;;  %v2475_v38 = vadd.f32 %v2469_v9, %v2465_v2  ;;  %v2476_v40 = vadd.f32 %v2469_v9, %v2466_v8  ;;  %v5690_v9 = vld [vmem:[#allocation18 + $0x68] sm:$0xff]  ;;  %v2645_v53 = vld [vmem:[#allocation18 + $0x20] sm:$0xff] }
 0xa60   :  { %v2478_v18 = vmax.f32 %v2471_v15, 0.0  ;;  %v2479_v21 = vmax.f32 %v2472_v16, 0.0  ;;  %v2484_v22 = vmax.f32 %v2477_v17, 0.0  ;;  %v2480_v34 = vmax.f32 %v2473_v33, 0.0  ;;  %v2642_v15 = vld [vmem:[#allocation18 + $0x8] sm:$0xff]  ;;  %v5702_v17 = vld [vmem:[#allocation18 + $0x78] sm:$0xff] }
 0xa61   :  { %v2481_v35 = vmax.f32 %v2474_v20, 0.0  ;;  %v2482_v41 = vmax.f32 %v2475_v38, 0.0  ;;  %v2483_v42 = vmax.f32 %v2476_v40, 0.0  ;;  %v5731_v20 = vld [vmem:[#allocation18 + $0x98] sm:$0xff]  ;;  %v5737_v38 = vld [vmem:[#allocation18 + $0xa0] sm:$0xff] }
 0xa62   :  { %v5641_v23 = vpack.c.bf16 %v2479_v21, %v2478_v18  ;;  %v5643_v24 = vpack.c.bf16 %v2484_v22, %v2484_v22  ;;  %2772 = vmatpush.bf16.msrb.mxu2 %v4424_v29  ;;  %v5708_v21 = vld [vmem:[#allocation18 + $0x80] sm:$0xff]  ;;  %v2644_v22 = vld [vmem:[#allocation18 + $0x18] sm:$0xff]  ;;  %v5722_v29 = vld [vmem:[#allocation16 + $0x130] sm:$0xff] }
 0xa63   :  { %v5655_v37 = vpack.c.bf16 %v2481_v35, %v2480_v34  ;;  %v5665_v51 = vpack.c.bf16 %v2483_v42, %v2482_v41  ;;  %v3175_v31 = vunpack.c.l.b16 %v5722_v29  ;;  %v2647_v34 = vld [vmem:[#allocation18 + $0x30] sm:$0xff]  ;;  %v4539_v40 = vld [vmem:[#allocation16 + $0x100] sm:$0xf]  ;;  %v4806_v41 = vld [vmem:[#allocation16 + $0x104] sm:$0xf0] }
 0xa64   :  { %4393 = vmatmul.msk.bf16.vlgmr.msrb.gmra.mxu0 %vm1500_vm8, %v5641_v23  ;;  %4397 = vmatmul.msk.bf16.vlgmr.msrb.gmra.mxu1 %vm1500_vm8, %v5641_v23  ;;  %v4547_v35 = vld [vmem:[#allocation16 + $0x110] sm:$0xf]  ;;  %v4540_v42 = vor.u32 %v4806_v41, %v4539_v40  ;;  %v4607_v41 = vld [vmem:[#allocation16 + $0x148] sm:$0xf] }
 0xa65   :  { %4449 = vmatmul.msk.bf16.vlgmr.msra.gmra.mxu2 %vm1500_vm8, %v5641_v23  ;;  %4452 = vmatmul.msk.bf16.vlgmr.msrb.gmra.mxu3 %vm1500_vm8, %v5643_v24  ;;  %v3189_v32 = vpack.c.b16 %v3175_v31, %v3175_v31  ;;  %v4533_v31 = vld [vmem:[#allocation16 + $0xf8] sm:$0xf0] }
 0xa66   :  { %2773 = vmatpush.bf16.msrb.mxu2 %v4416_v39  ;;  %v4555_v39 = vld [vmem:[#allocation16 + $0x120] sm:$0xf] }
 0xa67   :  { %v3204_v33 = vsel %vm1062_vm6, %v3189_v32, 0  ;;  %v4556_v26 = vor.u32 %v4810_v45, %v4555_v39  ;;  %v4801_v39 = vld [vmem:[#allocation16 + $0xe4] sm:$0xf]  ;;  %v4525_v45 = vld [vmem:[#allocation16 + $0xe8] sm:$0xf0] }
 0xa6a   :  { %2774 = vmatpush.bf16.msrb.mxu2 %v4408_v36  ;;  %v4808_v36 = vld [vmem:[#allocation16 + $0x114] sm:$0xf0] }
 0xa6b   :  { %v4548_v2 = vor.u32 %v4808_v36, %v4547_v35  ;;  %v4816_v35 = vld [vmem:[#allocation16 + $0x15c] sm:$0xf0] }
 0xa74   :  { %4394 = vmatmul.msk.bf16.gmra.mxu0 %vm1500_vm8, %v5655_v37  ;;  %4398 = vmatmul.msk.bf16.gmra.mxu1 %vm1500_vm8, %v5655_v37 }
 0xa75   :  { %4450 = vmatmul.msk.bf16.gmra.mxu2 %vm1500_vm8, %v5655_v37 }
 0xa84   :  { %4395 = vmatmul.msk.bf16.gmra.mxu0 %vm1500_vm8, %v5665_v51  ;;  %4399 = vmatmul.msk.bf16.gmra.mxu1 %vm1500_vm8, %v5665_v51 }
 0xa85   :  { %4451 = vmatmul.msk.bf16.gmra.mxu2 %vm1500_vm8, %v5665_v51 }
 0xa94   :  { %4396 = vmatmul.msk.bf16.gmra.mxu0 %vm1500_vm8, %v5643_v24  ;;  %4400 = vmatmul.msk.bf16.gmra.mxu1 %vm1500_vm8, %v5643_v24 }
 0xa95   :  { %4453 = vmatmul.msk.bf16.vlgmr.msrb.gmra.mxu2 %vm1500_vm8, %v5641_v23 }
 0xaa5   :  { %4454 = vmatmul.msk.bf16.gmra.mxu2 %vm1500_vm8, %v5655_v37 }
 0xab5   :  { %4455 = vmatmul.msk.bf16.gmra.mxu2 %vm1500_vm8, %v5665_v51 }
 0xac5   :  { %4456 = vmatmul.msk.bf16.gmra.mxu2 %vm1500_vm8, %v5643_v24 }
 0xae1   :  { %v2594_v14 = vpop.f32.mrf.mxu0  ;;  %v2622_v19 = vpop.f32.mrf.mxu1 }
 0xae8   :  { %v2748_v57 = vpop.f32.mrf.mxu2  ;;  %v2763_v43 = vpop.f32.mrf.mxu3 }
 0xae9   :  { %4457 = vmatpush.msk.msra.mxu0 %vm1062_vm6, %v2763_v43  ;;  %v2596_v44 = vpop.f32.mrf.mxu0  ;;  %v2624_v46 = vpop.f32.mrf.mxu1 }
 0xaf0   :  { %v2750_v47 = vpop.f32.mrf.mxu2  ;;  %v2765_v48 = vpop.f32.mrf.mxu3 }
 0xaf1   :  { %v2599_v50 = vpop.f32.mrf.mxu0  ;;  %v2627_v52 = vpop.f32.mrf.mxu1 }
 0xaf8   :  { %v2753_v54 = vpop.f32.mrf.mxu2 }
 0xaf9   :  { %v2601_v55 = vpop.f32.mrf.mxu0  ;;  %v2629_v56 = vpop.f32.mrf.mxu1 }
 0xb00   :  { %v2755_v58 = vpop.f32.mrf.mxu2 }
 0xb01   :  { %v2604_v59 = vpop.f32.mrf.mxu0  ;;  %v2632_v61 = vpop.f32.mrf.mxu1 }
 0xb08   :  { %v2758_v62 = vpop.f32.mrf.mxu2 }
 0xb09   :  { %v2606_v63 = vpop.f32.mrf.mxu0  ;;  %v2634_v0 = vpop.f32.mrf.mxu1 }
 0xb10   :  { %v2760_v1 = vpop.f32.mrf.mxu2 }
 0xb11   :  { %2865 = vmatpush.msra.mxu0 %v2760_v1  ;;  %v2609_v3 = vpop.f32.mrf.mxu0  ;;  %v2637_v4 = vpop.f32.mrf.mxu1  ;;  %v2653_v1 = vld [vmem:[#allocation18 + $0x60] sm:$0xff] }
 0xb12   :  { %4485 = vmatpush.msk.msra.mxu3 %vm1062_vm6, %v2609_v3  ;;  %4499 = vmatpush.msk.msra.mxu2 %vm1062_vm6, %v2637_v4  ;;  %v3176_v3 = vunpack.c.h.b16 %v5722_v29 }
 0xb13   :  { %2866 = vmatpush.msra.mxu0 %v2758_v62  ;;  %v5770_v62 = vld [vmem:[#allocation18 + $0xc0] sm:$0xff] }
 0xb14   :  { %3022 = vmatpush.msra.mxu3 %v2606_v63  ;;  %3078 = vmatpush.msra.mxu2 %v2634_v0  ;;  %v2652_v63 = vld [vmem:[#allocation18 + $0x58] sm:$0xff]  ;;  %v5778_v0 = vld [vmem:[#allocation18 + $0xc8] sm:$0xff]  ;;  %v3190_v4 = vpack.c.b16 %v3176_v3, %v3176_v3 }
 0xb15   :  { %2867 = vmatpush.msra.mxu0 %v2755_v58  ;;  %v2650_v58 = vld [vmem:[#allocation18 + $0x48] sm:$0xff] }
 0xb16   :  { %3023 = vmatpush.msra.mxu3 %v2604_v59  ;;  %3079 = vmatpush.msra.mxu2 %v2632_v61  ;;  %v5762_v59 = vld [vmem:[#allocation18 + $0xb8] sm:$0xff]  ;;  %v2651_v61 = vld [vmem:[#allocation18 + $0x50] sm:$0xff] }
 0xb17   :  { %2868 = vmatpush.msra.mxu0 %v2753_v54  ;;  %v4800_v54 = vld [vmem:[#allocation16 + $0xd4] sm:$0xf0] }
 0xb18   :  { %v5688_v5 = vpop.f32.mrf.mxu2  ;;  %3024 = vmatpush.msra.mxu3 %v2601_v55  ;;  %3080 = vmatpush.msra.mxu2 %v2629_v56  ;;  %v5754_v56 = vld [vmem:[#allocation18 + $0xb0] sm:$0xff] }
 0xb19   :  { %2869 = vmatpush.msra.mxu0 %v2750_v47  ;;  %v2611_v6 = vpop.f32.mrf.mxu0  ;;  %v2639_v7 = vpop.f32.mrf.mxu1  ;;  %v4802_v47 = vld [vmem:[#allocation16 + $0xe4] sm:$0xf0] }
 0xb1a   :  { %3025 = vmatpush.msra.mxu3 %v2599_v50  ;;  %3081 = vmatpush.msra.mxu2 %v2627_v52  ;;  %v2649_v50 = vld [vmem:[#allocation18 + $0x40] sm:$0xff]  ;;  %v4515_v52 = vld [vmem:[#allocation16 + $0xd0] sm:$0xf]  ;;  %v5788_v6 = vld [vmem:[#allocation16 + $0x198] sm:$0xff] }
 0xb1b   :  { %2870 = vmatpush.msra.mxu0 %v2748_v57  ;;  %v4804_v57 = vld [vmem:[#allocation16 + $0xf4] sm:$0xf0]  ;;  %v4516_v55 = vor.u32 %v4800_v54, %v4515_v52  ;;  %v4809_v7 = vld [vmem:[#allocation16 + $0x124] sm:$0xf]  ;;  %v3514_v52 = vunpack.c.h.b16 %v5788_v6 }
 0xb1c   :  { %4458 = vmatmul.msk.f32.vlgmr.msra.gmra.mxu0 %vm2809_vm3, %v5690_v9  ;;  %3026 = vmatpush.msra.mxu3 %v2596_v44  ;;  %v5746_v44 = vld [vmem:[#allocation18 + $0xa8] sm:$0xff] }
 0xb1d   :  { %3082 = vmatpush.msra.mxu2 %v2624_v46  ;;  %3210 = vmatpush.bf16.msrb.mxu0 %v3204_v33  ;;  %v4523_v46 = vld [vmem:[#allocation16 + $0xe0] sm:$0xf]  ;;  %v4818_v33 = vld [vmem:[#allocation16 + $0x16c] sm:$0xf0]  ;;  %v3528_v54 = vpack.c.b16 %v3514_v52, %v3514_v52 }
 0xb1e   :  { %3027 = vmatpush.msra.mxu3 %v2594_v14  ;;  %v2648_v14 = vld [vmem:[#allocation18 + $0x38] sm:$0xff]  ;;  %v4524_v48 = vor.u32 %v4802_v47, %v4523_v46 }
 0xb1f   :  { %3083 = vmatpush.msra.mxu2 %v2622_v19  ;;  %4486 = vmatmul.msk.f32.vlgmr.msra.gmra.mxu3 %vm2809_vm3, %v2641_v13  ;;  %v4531_v19 = vld [vmem:[#allocation16 + $0xf0] sm:$0xf] }
 0xb20   :  { %v2778_v10 = vpop.f32.mrf.mxu2  ;;  %4500 = vmatmul.msk.f32.vlgmr.msra.gmra.mxu2 %vm2809_vm3, %v2641_v13  ;;  %v4532_v43 = vor.u32 %v4804_v57, %v4531_v19  ;;  %v3513_v13 = vunpack.c.l.b16 %v5788_v6  ;;  %v4599_v19 = vld [vmem:[#allocation16 + $0x138] sm:$0xf]  ;;  %v4812_v57 = vld [vmem:[#allocation16 + $0x13c] sm:$0xf0] }
 0xb21   :  { %3211 = vmatpush.bf16.msrb.mxu0 %v4556_v26  ;;  %v4528_v26 = vor.u32 %v4801_v39, %v4525_v45 }
 0xb24   :  { %4459 = vmatmul.msk.f32.gmra.mxu0 %vm2809_vm3, %v5696_v12 }
 0xb25   :  { %3212 = vmatpush.bf16.msrb.mxu0 %v4548_v2  ;;  %v4799_v2 = vld [vmem:[#allocation16 + $0xd4] sm:$0xf] }
 0xb27   :  { %4487 = vmatmul.msk.f32.gmra.mxu3 %vm2809_vm3, %v2642_v15 }
 0xb28   :  { %v2781_v16 = vpop.f32.mrf.mxu2  ;;  %4501 = vmatmul.msk.f32.gmra.mxu2 %vm2809_vm3, %v2642_v15 }
 0xb29   :  { %3213 = vmatpush.bf16.msrb.mxu0 %v4540_v42  ;;  %v4814_v42 = vld [vmem:[#allocation16 + $0x14c] sm:$0xf0] }
 0xb2c   :  { %4460 = vmatmul.msk.f32.gmra.mxu0 %vm2809_vm3, %v5702_v17 }
 0xb2d   :  { %3214 = vmatpush.bf16.msrb.mxu0 %v4532_v43  ;;  %v4600_v43 = vor.u32 %v4812_v57, %v4599_v19 }
 0xb2f   :  { %4488 = vmatmul.msk.f32.gmra.mxu3 %vm2809_vm3, %v2643_v49 }
 0xb30   :  { %v2783_v18 = vpop.f32.mrf.mxu2  ;;  %4502 = vmatmul.msk.f32.gmra.mxu2 %vm2809_vm3, %v2643_v49 }
 0xb31   :  { %3215 = vmatpush.bf16.msrb.mxu0 %v4524_v48 }
 0xb34   :  { %4461 = vmatmul.msk.f32.gmra.mxu0 %vm2809_vm3, %v5708_v21 }
 0xb35   :  { %3216 = vmatpush.bf16.msrb.mxu0 %v4516_v55 }
 0xb37   :  { %4489 = vmatmul.msk.f32.gmra.mxu3 %vm2809_vm3, %v2644_v22 }
 0xb38   :  { %v2786_v25 = vpop.f32.mrf.mxu2  ;;  %4503 = vmatmul.msk.f32.gmra.mxu2 %vm2809_vm3, %v2644_v22 }
 0xb3c   :  { %4462 = vmatmul.msk.f32.gmra.mxu0 %vm2809_vm3, %v5714_v28 }
 0xb3f   :  { %4490 = vmatmul.msk.f32.gmra.mxu3 %vm2809_vm3, %v2645_v53 }
 0xb40   :  { %v2788_v60 = vpop.f32.mrf.mxu2  ;;  %4504 = vmatmul.msk.f32.gmra.mxu2 %vm2809_vm3, %v2645_v53 }
 0xb44   :  { %4463 = vmatmul.msk.f32.gmra.mxu0 %vm2809_vm3, %v5720_v27 }
 0xb47   :  { %4491 = vmatmul.msk.f32.gmra.mxu3 %vm2809_vm3, %v2646_v30 }
 0xb48   :  { %v2791_v11 = vpop.f32.mrf.mxu2  ;;  %4505 = vmatmul.msk.f32.gmra.mxu2 %vm2809_vm3, %v2646_v30  ;;  %v4803_v30 = vld [vmem:[#allocation16 + $0xf4] sm:$0xf] }
 0xb49   :  { %4471 = vmatpush.msk.msra.mxu1 %vm1062_vm6, %v2791_v11  ;;  %v4536_v32 = vor.u32 %v4803_v30, %v4533_v31  ;;  %v4623_v11 = vld [vmem:[#allocation16 + $0x168] sm:$0xf] }
 0xb4b   :  { %2921 = vmatpush.msra.mxu1 %v2788_v60  ;;  %v4631_v60 = vld [vmem:[#allocation16 + $0x178] sm:$0xf] }
 0xb4c   :  { %4464 = vmatmul.msk.f32.gmra.mxu0 %vm2809_vm3, %v5731_v20 }
 0xb4d   :  { %2922 = vmatpush.msra.mxu1 %v2786_v25  ;;  %v4805_v25 = vld [vmem:[#allocation16 + $0x104] sm:$0xf] }
 0xb4f   :  { %2923 = vmatpush.msra.mxu1 %v2783_v18  ;;  %4492 = vmatmul.msk.f32.gmra.mxu3 %vm2809_vm3, %v2647_v34  ;;  %v4639_v18 = vld [vmem:[#allocation16 + $0x188] sm:$0xf] }
 0xb50   :  { %v2793_v8 = vpop.f32.mrf.mxu2  ;;  %4506 = vmatmul.msk.f32.gmra.mxu2 %vm2809_vm3, %v2647_v34  ;;  %v4615_v34 = vld [vmem:[#allocation16 + $0x158] sm:$0xf] }
 0xb51   :  { %2924 = vmatpush.msra.mxu1 %v2781_v16  ;;  %v4807_v16 = vld [vmem:[#allocation16 + $0x114] sm:$0xf]  ;;  %v4616_v36 = vor.u32 %v4816_v35, %v4615_v34  ;;  %v4517_v8 = vld [vmem:[#allocation16 + $0xd8] sm:$0xf0] }
 0xb52   :  { %v4520_v40 = vor.u32 %v4799_v2, %v4517_v8 }
 0xb53   :  { %2925 = vmatpush.msra.mxu1 %v2778_v10 }
 0xb54   :  { %4465 = vmatmul.msk.f32.gmra.mxu0 %vm2809_vm3, %v5737_v38 }
 0xb55   :  { %2926 = vmatpush.msra.mxu1 %v5688_v5  ;;  %v3207_v5 = vsel %vm1062_vm6, %v3190_v4, 0  ;;  %v4817_v4 = vld [vmem:[#allocation16 + $0x16c] sm:$0xf] }
 0xb56   :  { %4472 = vmatmul.msk.f32.vlgmr.msra.gmra.mxu1 %vm2809_vm3, %v5690_v9  ;;  %v4557_v9 = vld [vmem:[#allocation16 + $0x128] sm:$0xf0] }
 0xb57   :  { %4493 = vmatmul.msk.f32.gmra.mxu3 %vm2809_vm3, %v2648_v14  ;;  %3238 = vmatpush.bf16.msrb.mxu1 %v3207_v5  ;;  %v4560_v10 = vor.u32 %v4809_v7, %v4557_v9  ;;  %v4625_v5 = vld [vmem:[#allocation16 + $0x170] sm:$0xf0]  ;;  %v4815_v9 = vld [vmem:[#allocation16 + $0x15c] sm:$0xf] }
 0xb58   :  { %4507 = vmatmul.msk.f32.gmra.mxu2 %vm2809_vm3, %v2648_v14  ;;  %v4608_v14 = vor.u32 %v4814_v42, %v4607_v41  ;;  %v4628_v6 = vor.u32 %v4817_v4, %v4625_v5 }
 0xb5b   :  { %3239 = vmatpush.bf16.msrb.mxu1 %v4560_v10 }
 0xb5c   :  { %4466 = vmatmul.msk.f32.gmra.mxu0 %vm2809_vm3, %v5746_v44 }
 0xb5e   :  { %4473 = vmatmul.msk.f32.gmra.mxu1 %vm2809_vm3, %v5696_v12  ;;  %v3527_v12 = vpack.c.b16 %v3513_v13, %v3513_v13  ;;  %v4617_v13 = vld [vmem:[#allocation16 + $0x160] sm:$0xf0] }
 0xb5f   :  { %4494 = vmatmul.msk.f32.gmra.mxu3 %vm2809_vm3, %v2649_v50 }
 0xb60   :  { %4508 = vmatmul.msk.f32.gmra.mxu2 %vm2809_vm3, %v2649_v50  ;;  %v3542_v15 = vsel %vm1062_vm6, %v3527_v12, 0  ;;  %v4620_v12 = vor.u32 %v4815_v9, %v4617_v13 }
 0xb61   :  { %3548 = vmatpush.bf16.msra.mxu0 %v3542_v15 }
 0xb64   :  { %4467 = vmatmul.msk.f32.gmra.mxu0 %vm2809_vm3, %v5754_v56 }
 0xb66   :  { %4474 = vmatmul.msk.f32.gmra.mxu1 %vm2809_vm3, %v5702_v17  ;;  %v4549_v17 = vld [vmem:[#allocation16 + $0x118] sm:$0xf0] }
 0xb67   :  { %4495 = vmatmul.msk.f32.gmra.mxu3 %vm2809_vm3, %v2650_v58  ;;  %v4552_v49 = vor.u32 %v4807_v16, %v4549_v17  ;;  %v4813_v16 = vld [vmem:[#allocation16 + $0x14c] sm:$0xf]  ;;  %v4609_v17 = vld [vmem:[#allocation16 + $0x150] sm:$0xf0] }
 0xb68   :  { %4509 = vmatmul.msk.f32.gmra.mxu2 %vm2809_vm3, %v2650_v58  ;;  %v4821_v58 = vld [vmem:[#allocation16 + $0x18c] sm:$0xf] }
 0xb69   :  { %3240 = vmatpush.bf16.msrb.mxu1 %v4552_v49  ;;  %v4612_v49 = vor.u32 %v4813_v16, %v4609_v17 }
 0xb6c   :  { %4468 = vmatmul.msk.f32.gmra.mxu0 %vm2809_vm3, %v5762_v59 }
 0xb6e   :  { %4475 = vmatmul.msk.f32.gmra.mxu1 %vm2809_vm3, %v5708_v21  ;;  %v4822_v21 = vld [vmem:[#allocation16 + $0x18c] sm:$0xf0] }
 0xb6f   :  { %4496 = vmatmul.msk.f32.gmra.mxu3 %vm2809_vm3, %v2651_v61  ;;  %v4640_v22 = vor.u32 %v4822_v21, %v4639_v18  ;;  %v4811_v18 = vld [vmem:[#allocation16 + $0x13c] sm:$0xf]  ;;  %v4601_v21 = vld [vmem:[#allocation16 + $0x140] sm:$0xf0] }
 0xb70   :  { %4510 = vmatmul.msk.f32.gmra.mxu2 %vm2809_vm3, %v2651_v61 }
 0xb71   :  { %3549 = vmatpush.bf16.msra.mxu0 %v4640_v22 }
 0xb74   :  { %4469 = vmatmul.msk.f32.gmra.mxu0 %vm2809_vm3, %v5770_v62 }
 0xb76   :  { %4476 = vmatmul.msk.f32.gmra.mxu1 %vm2809_vm3, %v5714_v28  ;;  %v4541_v28 = vld [vmem:[#allocation16 + $0x108] sm:$0xf0] }
 0xb77   :  { %4497 = vmatmul.msk.f32.gmra.mxu3 %vm2809_vm3, %v2652_v63  ;;  %v4544_v53 = vor.u32 %v4805_v25, %v4541_v28  ;;  %v4604_v28 = vor.u32 %v4811_v18, %v4601_v21 }
 0xb78   :  { %4511 = vmatmul.msk.f32.gmra.mxu2 %vm2809_vm3, %v2652_v63  ;;  %v4819_v63 = vld [vmem:[#allocation16 + $0x17c] sm:$0xf] }
 0xb79   :  { %3241 = vmatpush.bf16.msrb.mxu1 %v4544_v53 }
 0xb7c   :  { %4470 = vmatmul.msk.f32.gmra.mxu0 %vm2809_vm3, %v5778_v0 }
 0xb7d   :  { %3242 = vmatpush.bf16.msrb.mxu1 %v4536_v32 }
 0xb7e   :  { %4477 = vmatmul.msk.f32.gmra.mxu1 %vm2809_vm3, %v5720_v27  ;;  %v4820_v27 = vld [vmem:[#allocation16 + $0x17c] sm:$0xf0] }
 0xb7f   :  { %4498 = vmatmul.msk.f32.gmra.mxu3 %vm2809_vm3, %v2653_v1  ;;  %v4632_v29 = vor.u32 %v4820_v27, %v4631_v60 }
 0xb80   :  { %4512 = vmatmul.msk.f32.gmra.mxu2 %vm2809_vm3, %v2653_v1 }
 0xb81   :  { %3550 = vmatpush.bf16.msra.mxu0 %v4632_v29  ;;  %3243 = vmatpush.bf16.msrb.mxu1 %v4528_v26 }
 0xb84   :  { %4561 = vmatmul.msk.bf16.vlgmr.msrb.gmra.mxu0 %vm1500_vm8, %v5641_v23 }
 0xb85   :  { %3244 = vmatpush.bf16.msrb.mxu1 %v4520_v40 }
 0xb86   :  { %4478 = vmatmul.msk.f32.gmra.mxu1 %vm2809_vm3, %v5731_v20  ;;  %v4624_v20 = vor.u32 %v4818_v33, %v4623_v11 }
 0xb88   :  { %3551 = vmatpush.bf16.msra.mxu0 %v4624_v20 }
 0xb8c   :  { %3552 = vmatpush.bf16.msra.mxu0 %v4616_v36 }
 0xb8e   :  { %4479 = vmatmul.msk.f32.gmra.mxu1 %vm2809_vm3, %v5737_v38 }
 0xb90   :  { %3553 = vmatpush.bf16.msra.mxu0 %v4608_v14 }
 0xb94   :  { %4562 = vmatmul.msk.bf16.gmra.mxu0 %vm1500_vm8, %v5655_v37 }
 0xb95   :  { %3554 = vmatpush.bf16.msra.mxu0 %v4600_v43 }
 0xb96   :  { %4480 = vmatmul.msk.f32.gmra.mxu1 %vm2809_vm3, %v5746_v44 }
 0xb99   :  { %v5802_v38 = vpop.f32.mrf.mxu0 }
 0xb9e   :  { %4481 = vmatmul.msk.f32.gmra.mxu1 %vm2809_vm3, %v5754_v56  ;;  %v3545_v56 = vsel %vm1062_vm6, %v3528_v54, 0 }
 0xb9f   :  { %3576 = vmatpush.bf16.msra.mxu1 %v3545_v56 }
 0xba1   :  { %v5806_v44 = vpop.f32.mrf.mxu0 }
 0xba2   :  { %v5898_v17 = vpop.f32.mrf.mxu3 }
 0xba3   :  { %v5824_v50 = vpop.f32.mrf.mxu2 }
 0xba4   :  { %4563 = vmatmul.msk.bf16.gmra.mxu0 %vm1500_vm8, %v5665_v51 }
 0xba6   :  { %4482 = vmatmul.msk.f32.gmra.mxu1 %vm2809_vm3, %v5762_v59  ;;  %v4641_v59 = vld [vmem:[#allocation16 + $0x190] sm:$0xf0] }
 0xba9   :  { %v5812_v46 = vpop.f32.mrf.mxu0 }
 0xbab   :  { %v5834_v61 = vpop.f32.mrf.mxu2 }
 0xbae   :  { %4483 = vmatmul.msk.f32.gmra.mxu1 %vm2809_vm3, %v5770_v62  ;;  %v4644_v62 = vor.u32 %v4821_v58, %v4641_v59 }
 0xbb0   :  { %3577 = vmatpush.bf16.msra.mxu1 %v4644_v62 }
 0xbb1   :  { %v5816_v47 = vpop.f32.mrf.mxu0 }
 0xbb3   :  { %v3091_v7 = vpop.f32.mrf.mxu2 }
 0xbb4   :  { %4564 = vmatmul.msk.bf16.gmra.mxu0 %vm1500_vm8, %v5643_v24 }
 0xbb6   :  { %4484 = vmatmul.msk.f32.gmra.mxu1 %vm2809_vm3, %v5778_v0  ;;  %v4633_v0 = vld [vmem:[#allocation16 + $0x180] sm:$0xf0] }
 0xbb7   :  { %v4636_v3 = vor.u32 %v4819_v63, %v4633_v0 }
 0xbb9   :  { %v5822_v48 = vpop.f32.mrf.mxu0  ;;  %3578 = vmatpush.bf16.msra.mxu1 %v4636_v3 }
 0xbbb   :  { %v3094_v25 = vpop.f32.mrf.mxu2 }
 0xbbd   :  { %3579 = vmatpush.bf16.msra.mxu1 %v4628_v6 }
 0xbbe   :  { %4565 = vmatmul.msk.bf16.vlgmr.msrb.gmra.mxu1 %vm1500_vm8, %v5641_v23 }
 0xbc1   :  { %v5829_v55 = vpop.f32.mrf.mxu0  ;;  %3580 = vmatpush.bf16.msra.mxu1 %v4620_v12  ;;  %v3266_v12 = vld [vmem:[#allocation18 + $0xd0] sm:$0xff] }
 0xbc3   :  { %v3097_v29 = vpop.f32.mrf.mxu2 }
 0xbc4   :  { %4645 = vmatmul.msk.bf16.vlgmr.msra.gmra.mxu0 %vm1500_vm8, %v5641_v23 }
 0xbc5   :  { %3581 = vmatpush.bf16.msra.mxu1 %v4612_v49  ;;  %v3267_v49 = vld [vmem:[#allocation18 + $0xd8] sm:$0xff] }
 0xbc9   :  { %v5836_v1 = vpop.f32.mrf.mxu0  ;;  %3582 = vmatpush.bf16.msra.mxu1 %v4604_v28  ;;  %v3268_v28 = vld [vmem:[#allocation18 + $0xe0] sm:$0xff] }
 0xbcb   :  { %v3100_v33 = vpop.f32.mrf.mxu2 }
 0xbce   :  { %4566 = vmatmul.msk.bf16.gmra.mxu1 %vm1500_vm8, %v5655_v37 }
 0xbd1   :  { %v5840_v10 = vpop.f32.mrf.mxu0 }
 0xbd3   :  { %v5842_v15 = vpop.f32.mrf.mxu1  ;;  %v3103_v26 = vpop.f32.mrf.mxu2 }
 0xbd4   :  { %4646 = vmatmul.msk.bf16.gmra.mxu0 %vm1500_vm8, %v5655_v37 }
 0xbd9   :  { %v5846_v22 = vpop.f32.mrf.mxu0 }
 0xbdb   :  { %v5848_v53 = vpop.f32.mrf.mxu1  ;;  %v3106_v8 = vpop.f32.mrf.mxu2 }
 0xbde   :  { %4567 = vmatmul.msk.bf16.gmra.mxu1 %vm1500_vm8, %v5665_v51 }
 0xbe1   :  { %v5852_v60 = vpop.f32.mrf.mxu0 }
 0xbe3   :  { %v2934_v27 = vpop.f32.mrf.mxu1  ;;  %v3109_v19 = vpop.f32.mrf.mxu2 }
 0xbe4   :  { %v5854_v30 = vadd.f32 %v3091_v7, %v2934_v27  ;;  %4647 = vmatmul.msk.bf16.gmra.mxu0 %vm1500_vm8, %v5665_v51 }
 0xbe9   :  { %v5858_v31 = vpop.f32.mrf.mxu0 }
 0xbeb   :  { %v2937_v32 = vpop.f32.mrf.mxu1  ;;  %v3112_v56 = vpop.f32.mrf.mxu2 }
 0xbec   :  { %v5860_v11 = vadd.f32 %v3094_v25, %v2937_v32  ;;  %v5901_v25 = vpop.f32.mrf.mxu3  ;;  %v3269_v32 = vld [vmem:[#allocation18 + $0xe8] sm:$0xff] }
 0xbee   :  { %4568 = vmatmul.msk.bf16.gmra.mxu1 %vm1500_vm8, %v5643_v24 }
 0xbf1   :  { %v5864_v20 = vpop.f32.mrf.mxu0 }
 0xbf3   :  { %v2940_v39 = vpop.f32.mrf.mxu1  ;;  %v3115_v62 = vpop.f32.mrf.mxu2 }
 0xbf4   :  { %v5866_v45 = vadd.f32 %v3097_v29, %v2940_v39  ;;  %4648 = vmatmul.msk.bf16.gmra.mxu0 %vm1500_vm8, %v5643_v24 }
 0xbf9   :  { %v5870_v34 = vpop.f32.mrf.mxu0 }
 0xbfb   :  { %v2943_v35 = vpop.f32.mrf.mxu1  ;;  %v3118_v5 = vpop.f32.mrf.mxu2 }
 0xbfc   :  { %v5872_v36 = vadd.f32 %v3100_v33, %v2943_v35  ;;  %v5904_v33 = vpop.f32.mrf.mxu3  ;;  %v3270_v35 = vld [vmem:[#allocation18 + $0xf0] sm:$0xff] }
 0xbfe   :  { %4649 = vmatmul.msk.bf16.vlgmr.msra.gmra.mxu1 %vm1500_vm8, %v5641_v23 }
 0xc01   :  { %v3218_v2 = vpop.f32.mrf.mxu0 }
 0xc03   :  { %v2946_v40 = vpop.f32.mrf.mxu1 }
 0xc04   :  { %v5876_v41 = vadd.f32 %v3103_v26, %v2946_v40 }
 0xc09   :  { %v3220_v42 = vpop.f32.mrf.mxu0 }
 0xc0b   :  { %v2949_v14 = vpop.f32.mrf.mxu1 }
 0xc0c   :  { %v5878_v57 = vadd.f32 %v3106_v8, %v2949_v14 }
 0xc0e   :  { %4650 = vmatmul.msk.bf16.gmra.mxu1 %vm1500_vm8, %v5655_v37 }
 0xc11   :  { %v3223_v43 = vpop.f32.mrf.mxu0 }
 0xc13   :  { %v2952_v52 = vpop.f32.mrf.mxu1 }
 0xc14   :  { %v5882_v54 = vadd.f32 %v3109_v19, %v2952_v52  ;;  %v3272_v52 = vld [vmem:[#allocation18 + $0x100] sm:$0xff] }
 0xc19   :  { %v3225_v58 = vpop.f32.mrf.mxu0 }
 0xc1b   :  { %v2955_v23 = vpop.f32.mrf.mxu1 }
 0xc1c   :  { %v5884_v59 = vadd.f32 %v3112_v56, %v2955_v23 }
 0xc1e   :  { %4651 = vmatmul.msk.bf16.gmra.mxu1 %vm1500_vm8, %v5665_v51 }
 0xc21   :  { %v3228_v63 = vpop.f32.mrf.mxu0 }
 0xc23   :  { %v2958_v0 = vpop.f32.mrf.mxu1 }
 0xc24   :  { %v5888_v3 = vadd.f32 %v3115_v62, %v2958_v0  ;;  %v3273_v62 = vld [vmem:[#allocation18 + $0x108] sm:$0xff] }
 0xc29   :  { %v3230_v4 = vpop.f32.mrf.mxu0 }
 0xc2b   :  { %v2961_v37 = vpop.f32.mrf.mxu1 }
 0xc2c   :  { %v5890_v6 = vadd.f32 %v3118_v5, %v2961_v37  ;;  %v3604_v5 = vld [vmem:[#allocation18 + $0x138] sm:$0xff] }
 0xc2e   :  { %4652 = vmatmul.msk.bf16.gmra.mxu1 %vm1500_vm8, %v5643_v24 }
 0xc31   :  { %v3233_v7 = vpop.f32.mrf.mxu0 }
 0xc32   :  { %4569 = vmatpush.msk.msrb.mxu3 %vm1062_vm6, %v3233_v7 }
 0xc33   :  { %v5895_v9 = vpop.f32.mrf.mxu1 }
 0xc34   :  { %3334 = vmatpush.msrb.mxu3 %v3230_v4  ;;  %v3274_v4 = vld [vmem:[#allocation18 + $0x110] sm:$0xff] }
 0xc36   :  { %3335 = vmatpush.msrb.mxu3 %v3228_v63 }
 0xc38   :  { %3336 = vmatpush.msrb.mxu3 %v3225_v58 }
 0xc39   :  { %v3235_v51 = vpop.f32.mrf.mxu0 }
 0xc3a   :  { %3337 = vmatpush.msrb.mxu3 %v3223_v43  ;;  %v3275_v51 = vld [vmem:[#allocation18 + $0x118] sm:$0xff] }
 0xc3b   :  { %v3246_v13 = vpop.f32.mrf.mxu1 }
 0xc3c   :  { %3338 = vmatpush.msrb.mxu3 %v3220_v42  ;;  %v3271_v42 = vld [vmem:[#allocation18 + $0xf8] sm:$0xff] }
 0xc3e   :  { %3339 = vmatpush.msrb.mxu3 %v3218_v2  ;;  %v5908_v2 = vpop.f32.mrf.mxu3 }
 0xc3f   :  { %4570 = vmatmul.msk.f32.vlgmr.msrb.gmra.mxu3 %vm2809_vm3, %v3266_v12 }
 0xc41   :  { %v3556_v16 = vpop.f32.mrf.mxu0 }
 0xc43   :  { %v3248_v24 = vpop.f32.mrf.mxu1 }
 0xc46   :  { %v5911_v19 = vpop.f32.mrf.mxu3 }
 0xc47   :  { %4571 = vmatmul.msk.f32.gmra.mxu3 %vm2809_vm3, %v3267_v49 }
 0xc49   :  { %v3558_v18 = vpop.f32.mrf.mxu0 }
 0xc4b   :  { %v3251_v21 = vpop.f32.mrf.mxu1 }
 0xc4e   :  { %v5916_v23 = vpop.f32.mrf.mxu3 }
 0xc4f   :  { %4572 = vmatmul.msk.f32.gmra.mxu3 %vm2809_vm3, %v3268_v28 }
 0xc51   :  { %v3561_v27 = vpop.f32.mrf.mxu0 }
 0xc53   :  { %v3253_v29 = vpop.f32.mrf.mxu1 }
 0xc56   :  { %v5920_v37 = vpop.f32.mrf.mxu3 }
 0xc57   :  { %4573 = vmatmul.msk.f32.gmra.mxu3 %vm2809_vm3, %v3269_v32 }
 0xc59   :  { %v3563_v39 = vpop.f32.mrf.mxu0 }
 0xc5b   :  { %v3256_v26 = vpop.f32.mrf.mxu1 }
 0xc5f   :  { %4574 = vmatmul.msk.f32.gmra.mxu3 %vm2809_vm3, %v3270_v35 }
 0xc61   :  { %v3566_v8 = vpop.f32.mrf.mxu0 }
 0xc63   :  { %v3258_v40 = vpop.f32.mrf.mxu1 }
 0xc67   :  { %4575 = vmatmul.msk.f32.gmra.mxu3 %vm2809_vm3, %v3271_v42 }
 0xc69   :  { %v3568_v14 = vpop.f32.mrf.mxu0 }
 0xc6b   :  { %v3261_v43 = vpop.f32.mrf.mxu1 }
 0xc6c   :  { %4583 = vmatpush.msk.msrb.mxu2 %vm1062_vm6, %v3261_v43  ;;  %v3610_v43 = vld [vmem:[#allocation18 + $0x168] sm:$0xff] }
 0xc6e   :  { %3390 = vmatpush.msrb.mxu2 %v3258_v40  ;;  %v3609_v40 = vld [vmem:[#allocation18 + $0x160] sm:$0xff] }
 0xc6f   :  { %4576 = vmatmul.msk.f32.gmra.mxu3 %vm2809_vm3, %v3272_v52 }
 0xc70   :  { %3391 = vmatpush.msrb.mxu2 %v3256_v26  ;;  %v3278_v26 = vld [vmem:[#allocation18 + $0x130] sm:$0xff] }
 0xc71   :  { %v3571_v56 = vpop.f32.mrf.mxu0 }
 0xc72   :  { %3392 = vmatpush.msrb.mxu2 %v3253_v29  ;;  %4653 = vmatpush.msk.msrb.mxu0 %vm1062_vm6, %v3571_v56  ;;  %v3607_v29 = vld [vmem:[#allocation18 + $0x150] sm:$0xff] }
 0xc73   :  { %v3263_v58 = vpop.f32.mrf.mxu1 }
 0xc74   :  { %3393 = vmatpush.msrb.mxu2 %v3251_v21  ;;  %3672 = vmatpush.msrb.mxu0 %v3568_v14  ;;  %v3611_v58 = vld [vmem:[#allocation18 + $0x170] sm:$0xff] }
 0xc76   :  { %3394 = vmatpush.msrb.mxu2 %v3248_v24  ;;  %3673 = vmatpush.msrb.mxu0 %v3566_v8  ;;  %v3608_v8 = vld [vmem:[#allocation18 + $0x158] sm:$0xff] }
 0xc77   :  { %4577 = vmatmul.msk.f32.gmra.mxu3 %vm2809_vm3, %v3273_v62 }
 0xc78   :  { %3395 = vmatpush.msrb.mxu2 %v3246_v13  ;;  %3674 = vmatpush.msrb.mxu0 %v3563_v39  ;;  %v3605_v13 = vld [vmem:[#allocation18 + $0x140] sm:$0xff] }
 0xc79   :  { %4584 = vmatmul.msk.f32.vlgmr.msrb.gmra.mxu2 %vm2809_vm3, %v3266_v12  ;;  %v3573_v63 = vpop.f32.mrf.mxu0  ;;  %v5927_v12 = vpop.f32.mrf.mxu3 }
 0xc7a   :  { %3675 = vmatpush.msrb.mxu0 %v3561_v27  ;;  %v3277_v27 = vld [vmem:[#allocation18 + $0x128] sm:$0xff]  ;;  %v3612_v63 = vld [vmem:[#allocation18 + $0x178] sm:$0xff] }
 0xc7b   :  { %v3584_v0 = vpop.f32.mrf.mxu1 }
 0xc7c   :  { %3676 = vmatpush.msrb.mxu0 %v3558_v18  ;;  %v3276_v18 = vld [vmem:[#allocation18 + $0x120] sm:$0xff] }
 0xc7e   :  { %3677 = vmatpush.msrb.mxu0 %v3556_v16  ;;  %v3606_v16 = vld [vmem:[#allocation18 + $0x148] sm:$0xff] }
 0xc7f   :  { %4578 = vmatmul.msk.f32.gmra.mxu3 %vm2809_vm3, %v3274_v4  ;;  %4654 = vmatmul.msk.f32.vlgmr.msrb.gmra.mxu0 %vm2809_vm3, %v3604_v5 }
 0xc81   :  { %4585 = vmatmul.msk.f32.gmra.mxu2 %vm2809_vm3, %v3267_v49  ;;  %v5933_v49 = vpop.f32.mrf.mxu3 }
 0xc83   :  { %v3586_v7 = vpop.f32.mrf.mxu1 }
 0xc87   :  { %4579 = vmatmul.msk.f32.gmra.mxu3 %vm2809_vm3, %v3275_v51  ;;  %4655 = vmatmul.msk.f32.gmra.mxu0 %vm2809_vm3, %v3605_v13 }
 0xc89   :  { %4586 = vmatmul.msk.f32.gmra.mxu2 %vm2809_vm3, %v3268_v28  ;;  %v5938_v39 = vpop.f32.mrf.mxu3 }
 0xc8b   :  { %v3589_v24 = vpop.f32.mrf.mxu1 }
 0xc8f   :  { %4580 = vmatmul.msk.f32.gmra.mxu3 %vm2809_vm3, %v3276_v18  ;;  %4656 = vmatmul.msk.f32.gmra.mxu0 %vm2809_vm3, %v3606_v16 }
 0xc91   :  { %4587 = vmatmul.msk.f32.gmra.mxu2 %vm2809_vm3, %v3269_v32  ;;  %v5943_v14 = vpop.f32.mrf.mxu3 }
 0xc93   :  { %v3591_v21 = vpop.f32.mrf.mxu1 }
 0xc97   :  { %4581 = vmatmul.msk.f32.gmra.mxu3 %vm2809_vm3, %v3277_v27  ;;  %4657 = vmatmul.msk.f32.gmra.mxu0 %vm2809_vm3, %v3607_v29 }
 0xc99   :  { %4588 = vmatmul.msk.f32.gmra.mxu2 %vm2809_vm3, %v3270_v35  ;;  %v5949_v56 = vpop.f32.mrf.mxu3 }
 0xc9b   :  { %v3594_v28 = vpop.f32.mrf.mxu1 }
 0xc9f   :  { %4582 = vmatmul.msk.f32.gmra.mxu3 %vm2809_vm3, %v3278_v26  ;;  %4658 = vmatmul.msk.f32.gmra.mxu0 %vm2809_vm3, %v3608_v8 }
 0xca1   :  { %4589 = vmatmul.msk.f32.gmra.mxu2 %vm2809_vm3, %v3271_v42 }
 0xca3   :  { %v3596_v32 = vpop.f32.mrf.mxu1 }
 0xca7   :  { %4659 = vmatmul.msk.f32.gmra.mxu0 %vm2809_vm3, %v3609_v40 }
 0xca9   :  { %4590 = vmatmul.msk.f32.gmra.mxu2 %vm2809_vm3, %v3272_v52  ;;  %v5955_v52 = vpop.f32.mrf.mxu3 }
 0xcab   :  { %v3599_v35 = vpop.f32.mrf.mxu1 }
 0xcac   :  { %4667 = vmatpush.msk.msra.mxu3 %vm1062_vm6, %v3599_v35 }
 0xcae   :  { %3728 = vmatpush.msra.mxu3 %v3596_v32 }
 0xcaf   :  { %4660 = vmatmul.msk.f32.gmra.mxu0 %vm2809_vm3, %v3610_v43 }
 0xcb0   :  { %3729 = vmatpush.msra.mxu3 %v3594_v28 }
 0xcb1   :  { %4591 = vmatmul.msk.f32.gmra.mxu2 %vm2809_vm3, %v3273_v62 }
 0xcb2   :  { %3730 = vmatpush.msra.mxu3 %v3591_v21  ;;  %v3030_v21 = vadd.f32 %v5898_v17, %v5802_v38  ;;  %v3036_v38 = vadd.f32 %v5904_v33, %v5812_v46 }
 0xcb3   :  { %v3601_v42 = vpop.f32.mrf.mxu1 }
 0xcb4   :  { %3731 = vmatpush.msra.mxu3 %v3589_v24  ;;  %v3613_v24 = vld [vmem:[#allocation18 + $0x180] sm:$0xff] }
 0xcb6   :  { %3732 = vmatpush.msra.mxu3 %v3586_v7  ;;  %v3615_v7 = vld [vmem:[#allocation18 + $0x190] sm:$0xff] }
 0xcb7   :  { %4661 = vmatmul.msk.f32.gmra.mxu0 %vm2809_vm3, %v3611_v58 }
 0xcb8   :  { %3733 = vmatpush.msra.mxu3 %v3584_v0 }
 0xcb9   :  { %4592 = vmatmul.msk.f32.gmra.mxu2 %vm2809_vm3, %v3274_v4  ;;  %4668 = vmatmul.msk.f32.vlgmr.msra.gmra.mxu3 %vm2809_vm3, %v3604_v5  ;;  %v3614_v4 = vld [vmem:[#allocation18 + $0x188] sm:$0xff] }
 0xcbf   :  { %4662 = vmatmul.msk.f32.gmra.mxu0 %vm2809_vm3, %v3612_v63 }
 0xcc1   :  { %4593 = vmatmul.msk.f32.gmra.mxu2 %vm2809_vm3, %v3275_v51  ;;  %4669 = vmatmul.msk.f32.gmra.mxu3 %vm2809_vm3, %v3605_v13  ;;  %v3616_v13 = vld [vmem:[#allocation18 + $0x198] sm:$0xff] }
 0xcc2   :  { %v3341_v62 = vpop.f32.mrf.mxu3 }
 0xcc7   :  { %4663 = vmatmul.msk.f32.gmra.mxu0 %vm2809_vm3, %v3613_v24 }
 0xcc9   :  { %4594 = vmatmul.msk.f32.gmra.mxu2 %vm2809_vm3, %v3276_v18  ;;  %4670 = vmatmul.msk.f32.gmra.mxu3 %vm2809_vm3, %v3606_v16 }
 0xcca   :  { %v3344_v0 = vpop.f32.mrf.mxu3 }
 0xccf   :  { %4664 = vmatmul.msk.f32.gmra.mxu0 %vm2809_vm3, %v3614_v4 }
 0xcd1   :  { %4595 = vmatmul.msk.f32.gmra.mxu2 %vm2809_vm3, %v3277_v27  ;;  %4671 = vmatmul.msk.f32.gmra.mxu3 %vm2809_vm3, %v3607_v29  ;;  %v3436_v29 = vadd.f32 %v3341_v62, %v3030_v21  ;;  %v3039_v62 = vadd.f32 %v5908_v2, %v5816_v47  ;;  %v5996_v21 = vpop.f32.mrf.mxu2 }
 0xcd2   :  { %v3347_v5 = vpop.f32.mrf.mxu3 }
 0xcd3   :  { %v3440_v17 = vadd.f32 %v3347_v5, %v3036_v38  ;;  %v3042_v5 = vadd.f32 %v5911_v19, %v5822_v48 }
 0xcd7   :  { %4665 = vmatmul.msk.f32.gmra.mxu0 %vm2809_vm3, %v3615_v7 }
 0xcd9   :  { %4596 = vmatmul.msk.f32.gmra.mxu2 %vm2809_vm3, %v3278_v26  ;;  %4672 = vmatmul.msk.f32.gmra.mxu3 %vm2809_vm3, %v3608_v8  ;;  %v3033_v8 = vadd.f32 %v5901_v25, %v5806_v44 }
 0xcda   :  { %v3350_v51 = vpop.f32.mrf.mxu3 }
 0xcdb   :  { %v3438_v32 = vadd.f32 %v3344_v0, %v3033_v8 }
 0xcdf   :  { %4666 = vmatmul.msk.f32.gmra.mxu0 %vm2809_vm3, %v3616_v13 }
 0xce1   :  { %4673 = vmatmul.msk.f32.gmra.mxu3 %vm2809_vm3, %v3609_v40 }
 0xce2   :  { %v3353_v18 = vpop.f32.mrf.mxu3 }
 0xce3   :  { %v3444_v47 = vadd.f32 %v3353_v18, %v3042_v5 }
 0xce9   :  { %4674 = vmatmul.msk.f32.gmra.mxu3 %vm2809_vm3, %v3610_v43 }
 0xcea   :  { %v3356_v16 = vpop.f32.mrf.mxu3 }
 0xcf1   :  { %4675 = vmatmul.msk.f32.gmra.mxu3 %vm2809_vm3, %v3611_v58 }
 0xcf2   :  { %v3359_v27 = vpop.f32.mrf.mxu3 }
 0xcf9   :  { %4676 = vmatmul.msk.f32.gmra.mxu3 %vm2809_vm3, %v3612_v63 }
 0xcfa   :  { %v3362_v40 = vpop.f32.mrf.mxu3 }
 0xcfc   :  { %v3679_v28 = vpop.f32.mrf.mxu0 }
 0xcfd   :  { %v3774_v26 = vadd.f32 %v3679_v28, %v3436_v29  ;;  %v3045_v29 = vadd.f32 %v5916_v23, %v5829_v55  ;;  %v3397_v28 = vpop.f32.mrf.mxu2  ;;  %v3051_v23 = vadd.f32 %v5927_v12, %v5840_v10 }
 0xcff   :  { %4853 = vtanh.f32 %v3774_v26  ;;  %v3446_v8 = vadd.f32 %v3356_v16, %v3045_v29  ;;  %v3450_v16 = vadd.f32 %v3362_v40, %v3051_v23 }
 0xd01   :  { %4677 = vmatmul.msk.f32.gmra.mxu3 %vm2809_vm3, %v3613_v24  ;;  %v3442_v24 = vadd.f32 %v3350_v51, %v3039_v62 }
 0xd02   :  { %v3365_v25 = vpop.f32.mrf.mxu3 }
 0xd04   :  { %v3682_v35 = vpop.f32.mrf.mxu0 }
 0xd05   :  { %v4854_v43 = vpop.eup %4853  ;;  %v3776_v42 = vadd.f32 %v3682_v35, %v3438_v32  ;;  %v3400_v35 = vpop.f32.mrf.mxu2 }
 0xd06   :  { %3826 = vst [vmem:[%s6131_s18] sm:$0xff] %v4854_v43 }
 0xd07   :  { %4855 = vtanh.f32 %v3776_v42 }
 0xd09   :  { %4678 = vmatmul.msk.f32.gmra.mxu3 %vm2809_vm3, %v3614_v4 }
 0xd0a   :  { %v3368_v4 = vpop.f32.mrf.mxu3 }
 0xd0c   :  { %v3685_v58 = vpop.f32.mrf.mxu0 }
 0xd0d   :  { %v4856_v44 = vpop.eup %4855  ;;  %v3778_v63 = vadd.f32 %v3685_v58, %v3440_v17 }
 0xd0e   :  { %3829 = vst [vmem:[%s6131_s18 + $0x10] sm:$0xff] %v4856_v44  ;;  %v3403_v44 = vpop.f32.mrf.mxu2 }
 0xd0f   :  { %4857 = vtanh.f32 %v3778_v63 }
 0xd11   :  { %4679 = vmatmul.msk.f32.gmra.mxu3 %vm2809_vm3, %v3615_v7 }
 0xd12   :  { %v3371_v26 = vpop.f32.mrf.mxu3 }
 0xd14   :  { %v3688_v0 = vpop.f32.mrf.mxu0 }
 0xd15   :  { %v4858_v46 = vpop.eup %4857  ;;  %v3780_v33 = vadd.f32 %v3688_v0, %v3442_v24 }
 0xd16   :  { %3831 = vst [vmem:[%s6131_s18 + $0x20] sm:$0xff] %v4858_v46 }
 0xd17   :  { %4859 = vtanh.f32 %v3780_v33  ;;  %v3406_v33 = vpop.f32.mrf.mxu2 }
 0xd19   :  { %4680 = vmatmul.msk.f32.gmra.mxu3 %vm2809_vm3, %v3616_v13  ;;  %v3048_v13 = vadd.f32 %v5920_v37, %v5836_v1  ;;  %v3054_v37 = vadd.f32 %v5933_v49, %v5846_v22  ;;  %v3057_v22 = vadd.f32 %v5938_v39, %v5852_v60  ;;  %v3441_v39 = vadd.f32 %v3403_v44, %v5854_v30 }
 0xd1a   :  { %v3374_v43 = vpop.f32.mrf.mxu3  ;;  %v3063_v30 = vadd.f32 %v5949_v56, %v5864_v20 }
 0xd1b   :  { %v3448_v18 = vadd.f32 %v3359_v27, %v3048_v13  ;;  %v3086_v27 = vadd.f32 %v5824_v50, %v5842_v15  ;;  %v3452_v62 = vadd.f32 %v3365_v25, %v3054_v37  ;;  %v3089_v50 = vadd.f32 %v5834_v61, %v5848_v53 }
 0xd1c   :  { %v3691_v2 = vpop.f32.mrf.mxu0  ;;  %v3454_v15 = vadd.f32 %v3368_v4, %v3057_v22  ;;  %v3060_v61 = vadd.f32 %v5943_v14, %v5858_v31  ;;  %v3458_v31 = vadd.f32 %v3374_v43, %v3063_v30 }
 0xd1d   :  { %v4860_v7 = vpop.eup %4859  ;;  %v3782_v51 = vadd.f32 %v3691_v2, %v3444_v47  ;;  %v3437_v24 = vadd.f32 %v3397_v28, %v3086_v27  ;;  %v3439_v49 = vadd.f32 %v3400_v35, %v3089_v50 }
 0xd1e   :  { %3833 = vst [vmem:[%s6131_s18 + $0x30] sm:$0xff] %v4860_v7  ;;  %v3456_v60 = vadd.f32 %v3371_v26, %v3060_v61  ;;  %v3443_v26 = vadd.f32 %v3406_v33, %v5860_v11  ;;  %v3066_v11 = vadd.f32 %v5955_v52, %v5870_v34 }
 0xd1f   :  { %4861 = vtanh.f32 %v3782_v51  ;;  %v3409_v53 = vpop.f32.mrf.mxu2 }
 0xd20   :  { %v3445_v56 = vadd.f32 %v3409_v53, %v5866_v45 }
 0xd22   :  { %v3377_v63 = vpop.f32.mrf.mxu3 }
 0xd23   :  { %v3460_v20 = vadd.f32 %v3377_v63, %v3066_v11 }
 0xd24   :  { %v3694_v48 = vpop.f32.mrf.mxu0 }
 0xd25   :  { %v4862_v19 = vpop.eup %4861  ;;  %v3784_v32 = vadd.f32 %v3694_v48, %v3446_v8 }
 0xd26   :  { %3835 = vst [vmem:[%s6131_s18 + $0x40] sm:$0xff] %v4862_v19 }
 0xd27   :  { %4863 = vtanh.f32 %v3784_v32  ;;  %v3412_v14 = vpop.f32.mrf.mxu2 }
 0xd28   :  { %v3447_v45 = vadd.f32 %v3412_v14, %v5872_v36 }
 0xd2c   :  { %v3697_v42 = vpop.f32.mrf.mxu0 }
 0xd2d   :  { %v4864_v38 = vpop.eup %4863  ;;  %v3786_v55 = vadd.f32 %v3697_v42, %v3448_v18 }
 0xd2e   :  { %3837 = vst [vmem:[%s6131_s18 + $0x50] sm:$0xff] %v4864_v38 }
 0xd2f   :  { %4865 = vtanh.f32 %v3786_v55  ;;  %v3415_v23 = vpop.f32.mrf.mxu2 }
 0xd30   :  { %v3449_v27 = vadd.f32 %v3415_v23, %v5876_v41 }
 0xd34   :  { %v3700_v17 = vpop.f32.mrf.mxu0 }
 0xd35   :  { %v4866_v58 = vpop.eup %4865  ;;  %v3788_v1 = vadd.f32 %v3700_v17, %v3450_v16 }
 0xd36   :  { %3839 = vst [vmem:[%s6131_s18 + $0x60] sm:$0xff] %v4866_v58 }
 0xd37   :  { %4867 = vtanh.f32 %v3788_v1  ;;  %v3418_v37 = vpop.f32.mrf.mxu2 }
 0xd3c   :  { %v3703_v10 = vpop.f32.mrf.mxu0  ;;  %v3735_v0 = vpop.f32.mrf.mxu3 }
 0xd3d   :  { %v4868_v12 = vpop.eup %4867  ;;  %v3790_v40 = vadd.f32 %v3703_v10, %v3452_v62  ;;  %v3775_v46 = vadd.f32 %v3735_v0, %v3437_v24 }
 0xd3e   :  { %3841 = vst [vmem:[%s6131_s18 + $0x70] sm:$0xff] %v4868_v12  ;;  %v3451_v12 = vadd.f32 %v3418_v37, %v5878_v57 }
 0xd3f   :  { %4869 = vtanh.f32 %v3790_v40  ;;  %v3421_v10 = vpop.f32.mrf.mxu2 }
 0xd40   :  { %4871 = vtanh.f32 %v3775_v46  ;;  %v3453_v33 = vadd.f32 %v3421_v10, %v5882_v54 }
 0xd44   :  { %v3706_v25 = vpop.f32.mrf.mxu0  ;;  %v3738_v2 = vpop.f32.mrf.mxu3 }
 0xd45   :  { %v4870_v5 = vpop.eup %4869  ;;  %v3792_v47 = vadd.f32 %v3706_v25, %v3454_v15  ;;  %v3777_v51 = vadd.f32 %v3738_v2, %v3439_v49 }
 0xd46   :  { %v4872_v7 = vpop.eup %4871  ;;  %3843 = vst [vmem:[%s6131_s18 + $0x80] sm:$0xff] %v4870_v5 }
 0xd47   :  { %3828 = vst.msk [vmem:[%s6131_s18 + $0x8] sm:$0xff] %vm3827_vm4, %v4872_v7  ;;  %4873 = vtanh.f32 %v3792_v47  ;;  %v3424_v41 = vpop.f32.mrf.mxu2 }
 0xd48   :  { %4875 = vtanh.f32 %v3777_v51  ;;  %v3455_v57 = vadd.f32 %v3424_v41, %v5884_v59 }
 0xd4c   :  { %v3709_v4 = vpop.f32.mrf.mxu0  ;;  %v3741_v8 = vpop.f32.mrf.mxu3 }
 0xd4d   :  { %v4874_v29 = vpop.eup %4873  ;;  %v3794_v28 = vadd.f32 %v3709_v4, %v3456_v60  ;;  %v3779_v19 = vadd.f32 %v3741_v8, %v3441_v39  ;;  %v3122_v4 = vadd.f32 %v5996_v21, %v5895_v9 }
 0xd4e   :  { %v4876_v48 = vpop.eup %4875  ;;  %3845 = vst [vmem:[%s6131_s18 + $0x90] sm:$0xff] %v4874_v29 }
 0xd4f   :  { %3830 = vst.msk [vmem:[%s6131_s18 + $0x18] sm:$0xff] %vm3827_vm4, %v4876_v48  ;;  %4877 = vtanh.f32 %v3794_v28  ;;  %v3427_v49 = vpop.f32.mrf.mxu2 }
 0xd50   :  { %4879 = vtanh.f32 %v3779_v19  ;;  %v3457_v54 = vadd.f32 %v3427_v49, %v5888_v3 }
 0xd54   :  { %v3712_v32 = vpop.f32.mrf.mxu0  ;;  %v3744_v35 = vpop.f32.mrf.mxu3 }
 0xd55   :  { %v4878_v13 = vpop.eup %4877  ;;  %v3796_v18 = vadd.f32 %v3712_v32, %v3458_v31  ;;  %v3781_v38 = vadd.f32 %v3744_v35, %v3443_v26 }
 0xd56   :  { %v4880_v42 = vpop.eup %4879  ;;  %3847 = vst [vmem:[%s6131_s18 + $0xa0] sm:$0xff] %v4878_v13 }
 0xd57   :  { %3832 = vst.msk [vmem:[%s6131_s18 + $0x28] sm:$0xff] %vm3827_vm4, %v4880_v42  ;;  %4881 = vtanh.f32 %v3796_v18  ;;  %v3430_v61 = vpop.f32.mrf.mxu2 }
 0xd58   :  { %4883 = vtanh.f32 %v3781_v38  ;;  %v3459_v59 = vadd.f32 %v3430_v61, %v5890_v6 }
 0xd5c   :  { %v3715_v43 = vpop.f32.mrf.mxu0  ;;  %v3747_v17 = vpop.f32.mrf.mxu3 }
 0xd5d   :  { %v4882_v55 = vpop.eup %4881  ;;  %v3798_v16 = vadd.f32 %v3715_v43, %v3460_v20  ;;  %v3783_v44 = vadd.f32 %v3747_v17, %v3445_v56 }
 0xd5e   :  { %v4884_v58 = vpop.eup %4883  ;;  %3849 = vst [vmem:[%s6131_s18 + $0xb0] sm:$0xff] %v4882_v55 }
 0xd5f   :  { %3834 = vst.msk [vmem:[%s6131_s18 + $0x38] sm:$0xff] %vm3827_vm4, %v4884_v58  ;;  %4885 = vtanh.f32 %v3798_v16  ;;  %v3433_v3 = vpop.f32.mrf.mxu2 }
 0xd60   :  { %4887 = vtanh.f32 %v3783_v44  ;;  %v3461_v29 = vadd.f32 %v3433_v3, %v3122_v4 }
 0xd64   :  { %v3750_v52 = vpop.f32.mrf.mxu3 }
 0xd65   :  { %v4886_v34 = vpop.eup %4885  ;;  %v3785_v1 = vadd.f32 %v3750_v52, %v3447_v45 }
 0xd66   :  { %v4888_v63 = vpop.eup %4887  ;;  %3851 = vst [vmem:[%s6131_s18 + $0xc0] sm:$0xff] %v4886_v34 }
 0xd67   :  { %3836 = vst.msk [vmem:[%s6131_s18 + $0x48] sm:$0xff] %vm3827_vm4, %v4888_v63  ;;  %4889 = vtanh.f32 %v3785_v1 }
 0xd6c   :  { %v3753_v62 = vpop.f32.mrf.mxu3 }
 0xd6d   :  { %v4890_v24 = vpop.eup %4889  ;;  %v3787_v36 = vadd.f32 %v3753_v62, %v3449_v27 }
 0xd6e   :  { %3838 = vst.msk [vmem:[%s6131_s18 + $0x58] sm:$0xff] %vm3827_vm4, %v4890_v24 }
 0xd6f   :  { %4891 = vtanh.f32 %v3787_v36 }
 0xd74   :  { %v3756_v40 = vpop.f32.mrf.mxu3 }
 0xd75   :  { %v4892_v0 = vpop.eup %4891  ;;  %v3789_v46 = vadd.f32 %v3756_v40, %v3451_v12 }
 0xd76   :  { %3840 = vst.msk [vmem:[%s6131_s18 + $0x68] sm:$0xff] %vm3827_vm4, %v4892_v0 }
 0xd77   :  { %4893 = vtanh.f32 %v3789_v46 }
 0xd7c   :  { %v3759_v22 = vpop.f32.mrf.mxu3 }
 0xd7d   :  { %v4894_v50 = vpop.eup %4893  ;;  %v3791_v15 = vadd.f32 %v3759_v22, %v3453_v33 }
 0xd7e   :  { %3842 = vst.msk [vmem:[%s6131_s18 + $0x78] sm:$0xff] %vm3827_vm4, %v4894_v50 }
 0xd7f   :  { %4895 = vtanh.f32 %v3791_v15 }
 0xd84   :  { %v3762_v25 = vpop.f32.mrf.mxu3 }
 0xd85   :  { %v4896_v5 = vpop.eup %4895  ;;  %v3793_v47 = vadd.f32 %v3762_v25, %v3455_v57 }
 0xd86   :  { %3844 = vst.msk [vmem:[%s6131_s18 + $0x88] sm:$0xff] %vm3827_vm4, %v4896_v5 }
 0xd87   :  { %4897 = vtanh.f32 %v3793_v47 }
 0xd8c   :  { %v3765_v2 = vpop.f32.mrf.mxu3 }
 0xd8d   :  { %v4898_v7 = vpop.eup %4897  ;;  %v3795_v51 = vadd.f32 %v3765_v2, %v3457_v54 }
 0xd8e   :  { %3846 = vst.msk [vmem:[%s6131_s18 + $0x98] sm:$0xff] %vm3827_vm4, %v4898_v7 }
 0xd8f   :  { %4899 = vtanh.f32 %v3795_v51 }
 0xd94   :  { %v3768_v53 = vpop.f32.mrf.mxu3 }
 0xd95   :  { %v4900_v60 = vpop.eup %4899  ;;  %v3797_v39 = vadd.f32 %v3768_v53, %v3459_v59 }
 0xd96   :  { %3848 = vst.msk [vmem:[%s6131_s18 + $0xa8] sm:$0xff] %vm3827_vm4, %v4900_v60 }
 0xd97   :  { %4901 = vtanh.f32 %v3797_v39 }
 0xd9c   :  { %v3771_v28 = vpop.f32.mrf.mxu3 }
 0xd9d   :  { %v4902_v8 = vpop.eup %4901  ;;  %v3799_v48 = vadd.f32 %v3771_v28, %v3461_v29 }
 0xd9e   :  { %3850 = vst.msk [vmem:[%s6131_s18 + $0xb8] sm:$0xff] %vm3827_vm4, %v4902_v8 }
 0xd9f   :  { %4903 = vtanh.f32 %v3799_v48 }
 0xda5   :  { %v4904_v6 = vpop.eup %4903 }
 0xda6   :  { %3852 = vst.msk [vmem:[%s6131_s18 + $0xc8] sm:$0xff] %vm3827_vm4, %v4904_v6 }
 0xda7   :  { %3857 = vsyncpa [#allocation3], 1 }
 0xda8   :  { %3858 = vsyncpa [#allocation5], 1 }
 0xda9   :  { %3859 = vsyncpa [#allocation8], 1 }
 0xdaa   :  { %3860 = vsyncpa [#allocation11], 1 }
 0xdab   :  { %3861 = vsyncpa [#allocation14], 1 }
 0xdac   :  { %3862 = vsyncpa [#allocation17], 1 }

</bundles_post_ra>
